<compile_context>
chip_gen: v7x
topology: tpu7x:2x2x1
jax: 0.10.0
libtpu: 0.0.40
codegen_flags: <defaults>
</compile_context>

<pallas_src>
import functools
from types import SimpleNamespace

import jax
import jax.numpy as jnp
from jax import lax
from jax.experimental import pallas as pl
from jax.experimental.pallas import tpu as pltpu

EPS = 1e-5  # nn.InstanceNorm1d default eps


# ----------------------------------------------------------------------------
# Kernel helpers
# ----------------------------------------------------------------------------
def _add_and_instance_norm(a, b, gamma, beta, bt, n):
    """Add_And_Normalization_Module: add, then InstanceNorm1d(E, affine=True)
    per instance over the node axis (biased variance), all in f32."""
    added = (a + b).reshape(bt, n, -1)                 # (Bt, N, E)
    mean = jnp.mean(added, axis=1, keepdims=True)      # (Bt, 1, E)
    cent = added - mean
    var = jnp.mean(cent * cent, axis=1, keepdims=True)  # biased variance
    normed = cent * lax.rsqrt(var + EPS)
    return (normed * gamma + beta).reshape(bt * n, -1)  # (M, E)


# ----------------------------------------------------------------------------
# Kernel
# ----------------------------------------------------------------------------
def tsp_encoder_kernel(layer_num, head_num, qkv_dim,
                       data_ref, ew_ref, eb_ref,
                       wqkv_ref, wc_ref, bc_ref,
                       g1_ref, be1_ref,
                       w1_ref, b1_ref, w2_ref, b2_ref,
                       g2_ref, be2_ref,
                       out_ref):
    H, D = head_num, qkv_dim
    HD = H * D
    bf16 = jnp.bfloat16

    coords = data_ref[...]                              # (Bt, N, 2) f32
    Bt, N, _ = coords.shape
    M = Bt * N
    E = eb_ref.shape[-1]
    scale = 1.0 / (D ** 0.5)

    # ---- input embedding on the VPU (avoid a K=2 MXU matmul)
    cf = coords.reshape(M, 2)
    x = (cf[:, 0:1] * ew_ref[0:1, :]
         + cf[:, 1:2] * ew_ref[1:2, :]
         + eb_ref[...])                                 # (M, E) f32

    # ---- encoder layers, statically unrolled (all layer weights VMEM resident)
    for l in range(layer_num):
        # merged lane-dense QKV projection: (M, 128) @ (128, 3*H*D)
        qkv = jnp.dot(x.astype(bf16), wqkv_ref[l],
                      preferred_element_type=jnp.float32)        # (M, 3HD) f32
        qkvb = qkv.astype(bf16)

        # per-head attention; heads peeled with static 32-lane slices,
        # score/softmax einsums batched per TSP instance only.
        o_heads = []
        for h in range(H):
            qh = qkvb[:, h * D:(h + 1) * D].reshape(Bt, N, D)
            kh = qkvb[:, HD + h * D:HD + (h + 1) * D].reshape(Bt, N, D)
            vh = qkvb[:, 2 * HD + h * D:2 * HD + (h + 1) * D].reshape(Bt, N, D)

            s = jnp.einsum('bnd,bmd->bnm', qh, kh,
                           preferred_element_type=jnp.float32) * scale
            s = s - jnp.max(s, axis=-1, keepdims=True)
            p = jnp.exp(s)
            p = p * pl.reciprocal(jnp.sum(p, axis=-1, keepdims=True),
                                  approx=True)
            oh = jnp.einsum('bnm,bmd->bnd', p.astype(bf16), vh,
                            preferred_element_type=jnp.float32)  # (Bt, N, D)
            o_heads.append(oh.reshape(M, D).astype(bf16))

        oc = jnp.concatenate(o_heads, axis=-1)                   # (M, HD) bf16

        # multi_head_combine: single K=128 lane-dense matmul
        mh = jnp.dot(oc, wc_ref[l],
                     preferred_element_type=jnp.float32) + bc_ref[l]  # (M, E)

        out1 = _add_and_instance_norm(x, mh, g1_ref[l], be1_ref[l], Bt, N)

        # feed forward: W2(relu(W1 x)), bf16 matmul operands, f32 elementwise
        h1 = jnp.dot(out1.astype(bf16), w1_ref[l],
                     preferred_element_type=jnp.float32) + b1_ref[l]
        h1 = jnp.maximum(h1, 0.0)
        ff = jnp.dot(h1.astype(bf16), w2_ref[l],
                     preferred_element_type=jnp.float32) + b2_ref[l]

        x = _add_and_instance_norm(out1, ff, g2_ref[l], be2_ref[l], Bt, N)

    out_ref[...] = x.reshape(Bt, N, E).astype(out_ref.dtype)


# ----------------------------------------------------------------------------
# Wrapper (single pallas_call for the whole encoder)
# ----------------------------------------------------------------------------
def _choose_batch_tile(B, N, target_rows=256, min_grid_steps=1):
    """Pick Bt so M = Bt*N feeds the MXU (>=128 rows saturates v5e, >=256 for
    v6e/v7x) while Bt divides B.  Pass min_grid_steps=2 on v7x so the
    "parallel" grid axis actually shards across both TensorCores."""
    bt = max(1, min(B, max(1, target_rows // max(N, 1))))
    while B % bt:
        bt -= 1
    while min_grid_steps > 1 and bt > 1 and (B // bt) < min_grid_steps:
        bt -= 1
        while B % bt:
            bt -= 1
    return bt


def tsp_encoder_forward(data, params, model_args, *, out_dtype=jnp.float32,
                        target_rows=256, min_grid_steps=1):
    B, N, _ = data.shape
    E = model_args.embedding_dim
    H = model_args.head_num
    D = model_args.qkv_dim
    F = model_args.ff_hidden_dim
    L = model_args.encoder_layer_num

    Bt = _choose_batch_tile(B, N, target_rows, min_grid_steps)
    grid = (B // Bt,)

    def full(arr):
        # Constant-index weight blocks (index_map never changes).
        # TODO(synk): pipeline_mode=pl.Buffered(1) would drop the unused second
        # pipeline buffer per weight; negligible at this L, revisit if L grows.
        return pl.BlockSpec(arr.shape, lambda b: (0,) * arr.ndim)

    args = (
        data,
        params["embed_w"], params["embed_b"],
        params["wqkv"], params["wc"], params["bc"],
        params["g1"], params["be1"],
        params["w1"], params["b1"], params["w2"], params["b2"],
        params["g2"], params["be2"],
    )
    in_specs = [pl.BlockSpec((Bt, N, 2), lambda b: (b, 0, 0))] + \
               [full(a) for a in args[1:]]

    # advisory cost estimate so XLA can overlap this small, latency-bound kernel
    flops = int(B * N * (4 * E + L * (2 * E * 3 * H * D + 4 * N * H * D
                                      + 2 * H * D * E + 4 * E * F)))
    transcendentals = int(L * B * H * N * N)
    bytes_accessed = int(data.size * data.dtype.itemsize
                         + B * N * E * jnp.dtype(out_dtype).itemsize
                         + sum(int(p.size) * p.dtype.itemsize
                               for p in params.values()))

    kern = functools.partial(tsp_encoder_kernel, L, H, D)

    # TODO(synk): if L / Bt / N grow enough to pressure v7x's 32 MiB scoped
    # VMEM, move the layer loop onto a trailing "arbitrary" grid axis with
    # per-layer weight BlockSpecs so layer weights stream instead of residing.
    return pl.pallas_call(
        kern,
        out_shape=jax.ShapeDtypeStruct((B, N, E), out_dtype),
        grid=grid,
        in_specs=in_specs,
        out_specs=pl.BlockSpec((Bt, N, E), lambda b: (b, 0, 0)),
        compiler_params=pltpu.CompilerParams(dimension_semantics=("parallel",)),
        cost_estimate=pl.CostEstimate(flops=flops,
                                      transcendentals=transcendentals,
                                      bytes_accessed=bytes_accessed),
    )(*args)


# ----------------------------------------------------------------------------
# Deterministic parameter construction (weights pre-transposed / merged)
# ----------------------------------------------------------------------------
def init_params(key, model_args):
    E = model_args.embedding_dim
    H = model_args.head_num
    D = model_args.qkv_dim
    F = model_args.ff_hidden_dim
    L = model_args.encoder_layer_num
    HD = H * D

    def nrm(k, shape, scale=0.05):
        return (scale * jax.random.normal(k, shape)).astype(jnp.float32)

    keys = jax.random.split(key, 2 + 8 * L)
    params = {
        "embed_w": nrm(keys[0], (2, E)),   # pre-transposed: y = x @ W + b
        "embed_b": nrm(keys[1], (1, E)),
    }

    wqkv_l, wc_l, bc_l = [], [], []
    g1_l, be1_l, g2_l, be2_l = [], [], [], []
    w1_l, b1_l, w2_l, b2_l = [], [], [], []
    ki = 2
    for _ in range(L):
        wq = nrm(keys[ki + 0], (E, HD))
        wk = nrm(keys[ki + 1], (E, HD))
        wv = nrm(keys[ki + 2], (E, HD))
        # merged lane-dense QKV weight: (E, 3*H*D), columns = [q heads|k heads|v heads]
        wqkv_l.append(jnp.concatenate([wq, wk, wv], axis=1))

        wc_l.append(nrm(keys[ki + 3], (HD, E)))           # (H*D, E)
        bc_l.append(nrm(keys[ki + 4], (1, E)))

        # InstanceNorm1d(affine=True) PyTorch default init: weight=1, bias=0
        g1_l.append(jnp.ones((1, E), jnp.float32))
        be1_l.append(jnp.zeros((1, E), jnp.float32))
        g2_l.append(jnp.ones((1, E), jnp.float32))
        be2_l.append(jnp.zeros((1, E), jnp.float32))

        w1_l.append(nrm(keys[ki + 5], (E, F)))
        b1_l.append(nrm(keys[ki + 6], (1, F)))
        w2_l.append(nrm(keys[ki + 7], (F, E)))
        b2_l.append(jnp.zeros((1, E), jnp.float32))
        ki += 8

    stack = lambda xs: jnp.stack(xs, axis=0)
    params.update({
        "wqkv": stack(wqkv_l).astype(jnp.bfloat16),   # (L, E, 3*H*D)
        "wc":   stack(wc_l).astype(jnp.bfloat16),     # (L, H*D, E)
        "bc":   stack(bc_l),                          # (L, 1, E) f32
        "g1":   stack(g1_l), "be1": stack(be1_l),
        "w1":   stack(w1_l).astype(jnp.bfloat16),     # (L, E, F)
        "b1":   stack(b1_l),                          # (L, 1, F) f32
        "w2":   stack(w2_l).astype(jnp.bfloat16),     # (L, F, E)
        "b2":   stack(b2_l),
        "g2":   stack(g2_l), "be2": stack(be2_l),
    })
    return params


# ----------------------------------------------------------------------------
if __name__ == "__main__":
    model_args = SimpleNamespace(
        embedding_dim=128,
        ff_hidden_dim=256,
        head_num=4,
        qkv_dim=32,
        encoder_layer_num=2,
    )
    B, N = 2, 16  # 2 TSP instances, 16 nodes, each node = (x, y)

    key = jax.random.PRNGKey(0)
    k_data, k_params = jax.random.split(key)
    data = jax.random.uniform(k_data, (B, N, 2), dtype=jnp.float32)

    params = init_params(k_params, model_args)

    out = tsp_encoder_forward(data, params, model_args)
    out = jax.block_until_ready(out)
    assert out.shape == (B, N, model_args.embedding_dim)
    assert bool(jnp.all(jnp.isfinite(out)))
    print("KERNEL_OK")
</pallas_src>

<mosaic_0001>
module attributes {stable_mosaic.version = 11 : i64} {
  func.func @tsp_encoder_kernel(%arg0: i32, %arg1: memref<2x16x2xf32, #tpu.memory_space<vmem>>, %arg2: memref<2x128xf32, #tpu.memory_space<vmem>>, %arg3: memref<1x128xf32, #tpu.memory_space<vmem>>, %arg4: memref<2x128x384xbf16, #tpu.memory_space<vmem>>, %arg5: memref<2x128x128xbf16, #tpu.memory_space<vmem>>, %arg6: memref<2x1x128xf32, #tpu.memory_space<vmem>>, %arg7: memref<2x1x128xf32, #tpu.memory_space<vmem>>, %arg8: memref<2x1x128xf32, #tpu.memory_space<vmem>>, %arg9: memref<2x128x256xbf16, #tpu.memory_space<vmem>>, %arg10: memref<2x1x256xf32, #tpu.memory_space<vmem>>, %arg11: memref<2x256x128xbf16, #tpu.memory_space<vmem>>, %arg12: memref<2x1x128xf32, #tpu.memory_space<vmem>>, %arg13: memref<2x1x128xf32, #tpu.memory_space<vmem>>, %arg14: memref<2x1x128xf32, #tpu.memory_space<vmem>>, %arg15: memref<2x16x128xf32, #tpu.memory_space<vmem>>) attributes {dimension_semantics = [#tpu.dimension_semantics<parallel>], iteration_bounds = array<i64: 1>, scalar_prefetch = 0 : i64, scratch_operands = 0 : i64, tpu.core_type = #tpu.core_type<tc>, window_params = [{transform_indices = @transform_0, window_bounds = array<i64: 2, 16, 2>}, {pipeline_mode = #tpu.pipeline_mode<synchronous>, transform_indices = @transform_1, window_bounds = array<i64: 2, 128>}, {pipeline_mode = #tpu.pipeline_mode<synchronous>, transform_indices = @transform_2, window_bounds = array<i64: 1, 128>}, {pipeline_mode = #tpu.pipeline_mode<synchronous>, transform_indices = @transform_3, window_bounds = array<i64: 2, 128, 384>}, {pipeline_mode = #tpu.pipeline_mode<synchronous>, transform_indices = @transform_4, window_bounds = array<i64: 2, 128, 128>}, {pipeline_mode = #tpu.pipeline_mode<synchronous>, transform_indices = @transform_5, window_bounds = array<i64: 2, 1, 128>}, {pipeline_mode = #tpu.pipeline_mode<synchronous>, transform_indices = @transform_6, window_bounds = array<i64: 2, 1, 128>}, {pipeline_mode = #tpu.pipeline_mode<synchronous>, transform_indices = @transform_7, window_bounds = array<i64: 2, 1, 128>}, {pipeline_mode = #tpu.pipeline_mode<synchronous>, transform_indices = @transform_8, window_bounds = array<i64: 2, 128, 256>}, {pipeline_mode = #tpu.pipeline_mode<synchronous>, transform_indices = @transform_9, window_bounds = array<i64: 2, 1, 256>}, {pipeline_mode = #tpu.pipeline_mode<synchronous>, transform_indices = @transform_10, window_bounds = array<i64: 2, 256, 128>}, {pipeline_mode = #tpu.pipeline_mode<synchronous>, transform_indices = @transform_11, window_bounds = array<i64: 2, 1, 128>}, {pipeline_mode = #tpu.pipeline_mode<synchronous>, transform_indices = @transform_12, window_bounds = array<i64: 2, 1, 128>}, {pipeline_mode = #tpu.pipeline_mode<synchronous>, transform_indices = @transform_13, window_bounds = array<i64: 2, 1, 128>}, {transform_indices = @transform_14, window_bounds = array<i64: 2, 16, 128>}]} {
    %c0 = arith.constant 0 : index
    %c0_0 = arith.constant 0 : index
    %c0_1 = arith.constant 0 : index
    %0 = vector.load %arg1[%c0, %c0_0, %c0_1] : memref<2x16x2xf32, #tpu.memory_space<vmem>>, vector<2x16x2xf32>
    %1 = vector.shape_cast %0 : vector<2x16x2xf32> to vector<32x2xf32>
    %2 = vector.extract_strided_slice %1 {offsets = [0, 0], sizes = [32, 1], strides = [1, 1]} : vector<32x2xf32> to vector<32x1xf32>
    %c0_2 = arith.constant 0 : index
    %c0_3 = arith.constant 0 : index
    %3 = vector.load %arg2[%c0_2, %c0_3] : memref<2x128xf32, #tpu.memory_space<vmem>>, vector<1x128xf32>
    %4 = vector.broadcast %2 : vector<32x1xf32> to vector<32x128xf32>
    %5 = vector.broadcast %3 : vector<1x128xf32> to vector<32x128xf32>
    %6 = arith.mulf %4, %5 : vector<32x128xf32>
    %7 = vector.extract_strided_slice %1 {offsets = [0, 1], sizes = [32, 1], strides = [1, 1]} : vector<32x2xf32> to vector<32x1xf32>
    %c1 = arith.constant 1 : index
    %c0_4 = arith.constant 0 : index
    %8 = vector.load %arg2[%c1, %c0_4] : memref<2x128xf32, #tpu.memory_space<vmem>>, vector<1x128xf32>
    %9 = vector.broadcast %7 : vector<32x1xf32> to vector<32x128xf32>
    %10 = vector.broadcast %8 : vector<1x128xf32> to vector<32x128xf32>
    %11 = arith.mulf %9, %10 : vector<32x128xf32>
    %12 = arith.addf %6, %11 : vector<32x128xf32>
    %c0_5 = arith.constant 0 : index
    %c0_6 = arith.constant 0 : index
    %13 = vector.load %arg3[%c0_5, %c0_6] : memref<1x128xf32, #tpu.memory_space<vmem>>, vector<1x128xf32>
    %14 = vector.broadcast %13 : vector<1x128xf32> to vector<32x128xf32>
    %15 = arith.addf %12, %14 : vector<32x128xf32>
    %16 = arith.truncf %15 : vector<32x128xf32> to vector<32x128xbf16>
    %c0_7 = arith.constant 0 : index
    %c0_8 = arith.constant 0 : index
    %c0_9 = arith.constant 0 : index
    %17 = vector.load %arg4[%c0_7, %c0_8, %c0_9] : memref<2x128x384xbf16, #tpu.memory_space<vmem>>, vector<1x128x384xbf16>
    %18 = vector.shape_cast %17 : vector<1x128x384xbf16> to vector<128x384xbf16>
    %cst = arith.constant dense<0.000000e+00> : vector<32x384xf32>
    %19 = tpu.matmul %16, %18, %cst {dimension_numbers = #tpu.dot_dimension_numbers<[1], [0], [0], [1], [0, 0, 1, 1], [], []>} : vector<32x128xbf16>, vector<128x384xbf16>, vector<32x384xf32> -> vector<32x384xf32>
    %20 = arith.truncf %19 : vector<32x384xf32> to vector<32x384xbf16>
    %21 = vector.extract_strided_slice %20 {offsets = [0, 0], sizes = [32, 32], strides = [1, 1]} : vector<32x384xbf16> to vector<32x32xbf16>
    %22 = vector.shape_cast %21 : vector<32x32xbf16> to vector<2x16x32xbf16>
    %23 = vector.extract_strided_slice %20 {offsets = [0, 128], sizes = [32, 32], strides = [1, 1]} : vector<32x384xbf16> to vector<32x32xbf16>
    %24 = vector.shape_cast %23 : vector<32x32xbf16> to vector<2x16x32xbf16>
    %25 = vector.extract_strided_slice %20 {offsets = [0, 256], sizes = [32, 32], strides = [1, 1]} : vector<32x384xbf16> to vector<32x32xbf16>
    %26 = vector.shape_cast %25 : vector<32x32xbf16> to vector<2x16x32xbf16>
    "tpu.trace_start"() <{level = 10 : i32, message = "bnd,bmd->bnm"}> : () -> ()
    %cst_10 = arith.constant dense<0.000000e+00> : vector<2x16x16xf32>
    %27 = tpu.matmul %22, %24, %cst_10 {dimension_numbers = #tpu.dot_dimension_numbers<[2], [2], [1], [1], [0, 0, 0, 1, 1, 1], [0], [0]>} : vector<2x16x32xbf16>, vector<2x16x32xbf16>, vector<2x16x16xf32> -> vector<2x16x16xf32>
    "tpu.trace_stop"() : () -> ()
    %cst_11 = arith.constant 0.176776692 : f32
    %28 = vector.broadcast %cst_11 : f32 to vector<2x16x16xf32>
    %29 = arith.mulf %27, %28 : vector<2x16x16xf32>
    %cst_12 = arith.constant dense<0xFF800000> : vector<2x16xf32>
    %30 = vector.multi_reduction <maximumf>, %29, %cst_12 [2] : vector<2x16x16xf32> to vector<2x16xf32>
    %31 = vector.shape_cast %30 : vector<2x16xf32> to vector<2x16x1xf32>
    %32 = vector.broadcast %31 : vector<2x16x1xf32> to vector<2x16x16xf32>
    %33 = arith.subf %29, %32 : vector<2x16x16xf32>
    %34 = math.exp %33 : vector<2x16x16xf32>
    %cst_13 = arith.constant dense<0.000000e+00> : vector<2x16xf32>
    %35 = vector.multi_reduction <add>, %34, %cst_13 [2] : vector<2x16x16xf32> to vector<2x16xf32>
    %36 = vector.shape_cast %35 : vector<2x16xf32> to vector<2x16x1xf32>
    %37 = tpu.reciprocal %36 {approx = true} : vector<2x16x1xf32> -> vector<2x16x1xf32>
    %38 = vector.broadcast %37 : vector<2x16x1xf32> to vector<2x16x16xf32>
    %39 = arith.mulf %34, %38 : vector<2x16x16xf32>
    %40 = arith.truncf %39 : vector<2x16x16xf32> to vector<2x16x16xbf16>
    "tpu.trace_start"() <{level = 10 : i32, message = "bnm,bmd->bnd"}> : () -> ()
    %cst_14 = arith.constant dense<0.000000e+00> : vector<2x16x32xf32>
    %41 = tpu.matmul %40, %26, %cst_14 {dimension_numbers = #tpu.dot_dimension_numbers<[2], [1], [1], [2], [0, 0, 0, 1, 1, 2], [0], [0]>} : vector<2x16x16xbf16>, vector<2x16x32xbf16>, vector<2x16x32xf32> -> vector<2x16x32xf32>
    "tpu.trace_stop"() : () -> ()
    %42 = vector.shape_cast %41 : vector<2x16x32xf32> to vector<32x32xf32>
    %43 = arith.truncf %42 : vector<32x32xf32> to vector<32x32xbf16>
    %44 = vector.extract_strided_slice %20 {offsets = [0, 32], sizes = [32, 32], strides = [1, 1]} : vector<32x384xbf16> to vector<32x32xbf16>
    %45 = vector.shape_cast %44 : vector<32x32xbf16> to vector<2x16x32xbf16>
    %46 = vector.extract_strided_slice %20 {offsets = [0, 160], sizes = [32, 32], strides = [1, 1]} : vector<32x384xbf16> to vector<32x32xbf16>
    %47 = vector.shape_cast %46 : vector<32x32xbf16> to vector<2x16x32xbf16>
    %48 = vector.extract_strided_slice %20 {offsets = [0, 288], sizes = [32, 32], strides = [1, 1]} : vector<32x384xbf16> to vector<32x32xbf16>
    %49 = vector.shape_cast %48 : vector<32x32xbf16> to vector<2x16x32xbf16>
    "tpu.trace_start"() <{level = 10 : i32, message = "bnd,bmd->bnm"}> : () -> ()
    %cst_15 = arith.constant dense<0.000000e+00> : vector<2x16x16xf32>
    %50 = tpu.matmul %45, %47, %cst_15 {dimension_numbers = #tpu.dot_dimension_numbers<[2], [2], [1], [1], [0, 0, 0, 1, 1, 1], [0], [0]>} : vector<2x16x32xbf16>, vector<2x16x32xbf16>, vector<2x16x16xf32> -> vector<2x16x16xf32>
    "tpu.trace_stop"() : () -> ()
    %cst_16 = arith.constant 0.176776692 : f32
    %51 = vector.broadcast %cst_16 : f32 to vector<2x16x16xf32>
    %52 = arith.mulf %50, %51 : vector<2x16x16xf32>
    %cst_17 = arith.constant dense<0xFF800000> : vector<2x16xf32>
    %53 = vector.multi_reduction <maximumf>, %52, %cst_17 [2] : vector<2x16x16xf32> to vector<2x16xf32>
    %54 = vector.shape_cast %53 : vector<2x16xf32> to vector<2x16x1xf32>
    %55 = vector.broadcast %54 : vector<2x16x1xf32> to vector<2x16x16xf32>
    %56 = arith.subf %52, %55 : vector<2x16x16xf32>
    %57 = math.exp %56 : vector<2x16x16xf32>
    %cst_18 = arith.constant dense<0.000000e+00> : vector<2x16xf32>
    %58 = vector.multi_reduction <add>, %57, %cst_18 [2] : vector<2x16x16xf32> to vector<2x16xf32>
    %59 = vector.shape_cast %58 : vector<2x16xf32> to vector<2x16x1xf32>
    %60 = tpu.reciprocal %59 {approx = true} : vector<2x16x1xf32> -> vector<2x16x1xf32>
    %61 = vector.broadcast %60 : vector<2x16x1xf32> to vector<2x16x16xf32>
    %62 = arith.mulf %57, %61 : vector<2x16x16xf32>
    %63 = arith.truncf %62 : vector<2x16x16xf32> to vector<2x16x16xbf16>
    "tpu.trace_start"() <{level = 10 : i32, message = "bnm,bmd->bnd"}> : () -> ()
    %cst_19 = arith.constant dense<0.000000e+00> : vector<2x16x32xf32>
    %64 = tpu.matmul %63, %49, %cst_19 {dimension_numbers = #tpu.dot_dimension_numbers<[2], [1], [1], [2], [0, 0, 0, 1, 1, 2], [0], [0]>} : vector<2x16x16xbf16>, vector<2x16x32xbf16>, vector<2x16x32xf32> -> vector<2x16x32xf32>
    "tpu.trace_stop"() : () -> ()
    %65 = vector.shape_cast %64 : vector<2x16x32xf32> to vector<32x32xf32>
    %66 = arith.truncf %65 : vector<32x32xf32> to vector<32x32xbf16>
    %67 = vector.extract_strided_slice %20 {offsets = [0, 64], sizes = [32, 32], strides = [1, 1]} : vector<32x384xbf16> to vector<32x32xbf16>
    %68 = vector.shape_cast %67 : vector<32x32xbf16> to vector<2x16x32xbf16>
    %69 = vector.extract_strided_slice %20 {offsets = [0, 192], sizes = [32, 32], strides = [1, 1]} : vector<32x384xbf16> to vector<32x32xbf16>
    %70 = vector.shape_cast %69 : vector<32x32xbf16> to vector<2x16x32xbf16>
    %71 = vector.extract_strided_slice %20 {offsets = [0, 320], sizes = [32, 32], strides = [1, 1]} : vector<32x384xbf16> to vector<32x32xbf16>
    %72 = vector.shape_cast %71 : vector<32x32xbf16> to vector<2x16x32xbf16>
    "tpu.trace_start"() <{level = 10 : i32, message = "bnd,bmd->bnm"}> : () -> ()
    %cst_20 = arith.constant dense<0.000000e+00> : vector<2x16x16xf32>
    %73 = tpu.matmul %68, %70, %cst_20 {dimension_numbers = #tpu.dot_dimension_numbers<[2], [2], [1], [1], [0, 0, 0, 1, 1, 1], [0], [0]>} : vector<2x16x32xbf16>, vector<2x16x32xbf16>, vector<2x16x16xf32> -> vector<2x16x16xf32>
    "tpu.trace_stop"() : () -> ()
    %cst_21 = arith.constant 0.176776692 : f32
    %74 = vector.broadcast %cst_21 : f32 to vector<2x16x16xf32>
    %75 = arith.mulf %73, %74 : vector<2x16x16xf32>
    %cst_22 = arith.constant dense<0xFF800000> : vector<2x16xf32>
    %76 = vector.multi_reduction <maximumf>, %75, %cst_22 [2] : vector<2x16x16xf32> to vector<2x16xf32>
    %77 = vector.shape_cast %76 : vector<2x16xf32> to vector<2x16x1xf32>
    %78 = vector.broadcast %77 : vector<2x16x1xf32> to vector<2x16x16xf32>
    %79 = arith.subf %75, %78 : vector<2x16x16xf32>
    %80 = math.exp %79 : vector<2x16x16xf32>
    %cst_23 = arith.constant dense<0.000000e+00> : vector<2x16xf32>
    %81 = vector.multi_reduction <add>, %80, %cst_23 [2] : vector<2x16x16xf32> to vector<2x16xf32>
    %82 = vector.shape_cast %81 : vector<2x16xf32> to vector<2x16x1xf32>
    %83 = tpu.reciprocal %82 {approx = true} : vector<2x16x1xf32> -> vector<2x16x1xf32>
    %84 = vector.broadcast %83 : vector<2x16x1xf32> to vector<2x16x16xf32>
    %85 = arith.mulf %80, %84 : vector<2x16x16xf32>
    %86 = arith.truncf %85 : vector<2x16x16xf32> to vector<2x16x16xbf16>
    "tpu.trace_start"() <{level = 10 : i32, message = "bnm,bmd->bnd"}> : () -> ()
    %cst_24 = arith.constant dense<0.000000e+00> : vector<2x16x32xf32>
    %87 = tpu.matmul %86, %72, %cst_24 {dimension_numbers = #tpu.dot_dimension_numbers<[2], [1], [1], [2], [0, 0, 0, 1, 1, 2], [0], [0]>} : vector<2x16x16xbf16>, vector<2x16x32xbf16>, vector<2x16x32xf32> -> vector<2x16x32xf32>
    "tpu.trace_stop"() : () -> ()
    %88 = vector.shape_cast %87 : vector<2x16x32xf32> to vector<32x32xf32>
    %89 = arith.truncf %88 : vector<32x32xf32> to vector<32x32xbf16>
    %90 = vector.extract_strided_slice %20 {offsets = [0, 96], sizes = [32, 32], strides = [1, 1]} : vector<32x384xbf16> to vector<32x32xbf16>
    %91 = vector.shape_cast %90 : vector<32x32xbf16> to vector<2x16x32xbf16>
    %92 = vector.extract_strided_slice %20 {offsets = [0, 224], sizes = [32, 32], strides = [1, 1]} : vector<32x384xbf16> to vector<32x32xbf16>
    %93 = vector.shape_cast %92 : vector<32x32xbf16> to vector<2x16x32xbf16>
    %94 = vector.extract_strided_slice %20 {offsets = [0, 352], sizes = [32, 32], strides = [1, 1]} : vector<32x384xbf16> to vector<32x32xbf16>
    %95 = vector.shape_cast %94 : vector<32x32xbf16> to vector<2x16x32xbf16>
    "tpu.trace_start"() <{level = 10 : i32, message = "bnd,bmd->bnm"}> : () -> ()
    %cst_25 = arith.constant dense<0.000000e+00> : vector<2x16x16xf32>
    %96 = tpu.matmul %91, %93, %cst_25 {dimension_numbers = #tpu.dot_dimension_numbers<[2], [2], [1], [1], [0, 0, 0, 1, 1, 1], [0], [0]>} : vector<2x16x32xbf16>, vector<2x16x32xbf16>, vector<2x16x16xf32> -> vector<2x16x16xf32>
    "tpu.trace_stop"() : () -> ()
    %cst_26 = arith.constant 0.176776692 : f32
    %97 = vector.broadcast %cst_26 : f32 to vector<2x16x16xf32>
    %98 = arith.mulf %96, %97 : vector<2x16x16xf32>
    %cst_27 = arith.constant dense<0xFF800000> : vector<2x16xf32>
    %99 = vector.multi_reduction <maximumf>, %98, %cst_27 [2] : vector<2x16x16xf32> to vector<2x16xf32>
    %100 = vector.shape_cast %99 : vector<2x16xf32> to vector<2x16x1xf32>
    %101 = vector.broadcast %100 : vector<2x16x1xf32> to vector<2x16x16xf32>
    %102 = arith.subf %98, %101 : vector<2x16x16xf32>
    %103 = math.exp %102 : vector<2x16x16xf32>
    %cst_28 = arith.constant dense<0.000000e+00> : vector<2x16xf32>
    %104 = vector.multi_reduction <add>, %103, %cst_28 [2] : vector<2x16x16xf32> to vector<2x16xf32>
    %105 = vector.shape_cast %104 : vector<2x16xf32> to vector<2x16x1xf32>
    %106 = tpu.reciprocal %105 {approx = true} : vector<2x16x1xf32> -> vector<2x16x1xf32>
    %107 = vector.broadcast %106 : vector<2x16x1xf32> to vector<2x16x16xf32>
    %108 = arith.mulf %103, %107 : vector<2x16x16xf32>
    %109 = arith.truncf %108 : vector<2x16x16xf32> to vector<2x16x16xbf16>
    "tpu.trace_start"() <{level = 10 : i32, message = "bnm,bmd->bnd"}> : () -> ()
    %cst_29 = arith.constant dense<0.000000e+00> : vector<2x16x32xf32>
    %110 = tpu.matmul %109, %95, %cst_29 {dimension_numbers = #tpu.dot_dimension_numbers<[2], [1], [1], [2], [0, 0, 0, 1, 1, 2], [0], [0]>} : vector<2x16x16xbf16>, vector<2x16x32xbf16>, vector<2x16x32xf32> -> vector<2x16x32xf32>
    "tpu.trace_stop"() : () -> ()
    %111 = vector.shape_cast %110 : vector<2x16x32xf32> to vector<32x32xf32>
    %112 = arith.truncf %111 : vector<32x32xf32> to vector<32x32xbf16>
    %113 = tpu.concatenate %43, %66, %89, %112 in 1 : vector<32x32xbf16>, vector<32x32xbf16>, vector<32x32xbf16>, vector<32x32xbf16> -> vector<32x128xbf16>
    %c0_30 = arith.constant 0 : index
    %c0_31 = arith.constant 0 : index
    %c0_32 = arith.constant 0 : index
    %114 = vector.load %arg5[%c0_30, %c0_31, %c0_32] : memref<2x128x128xbf16, #tpu.memory_space<vmem>>, vector<1x128x128xbf16>
    %115 = vector.shape_cast %114 : vector<1x128x128xbf16> to vector<128x128xbf16>
    %cst_33 = arith.constant dense<0.000000e+00> : vector<32x128xf32>
    %116 = tpu.matmul %113, %115, %cst_33 {dimension_numbers = #tpu.dot_dimension_numbers<[1], [0], [0], [1], [0, 0, 1, 1], [], []>} : vector<32x128xbf16>, vector<128x128xbf16>, vector<32x128xf32> -> vector<32x128xf32>
    %c0_34 = arith.constant 0 : index
    %c0_35 = arith.constant 0 : index
    %c0_36 = arith.constant 0 : index
    %117 = vector.load %arg6[%c0_34, %c0_35, %c0_36] : memref<2x1x128xf32, #tpu.memory_space<vmem>>, vector<1x1x128xf32>
    %118 = vector.shape_cast %117 : vector<1x1x128xf32> to vector<1x128xf32>
    %119 = vector.broadcast %118 : vector<1x128xf32> to vector<32x128xf32>
    %120 = arith.addf %116, %119 : vector<32x128xf32>
    %c0_37 = arith.constant 0 : index
    %c0_38 = arith.constant 0 : index
    %c0_39 = arith.constant 0 : index
    %121 = vector.load %arg7[%c0_37, %c0_38, %c0_39] : memref<2x1x128xf32, #tpu.memory_space<vmem>>, vector<1x1x128xf32>
    %122 = vector.shape_cast %121 : vector<1x1x128xf32> to vector<1x128xf32>
    %c0_40 = arith.constant 0 : index
    %c0_41 = arith.constant 0 : index
    %c0_42 = arith.constant 0 : index
    %123 = vector.load %arg8[%c0_40, %c0_41, %c0_42] : memref<2x1x128xf32, #tpu.memory_space<vmem>>, vector<1x1x128xf32>
    %124 = vector.shape_cast %123 : vector<1x1x128xf32> to vector<1x128xf32>
    %125 = arith.addf %15, %120 : vector<32x128xf32>
    %126 = vector.shape_cast %125 : vector<32x128xf32> to vector<2x16x128xf32>
    %cst_43 = arith.constant dense<0.000000e+00> : vector<2x128xf32>
    %127 = vector.multi_reduction <add>, %126, %cst_43 [1] : vector<2x16x128xf32> to vector<2x128xf32>
    %128 = vector.shape_cast %127 : vector<2x128xf32> to vector<2x1x128xf32>
    %cst_44 = arith.constant 1.600000e+01 : f32
    %129 = vector.broadcast %cst_44 : f32 to vector<2x1x128xf32>
    %130 = arith.divf %128, %129 : vector<2x1x128xf32>
    %131 = vector.broadcast %130 : vector<2x1x128xf32> to vector<2x16x128xf32>
    %132 = arith.subf %126, %131 : vector<2x16x128xf32>
    %133 = arith.mulf %132, %132 : vector<2x16x128xf32>
    %cst_45 = arith.constant dense<0.000000e+00> : vector<2x128xf32>
    %134 = vector.multi_reduction <add>, %133, %cst_45 [1] : vector<2x16x128xf32> to vector<2x128xf32>
    %135 = vector.shape_cast %134 : vector<2x128xf32> to vector<2x1x128xf32>
    %cst_46 = arith.constant 1.600000e+01 : f32
    %136 = vector.broadcast %cst_46 : f32 to vector<2x1x128xf32>
    %137 = arith.divf %135, %136 : vector<2x1x128xf32>
    %cst_47 = arith.constant 9.99999974E-6 : f32
    %138 = vector.broadcast %cst_47 : f32 to vector<2x1x128xf32>
    %139 = arith.addf %137, %138 : vector<2x1x128xf32>
    %140 = math.rsqrt %139 : vector<2x1x128xf32>
    %141 = vector.broadcast %140 : vector<2x1x128xf32> to vector<2x16x128xf32>
    %142 = arith.mulf %132, %141 : vector<2x16x128xf32>
    %143 = vector.shape_cast %122 : vector<1x128xf32> to vector<1x1x128xf32>
    %144 = vector.broadcast %143 : vector<1x1x128xf32> to vector<2x16x128xf32>
    %145 = arith.mulf %142, %144 : vector<2x16x128xf32>
    %146 = vector.shape_cast %124 : vector<1x128xf32> to vector<1x1x128xf32>
    %147 = vector.broadcast %146 : vector<1x1x128xf32> to vector<2x16x128xf32>
    %148 = arith.addf %145, %147 : vector<2x16x128xf32>
    %149 = vector.shape_cast %148 : vector<2x16x128xf32> to vector<32x128xf32>
    %150 = arith.truncf %149 : vector<32x128xf32> to vector<32x128xbf16>
    %c0_48 = arith.constant 0 : index
    %c0_49 = arith.constant 0 : index
    %c0_50 = arith.constant 0 : index
    %151 = vector.load %arg9[%c0_48, %c0_49, %c0_50] : memref<2x128x256xbf16, #tpu.memory_space<vmem>>, vector<1x128x256xbf16>
    %152 = vector.shape_cast %151 : vector<1x128x256xbf16> to vector<128x256xbf16>
    %cst_51 = arith.constant dense<0.000000e+00> : vector<32x256xf32>
    %153 = tpu.matmul %150, %152, %cst_51 {dimension_numbers = #tpu.dot_dimension_numbers<[1], [0], [0], [1], [0, 0, 1, 1], [], []>} : vector<32x128xbf16>, vector<128x256xbf16>, vector<32x256xf32> -> vector<32x256xf32>
    %c0_52 = arith.constant 0 : index
    %c0_53 = arith.constant 0 : index
    %c0_54 = arith.constant 0 : index
    %154 = vector.load %arg10[%c0_52, %c0_53, %c0_54] : memref<2x1x256xf32, #tpu.memory_space<vmem>>, vector<1x1x256xf32>
    %155 = vector.shape_cast %154 : vector<1x1x256xf32> to vector<1x256xf32>
    %156 = vector.broadcast %155 : vector<1x256xf32> to vector<32x256xf32>
    %157 = arith.addf %153, %156 : vector<32x256xf32>
    %cst_55 = arith.constant 0.000000e+00 : f32
    %158 = vector.broadcast %cst_55 : f32 to vector<32x256xf32>
    %159 = arith.maximumf %157, %158 : vector<32x256xf32>
    %160 = arith.truncf %159 : vector<32x256xf32> to vector<32x256xbf16>
    %c0_56 = arith.constant 0 : index
    %c0_57 = arith.constant 0 : index
    %c0_58 = arith.constant 0 : index
    %161 = vector.load %arg11[%c0_56, %c0_57, %c0_58] : memref<2x256x128xbf16, #tpu.memory_space<vmem>>, vector<1x256x128xbf16>
    %162 = vector.shape_cast %161 : vector<1x256x128xbf16> to vector<256x128xbf16>
    %cst_59 = arith.constant dense<0.000000e+00> : vector<32x128xf32>
    %163 = tpu.matmul %160, %162, %cst_59 {dimension_numbers = #tpu.dot_dimension_numbers<[1], [0], [0], [1], [0, 0, 1, 1], [], []>} : vector<32x256xbf16>, vector<256x128xbf16>, vector<32x128xf32> -> vector<32x128xf32>
    %c0_60 = arith.constant 0 : index
    %c0_61 = arith.constant 0 : index
    %c0_62 = arith.constant 0 : index
    %164 = vector.load %arg12[%c0_60, %c0_61, %c0_62] : memref<2x1x128xf32, #tpu.memory_space<vmem>>, vector<1x1x128xf32>
    %165 = vector.shape_cast %164 : vector<1x1x128xf32> to vector<1x128xf32>
    %166 = vector.broadcast %165 : vector<1x128xf32> to vector<32x128xf32>
    %167 = arith.addf %163, %166 : vector<32x128xf32>
    %c0_63 = arith.constant 0 : index
    %c0_64 = arith.constant 0 : index
    %c0_65 = arith.constant 0 : index
    %168 = vector.load %arg13[%c0_63, %c0_64, %c0_65] : memref<2x1x128xf32, #tpu.memory_space<vmem>>, vector<1x1x128xf32>
    %169 = vector.shape_cast %168 : vector<1x1x128xf32> to vector<1x128xf32>
    %c0_66 = arith.constant 0 : index
    %c0_67 = arith.constant 0 : index
    %c0_68 = arith.constant 0 : index
    %170 = vector.load %arg14[%c0_66, %c0_67, %c0_68] : memref<2x1x128xf32, #tpu.memory_space<vmem>>, vector<1x1x128xf32>
    %171 = vector.shape_cast %170 : vector<1x1x128xf32> to vector<1x128xf32>
    %172 = arith.addf %149, %167 : vector<32x128xf32>
    %173 = vector.shape_cast %172 : vector<32x128xf32> to vector<2x16x128xf32>
    %cst_69 = arith.constant dense<0.000000e+00> : vector<2x128xf32>
    %174 = vector.multi_reduction <add>, %173, %cst_69 [1] : vector<2x16x128xf32> to vector<2x128xf32>
    %175 = vector.shape_cast %174 : vector<2x128xf32> to vector<2x1x128xf32>
    %cst_70 = arith.constant 1.600000e+01 : f32
    %176 = vector.broadcast %cst_70 : f32 to vector<2x1x128xf32>
    %177 = arith.divf %175, %176 : vector<2x1x128xf32>
    %178 = vector.broadcast %177 : vector<2x1x128xf32> to vector<2x16x128xf32>
    %179 = arith.subf %173, %178 : vector<2x16x128xf32>
    %180 = arith.mulf %179, %179 : vector<2x16x128xf32>
    %cst_71 = arith.constant dense<0.000000e+00> : vector<2x128xf32>
    %181 = vector.multi_reduction <add>, %180, %cst_71 [1] : vector<2x16x128xf32> to vector<2x128xf32>
    %182 = vector.shape_cast %181 : vector<2x128xf32> to vector<2x1x128xf32>
    %cst_72 = arith.constant 1.600000e+01 : f32
    %183 = vector.broadcast %cst_72 : f32 to vector<2x1x128xf32>
    %184 = arith.divf %182, %183 : vector<2x1x128xf32>
    %cst_73 = arith.constant 9.99999974E-6 : f32
    %185 = vector.broadcast %cst_73 : f32 to vector<2x1x128xf32>
    %186 = arith.addf %184, %185 : vector<2x1x128xf32>
    %187 = math.rsqrt %186 : vector<2x1x128xf32>
    %188 = vector.broadcast %187 : vector<2x1x128xf32> to vector<2x16x128xf32>
    %189 = arith.mulf %179, %188 : vector<2x16x128xf32>
    %190 = vector.shape_cast %169 : vector<1x128xf32> to vector<1x1x128xf32>
    %191 = vector.broadcast %190 : vector<1x1x128xf32> to vector<2x16x128xf32>
    %192 = arith.mulf %189, %191 : vector<2x16x128xf32>
    %193 = vector.shape_cast %171 : vector<1x128xf32> to vector<1x1x128xf32>
    %194 = vector.broadcast %193 : vector<1x1x128xf32> to vector<2x16x128xf32>
    %195 = arith.addf %192, %194 : vector<2x16x128xf32>
    %196 = vector.shape_cast %195 : vector<2x16x128xf32> to vector<32x128xf32>
    %197 = arith.truncf %196 : vector<32x128xf32> to vector<32x128xbf16>
    %c1_74 = arith.constant 1 : index
    %c0_75 = arith.constant 0 : index
    %c0_76 = arith.constant 0 : index
    %198 = vector.load %arg4[%c1_74, %c0_75, %c0_76] : memref<2x128x384xbf16, #tpu.memory_space<vmem>>, vector<1x128x384xbf16>
    %199 = vector.shape_cast %198 : vector<1x128x384xbf16> to vector<128x384xbf16>
    %cst_77 = arith.constant dense<0.000000e+00> : vector<32x384xf32>
    %200 = tpu.matmul %197, %199, %cst_77 {dimension_numbers = #tpu.dot_dimension_numbers<[1], [0], [0], [1], [0, 0, 1, 1], [], []>} : vector<32x128xbf16>, vector<128x384xbf16>, vector<32x384xf32> -> vector<32x384xf32>
    %201 = arith.truncf %200 : vector<32x384xf32> to vector<32x384xbf16>
    %202 = vector.extract_strided_slice %201 {offsets = [0, 0], sizes = [32, 32], strides = [1, 1]} : vector<32x384xbf16> to vector<32x32xbf16>
    %203 = vector.shape_cast %202 : vector<32x32xbf16> to vector<2x16x32xbf16>
    %204 = vector.extract_strided_slice %201 {offsets = [0, 128], sizes = [32, 32], strides = [1, 1]} : vector<32x384xbf16> to vector<32x32xbf16>
    %205 = vector.shape_cast %204 : vector<32x32xbf16> to vector<2x16x32xbf16>
    %206 = vector.extract_strided_slice %201 {offsets = [0, 256], sizes = [32, 32], strides = [1, 1]} : vector<32x384xbf16> to vector<32x32xbf16>
    %207 = vector.shape_cast %206 : vector<32x32xbf16> to vector<2x16x32xbf16>
    "tpu.trace_start"() <{level = 10 : i32, message = "bnd,bmd->bnm"}> : () -> ()
    %cst_78 = arith.constant dense<0.000000e+00> : vector<2x16x16xf32>
    %208 = tpu.matmul %203, %205, %cst_78 {dimension_numbers = #tpu.dot_dimension_numbers<[2], [2], [1], [1], [0, 0, 0, 1, 1, 1], [0], [0]>} : vector<2x16x32xbf16>, vector<2x16x32xbf16>, vector<2x16x16xf32> -> vector<2x16x16xf32>
    "tpu.trace_stop"() : () -> ()
    %cst_79 = arith.constant 0.176776692 : f32
    %209 = vector.broadcast %cst_79 : f32 to vector<2x16x16xf32>
    %210 = arith.mulf %208, %209 : vector<2x16x16xf32>
    %cst_80 = arith.constant dense<0xFF800000> : vector<2x16xf32>
    %211 = vector.multi_reduction <maximumf>, %210, %cst_80 [2] : vector<2x16x16xf32> to vector<2x16xf32>
    %212 = vector.shape_cast %211 : vector<2x16xf32> to vector<2x16x1xf32>
    %213 = vector.broadcast %212 : vector<2x16x1xf32> to vector<2x16x16xf32>
    %214 = arith.subf %210, %213 : vector<2x16x16xf32>
    %215 = math.exp %214 : vector<2x16x16xf32>
    %cst_81 = arith.constant dense<0.000000e+00> : vector<2x16xf32>
    %216 = vector.multi_reduction <add>, %215, %cst_81 [2] : vector<2x16x16xf32> to vector<2x16xf32>
    %217 = vector.shape_cast %216 : vector<2x16xf32> to vector<2x16x1xf32>
    %218 = tpu.reciprocal %217 {approx = true} : vector<2x16x1xf32> -> vector<2x16x1xf32>
    %219 = vector.broadcast %218 : vector<2x16x1xf32> to vector<2x16x16xf32>
    %220 = arith.mulf %215, %219 : vector<2x16x16xf32>
    %221 = arith.truncf %220 : vector<2x16x16xf32> to vector<2x16x16xbf16>
    "tpu.trace_start"() <{level = 10 : i32, message = "bnm,bmd->bnd"}> : () -> ()
    %cst_82 = arith.constant dense<0.000000e+00> : vector<2x16x32xf32>
    %222 = tpu.matmul %221, %207, %cst_82 {dimension_numbers = #tpu.dot_dimension_numbers<[2], [1], [1], [2], [0, 0, 0, 1, 1, 2], [0], [0]>} : vector<2x16x16xbf16>, vector<2x16x32xbf16>, vector<2x16x32xf32> -> vector<2x16x32xf32>
    "tpu.trace_stop"() : () -> ()
    %223 = vector.shape_cast %222 : vector<2x16x32xf32> to vector<32x32xf32>
    %224 = arith.truncf %223 : vector<32x32xf32> to vector<32x32xbf16>
    %225 = vector.extract_strided_slice %201 {offsets = [0, 32], sizes = [32, 32], strides = [1, 1]} : vector<32x384xbf16> to vector<32x32xbf16>
    %226 = vector.shape_cast %225 : vector<32x32xbf16> to vector<2x16x32xbf16>
    %227 = vector.extract_strided_slice %201 {offsets = [0, 160], sizes = [32, 32], strides = [1, 1]} : vector<32x384xbf16> to vector<32x32xbf16>
    %228 = vector.shape_cast %227 : vector<32x32xbf16> to vector<2x16x32xbf16>
    %229 = vector.extract_strided_slice %201 {offsets = [0, 288], sizes = [32, 32], strides = [1, 1]} : vector<32x384xbf16> to vector<32x32xbf16>
    %230 = vector.shape_cast %229 : vector<32x32xbf16> to vector<2x16x32xbf16>
    "tpu.trace_start"() <{level = 10 : i32, message = "bnd,bmd->bnm"}> : () -> ()
    %cst_83 = arith.constant dense<0.000000e+00> : vector<2x16x16xf32>
    %231 = tpu.matmul %226, %228, %cst_83 {dimension_numbers = #tpu.dot_dimension_numbers<[2], [2], [1], [1], [0, 0, 0, 1, 1, 1], [0], [0]>} : vector<2x16x32xbf16>, vector<2x16x32xbf16>, vector<2x16x16xf32> -> vector<2x16x16xf32>
    "tpu.trace_stop"() : () -> ()
    %cst_84 = arith.constant 0.176776692 : f32
    %232 = vector.broadcast %cst_84 : f32 to vector<2x16x16xf32>
    %233 = arith.mulf %231, %232 : vector<2x16x16xf32>
    %cst_85 = arith.constant dense<0xFF800000> : vector<2x16xf32>
    %234 = vector.multi_reduction <maximumf>, %233, %cst_85 [2] : vector<2x16x16xf32> to vector<2x16xf32>
    %235 = vector.shape_cast %234 : vector<2x16xf32> to vector<2x16x1xf32>
    %236 = vector.broadcast %235 : vector<2x16x1xf32> to vector<2x16x16xf32>
    %237 = arith.subf %233, %236 : vector<2x16x16xf32>
    %238 = math.exp %237 : vector<2x16x16xf32>
    %cst_86 = arith.constant dense<0.000000e+00> : vector<2x16xf32>
    %239 = vector.multi_reduction <add>, %238, %cst_86 [2] : vector<2x16x16xf32> to vector<2x16xf32>
    %240 = vector.shape_cast %239 : vector<2x16xf32> to vector<2x16x1xf32>
    %241 = tpu.reciprocal %240 {approx = true} : vector<2x16x1xf32> -> vector<2x16x1xf32>
    %242 = vector.broadcast %241 : vector<2x16x1xf32> to vector<2x16x16xf32>
    %243 = arith.mulf %238, %242 : vector<2x16x16xf32>
    %244 = arith.truncf %243 : vector<2x16x16xf32> to vector<2x16x16xbf16>
    "tpu.trace_start"() <{level = 10 : i32, message = "bnm,bmd->bnd"}> : () -> ()
    %cst_87 = arith.constant dense<0.000000e+00> : vector<2x16x32xf32>
    %245 = tpu.matmul %244, %230, %cst_87 {dimension_numbers = #tpu.dot_dimension_numbers<[2], [1], [1], [2], [0, 0, 0, 1, 1, 2], [0], [0]>} : vector<2x16x16xbf16>, vector<2x16x32xbf16>, vector<2x16x32xf32> -> vector<2x16x32xf32>
    "tpu.trace_stop"() : () -> ()
    %246 = vector.shape_cast %245 : vector<2x16x32xf32> to vector<32x32xf32>
    %247 = arith.truncf %246 : vector<32x32xf32> to vector<32x32xbf16>
    %248 = vector.extract_strided_slice %201 {offsets = [0, 64], sizes = [32, 32], strides = [1, 1]} : vector<32x384xbf16> to vector<32x32xbf16>
    %249 = vector.shape_cast %248 : vector<32x32xbf16> to vector<2x16x32xbf16>
    %250 = vector.extract_strided_slice %201 {offsets = [0, 192], sizes = [32, 32], strides = [1, 1]} : vector<32x384xbf16> to vector<32x32xbf16>
    %251 = vector.shape_cast %250 : vector<32x32xbf16> to vector<2x16x32xbf16>
    %252 = vector.extract_strided_slice %201 {offsets = [0, 320], sizes = [32, 32], strides = [1, 1]} : vector<32x384xbf16> to vector<32x32xbf16>
    %253 = vector.shape_cast %252 : vector<32x32xbf16> to vector<2x16x32xbf16>
    "tpu.trace_start"() <{level = 10 : i32, message = "bnd,bmd->bnm"}> : () -> ()
    %cst_88 = arith.constant dense<0.000000e+00> : vector<2x16x16xf32>
    %254 = tpu.matmul %249, %251, %cst_88 {dimension_numbers = #tpu.dot_dimension_numbers<[2], [2], [1], [1], [0, 0, 0, 1, 1, 1], [0], [0]>} : vector<2x16x32xbf16>, vector<2x16x32xbf16>, vector<2x16x16xf32> -> vector<2x16x16xf32>
    "tpu.trace_stop"() : () -> ()
    %cst_89 = arith.constant 0.176776692 : f32
    %255 = vector.broadcast %cst_89 : f32 to vector<2x16x16xf32>
    %256 = arith.mulf %254, %255 : vector<2x16x16xf32>
    %cst_90 = arith.constant dense<0xFF800000> : vector<2x16xf32>
    %257 = vector.multi_reduction <maximumf>, %256, %cst_90 [2] : vector<2x16x16xf32> to vector<2x16xf32>
    %258 = vector.shape_cast %257 : vector<2x16xf32> to vector<2x16x1xf32>
    %259 = vector.broadcast %258 : vector<2x16x1xf32> to vector<2x16x16xf32>
    %260 = arith.subf %256, %259 : vector<2x16x16xf32>
    %261 = math.exp %260 : vector<2x16x16xf32>
    %cst_91 = arith.constant dense<0.000000e+00> : vector<2x16xf32>
    %262 = vector.multi_reduction <add>, %261, %cst_91 [2] : vector<2x16x16xf32> to vector<2x16xf32>
    %263 = vector.shape_cast %262 : vector<2x16xf32> to vector<2x16x1xf32>
    %264 = tpu.reciprocal %263 {approx = true} : vector<2x16x1xf32> -> vector<2x16x1xf32>
    %265 = vector.broadcast %264 : vector<2x16x1xf32> to vector<2x16x16xf32>
    %266 = arith.mulf %261, %265 : vector<2x16x16xf32>
    %267 = arith.truncf %266 : vector<2x16x16xf32> to vector<2x16x16xbf16>
    "tpu.trace_start"() <{level = 10 : i32, message = "bnm,bmd->bnd"}> : () -> ()
    %cst_92 = arith.constant dense<0.000000e+00> : vector<2x16x32xf32>
    %268 = tpu.matmul %267, %253, %cst_92 {dimension_numbers = #tpu.dot_dimension_numbers<[2], [1], [1], [2], [0, 0, 0, 1, 1, 2], [0], [0]>} : vector<2x16x16xbf16>, vector<2x16x32xbf16>, vector<2x16x32xf32> -> vector<2x16x32xf32>
    "tpu.trace_stop"() : () -> ()
    %269 = vector.shape_cast %268 : vector<2x16x32xf32> to vector<32x32xf32>
    %270 = arith.truncf %269 : vector<32x32xf32> to vector<32x32xbf16>
    %271 = vector.extract_strided_slice %201 {offsets = [0, 96], sizes = [32, 32], strides = [1, 1]} : vector<32x384xbf16> to vector<32x32xbf16>
    %272 = vector.shape_cast %271 : vector<32x32xbf16> to vector<2x16x32xbf16>
    %273 = vector.extract_strided_slice %201 {offsets = [0, 224], sizes = [32, 32], strides = [1, 1]} : vector<32x384xbf16> to vector<32x32xbf16>
    %274 = vector.shape_cast %273 : vector<32x32xbf16> to vector<2x16x32xbf16>
    %275 = vector.extract_strided_slice %201 {offsets = [0, 352], sizes = [32, 32], strides = [1, 1]} : vector<32x384xbf16> to vector<32x32xbf16>
    %276 = vector.shape_cast %275 : vector<32x32xbf16> to vector<2x16x32xbf16>
    "tpu.trace_start"() <{level = 10 : i32, message = "bnd,bmd->bnm"}> : () -> ()
    %cst_93 = arith.constant dense<0.000000e+00> : vector<2x16x16xf32>
    %277 = tpu.matmul %272, %274, %cst_93 {dimension_numbers = #tpu.dot_dimension_numbers<[2], [2], [1], [1], [0, 0, 0, 1, 1, 1], [0], [0]>} : vector<2x16x32xbf16>, vector<2x16x32xbf16>, vector<2x16x16xf32> -> vector<2x16x16xf32>
    "tpu.trace_stop"() : () -> ()
    %cst_94 = arith.constant 0.176776692 : f32
    %278 = vector.broadcast %cst_94 : f32 to vector<2x16x16xf32>
    %279 = arith.mulf %277, %278 : vector<2x16x16xf32>
    %cst_95 = arith.constant dense<0xFF800000> : vector<2x16xf32>
    %280 = vector.multi_reduction <maximumf>, %279, %cst_95 [2] : vector<2x16x16xf32> to vector<2x16xf32>
    %281 = vector.shape_cast %280 : vector<2x16xf32> to vector<2x16x1xf32>
    %282 = vector.broadcast %281 : vector<2x16x1xf32> to vector<2x16x16xf32>
    %283 = arith.subf %279, %282 : vector<2x16x16xf32>
    %284 = math.exp %283 : vector<2x16x16xf32>
    %cst_96 = arith.constant dense<0.000000e+00> : vector<2x16xf32>
    %285 = vector.multi_reduction <add>, %284, %cst_96 [2] : vector<2x16x16xf32> to vector<2x16xf32>
    %286 = vector.shape_cast %285 : vector<2x16xf32> to vector<2x16x1xf32>
    %287 = tpu.reciprocal %286 {approx = true} : vector<2x16x1xf32> -> vector<2x16x1xf32>
    %288 = vector.broadcast %287 : vector<2x16x1xf32> to vector<2x16x16xf32>
    %289 = arith.mulf %284, %288 : vector<2x16x16xf32>
    %290 = arith.truncf %289 : vector<2x16x16xf32> to vector<2x16x16xbf16>
    "tpu.trace_start"() <{level = 10 : i32, message = "bnm,bmd->bnd"}> : () -> ()
    %cst_97 = arith.constant dense<0.000000e+00> : vector<2x16x32xf32>
    %291 = tpu.matmul %290, %276, %cst_97 {dimension_numbers = #tpu.dot_dimension_numbers<[2], [1], [1], [2], [0, 0, 0, 1, 1, 2], [0], [0]>} : vector<2x16x16xbf16>, vector<2x16x32xbf16>, vector<2x16x32xf32> -> vector<2x16x32xf32>
    "tpu.trace_stop"() : () -> ()
    %292 = vector.shape_cast %291 : vector<2x16x32xf32> to vector<32x32xf32>
    %293 = arith.truncf %292 : vector<32x32xf32> to vector<32x32xbf16>
    %294 = tpu.concatenate %224, %247, %270, %293 in 1 : vector<32x32xbf16>, vector<32x32xbf16>, vector<32x32xbf16>, vector<32x32xbf16> -> vector<32x128xbf16>
    %c1_98 = arith.constant 1 : index
    %c0_99 = arith.constant 0 : index
    %c0_100 = arith.constant 0 : index
    %295 = vector.load %arg5[%c1_98, %c0_99, %c0_100] : memref<2x128x128xbf16, #tpu.memory_space<vmem>>, vector<1x128x128xbf16>
    %296 = vector.shape_cast %295 : vector<1x128x128xbf16> to vector<128x128xbf16>
    %cst_101 = arith.constant dense<0.000000e+00> : vector<32x128xf32>
    %297 = tpu.matmul %294, %296, %cst_101 {dimension_numbers = #tpu.dot_dimension_numbers<[1], [0], [0], [1], [0, 0, 1, 1], [], []>} : vector<32x128xbf16>, vector<128x128xbf16>, vector<32x128xf32> -> vector<32x128xf32>
    %c1_102 = arith.constant 1 : index
    %c0_103 = arith.constant 0 : index
    %c0_104 = arith.constant 0 : index
    %298 = vector.load %arg6[%c1_102, %c0_103, %c0_104] : memref<2x1x128xf32, #tpu.memory_space<vmem>>, vector<1x1x128xf32>
    %299 = vector.shape_cast %298 : vector<1x1x128xf32> to vector<1x128xf32>
    %300 = vector.broadcast %299 : vector<1x128xf32> to vector<32x128xf32>
    %301 = arith.addf %297, %300 : vector<32x128xf32>
    %c1_105 = arith.constant 1 : index
    %c0_106 = arith.constant 0 : index
    %c0_107 = arith.constant 0 : index
    %302 = vector.load %arg7[%c1_105, %c0_106, %c0_107] : memref<2x1x128xf32, #tpu.memory_space<vmem>>, vector<1x1x128xf32>
    %303 = vector.shape_cast %302 : vector<1x1x128xf32> to vector<1x128xf32>
    %c1_108 = arith.constant 1 : index
    %c0_109 = arith.constant 0 : index
    %c0_110 = arith.constant 0 : index
    %304 = vector.load %arg8[%c1_108, %c0_109, %c0_110] : memref<2x1x128xf32, #tpu.memory_space<vmem>>, vector<1x1x128xf32>
    %305 = vector.shape_cast %304 : vector<1x1x128xf32> to vector<1x128xf32>
    %306 = arith.addf %196, %301 : vector<32x128xf32>
    %307 = vector.shape_cast %306 : vector<32x128xf32> to vector<2x16x128xf32>
    %cst_111 = arith.constant dense<0.000000e+00> : vector<2x128xf32>
    %308 = vector.multi_reduction <add>, %307, %cst_111 [1] : vector<2x16x128xf32> to vector<2x128xf32>
    %309 = vector.shape_cast %308 : vector<2x128xf32> to vector<2x1x128xf32>
    %cst_112 = arith.constant 1.600000e+01 : f32
    %310 = vector.broadcast %cst_112 : f32 to vector<2x1x128xf32>
    %311 = arith.divf %309, %310 : vector<2x1x128xf32>
    %312 = vector.broadcast %311 : vector<2x1x128xf32> to vector<2x16x128xf32>
    %313 = arith.subf %307, %312 : vector<2x16x128xf32>
    %314 = arith.mulf %313, %313 : vector<2x16x128xf32>
    %cst_113 = arith.constant dense<0.000000e+00> : vector<2x128xf32>
    %315 = vector.multi_reduction <add>, %314, %cst_113 [1] : vector<2x16x128xf32> to vector<2x128xf32>
    %316 = vector.shape_cast %315 : vector<2x128xf32> to vector<2x1x128xf32>
    %cst_114 = arith.constant 1.600000e+01 : f32
    %317 = vector.broadcast %cst_114 : f32 to vector<2x1x128xf32>
    %318 = arith.divf %316, %317 : vector<2x1x128xf32>
    %cst_115 = arith.constant 9.99999974E-6 : f32
    %319 = vector.broadcast %cst_115 : f32 to vector<2x1x128xf32>
    %320 = arith.addf %318, %319 : vector<2x1x128xf32>
    %321 = math.rsqrt %320 : vector<2x1x128xf32>
    %322 = vector.broadcast %321 : vector<2x1x128xf32> to vector<2x16x128xf32>
    %323 = arith.mulf %313, %322 : vector<2x16x128xf32>
    %324 = vector.shape_cast %303 : vector<1x128xf32> to vector<1x1x128xf32>
    %325 = vector.broadcast %324 : vector<1x1x128xf32> to vector<2x16x128xf32>
    %326 = arith.mulf %323, %325 : vector<2x16x128xf32>
    %327 = vector.shape_cast %305 : vector<1x128xf32> to vector<1x1x128xf32>
    %328 = vector.broadcast %327 : vector<1x1x128xf32> to vector<2x16x128xf32>
    %329 = arith.addf %326, %328 : vector<2x16x128xf32>
    %330 = vector.shape_cast %329 : vector<2x16x128xf32> to vector<32x128xf32>
    %331 = arith.truncf %330 : vector<32x128xf32> to vector<32x128xbf16>
    %c1_116 = arith.constant 1 : index
    %c0_117 = arith.constant 0 : index
    %c0_118 = arith.constant 0 : index
    %332 = vector.load %arg9[%c1_116, %c0_117, %c0_118] : memref<2x128x256xbf16, #tpu.memory_space<vmem>>, vector<1x128x256xbf16>
    %333 = vector.shape_cast %332 : vector<1x128x256xbf16> to vector<128x256xbf16>
    %cst_119 = arith.constant dense<0.000000e+00> : vector<32x256xf32>
    %334 = tpu.matmul %331, %333, %cst_119 {dimension_numbers = #tpu.dot_dimension_numbers<[1], [0], [0], [1], [0, 0, 1, 1], [], []>} : vector<32x128xbf16>, vector<128x256xbf16>, vector<32x256xf32> -> vector<32x256xf32>
    %c1_120 = arith.constant 1 : index
    %c0_121 = arith.constant 0 : index
    %c0_122 = arith.constant 0 : index
    %335 = vector.load %arg10[%c1_120, %c0_121, %c0_122] : memref<2x1x256xf32, #tpu.memory_space<vmem>>, vector<1x1x256xf32>
    %336 = vector.shape_cast %335 : vector<1x1x256xf32> to vector<1x256xf32>
    %337 = vector.broadcast %336 : vector<1x256xf32> to vector<32x256xf32>
    %338 = arith.addf %334, %337 : vector<32x256xf32>
    %cst_123 = arith.constant 0.000000e+00 : f32
    %339 = vector.broadcast %cst_123 : f32 to vector<32x256xf32>
    %340 = arith.maximumf %338, %339 : vector<32x256xf32>
    %341 = arith.truncf %340 : vector<32x256xf32> to vector<32x256xbf16>
    %c1_124 = arith.constant 1 : index
    %c0_125 = arith.constant 0 : index
    %c0_126 = arith.constant 0 : index
    %342 = vector.load %arg11[%c1_124, %c0_125, %c0_126] : memref<2x256x128xbf16, #tpu.memory_space<vmem>>, vector<1x256x128xbf16>
    %343 = vector.shape_cast %342 : vector<1x256x128xbf16> to vector<256x128xbf16>
    %cst_127 = arith.constant dense<0.000000e+00> : vector<32x128xf32>
    %344 = tpu.matmul %341, %343, %cst_127 {dimension_numbers = #tpu.dot_dimension_numbers<[1], [0], [0], [1], [0, 0, 1, 1], [], []>} : vector<32x256xbf16>, vector<256x128xbf16>, vector<32x128xf32> -> vector<32x128xf32>
    %c1_128 = arith.constant 1 : index
    %c0_129 = arith.constant 0 : index
    %c0_130 = arith.constant 0 : index
    %345 = vector.load %arg12[%c1_128, %c0_129, %c0_130] : memref<2x1x128xf32, #tpu.memory_space<vmem>>, vector<1x1x128xf32>
    %346 = vector.shape_cast %345 : vector<1x1x128xf32> to vector<1x128xf32>
    %347 = vector.broadcast %346 : vector<1x128xf32> to vector<32x128xf32>
    %348 = arith.addf %344, %347 : vector<32x128xf32>
    %c1_131 = arith.constant 1 : index
    %c0_132 = arith.constant 0 : index
    %c0_133 = arith.constant 0 : index
    %349 = vector.load %arg13[%c1_131, %c0_132, %c0_133] : memref<2x1x128xf32, #tpu.memory_space<vmem>>, vector<1x1x128xf32>
    %350 = vector.shape_cast %349 : vector<1x1x128xf32> to vector<1x128xf32>
    %c1_134 = arith.constant 1 : index
    %c0_135 = arith.constant 0 : index
    %c0_136 = arith.constant 0 : index
    %351 = vector.load %arg14[%c1_134, %c0_135, %c0_136] : memref<2x1x128xf32, #tpu.memory_space<vmem>>, vector<1x1x128xf32>
    %352 = vector.shape_cast %351 : vector<1x1x128xf32> to vector<1x128xf32>
    %353 = arith.addf %330, %348 : vector<32x128xf32>
    %354 = vector.shape_cast %353 : vector<32x128xf32> to vector<2x16x128xf32>
    %cst_137 = arith.constant dense<0.000000e+00> : vector<2x128xf32>
    %355 = vector.multi_reduction <add>, %354, %cst_137 [1] : vector<2x16x128xf32> to vector<2x128xf32>
    %356 = vector.shape_cast %355 : vector<2x128xf32> to vector<2x1x128xf32>
    %cst_138 = arith.constant 1.600000e+01 : f32
    %357 = vector.broadcast %cst_138 : f32 to vector<2x1x128xf32>
    %358 = arith.divf %356, %357 : vector<2x1x128xf32>
    %359 = vector.broadcast %358 : vector<2x1x128xf32> to vector<2x16x128xf32>
    %360 = arith.subf %354, %359 : vector<2x16x128xf32>
    %361 = arith.mulf %360, %360 : vector<2x16x128xf32>
    %cst_139 = arith.constant dense<0.000000e+00> : vector<2x128xf32>
    %362 = vector.multi_reduction <add>, %361, %cst_139 [1] : vector<2x16x128xf32> to vector<2x128xf32>
    %363 = vector.shape_cast %362 : vector<2x128xf32> to vector<2x1x128xf32>
    %cst_140 = arith.constant 1.600000e+01 : f32
    %364 = vector.broadcast %cst_140 : f32 to vector<2x1x128xf32>
    %365 = arith.divf %363, %364 : vector<2x1x128xf32>
    %cst_141 = arith.constant 9.99999974E-6 : f32
    %366 = vector.broadcast %cst_141 : f32 to vector<2x1x128xf32>
    %367 = arith.addf %365, %366 : vector<2x1x128xf32>
    %368 = math.rsqrt %367 : vector<2x1x128xf32>
    %369 = vector.broadcast %368 : vector<2x1x128xf32> to vector<2x16x128xf32>
    %370 = arith.mulf %360, %369 : vector<2x16x128xf32>
    %371 = vector.shape_cast %350 : vector<1x128xf32> to vector<1x1x128xf32>
    %372 = vector.broadcast %371 : vector<1x1x128xf32> to vector<2x16x128xf32>
    %373 = arith.mulf %370, %372 : vector<2x16x128xf32>
    %374 = vector.shape_cast %352 : vector<1x128xf32> to vector<1x1x128xf32>
    %375 = vector.broadcast %374 : vector<1x1x128xf32> to vector<2x16x128xf32>
    %376 = arith.addf %373, %375 : vector<2x16x128xf32>
    %377 = vector.shape_cast %376 : vector<2x16x128xf32> to vector<32x128xf32>
    %378 = vector.shape_cast %377 : vector<32x128xf32> to vector<2x16x128xf32>
    %c0_142 = arith.constant 0 : index
    %c0_143 = arith.constant 0 : index
    %c0_144 = arith.constant 0 : index
    %379 = vector.load %arg15[%c0_142, %c0_143, %c0_144] : memref<2x16x128xf32, #tpu.memory_space<vmem>>, vector<2x16x128xf32>
    tpu.vector_store %arg15[%c0_142, %c0_143, %c0_144], %378 {strides = array<i32>} : memref<2x16x128xf32, #tpu.memory_space<vmem>>, vector<2x16x128xf32>,
    return
  }
  func.func @transform_0(%arg0: i32) -> (i32, i32, i32) {
    %c0_i32 = arith.constant 0 : i32
    %c0_i32_0 = arith.constant 0 : i32
    %c0_i32_1 = arith.constant 0 : i32
    return %arg0, %c0_i32, %c0_i32_0 : i32, i32, i32
  }
  func.func @transform_1(%arg0: i32) -> (i32, i32) {
    %c0_i32 = arith.constant 0 : i32
    %c0_i32_0 = arith.constant 0 : i32
    %c0_i32_1 = arith.constant 0 : i32
    return %c0_i32, %c0_i32_0 : i32, i32
  }
  func.func @transform_2(%arg0: i32) -> (i32, i32) {
    %c0_i32 = arith.constant 0 : i32
    %c0_i32_0 = arith.constant 0 : i32
    %c0_i32_1 = arith.constant 0 : i32
    return %c0_i32, %c0_i32_0 : i32, i32
  }
  func.func @transform_3(%arg0: i32) -> (i32, i32, i32) {
    %c0_i32 = arith.constant 0 : i32
    %c0_i32_0 = arith.constant 0 : i32
    %c0_i32_1 = arith.constant 0 : i32
    %c0_i32_2 = arith.constant 0 : i32
    return %c0_i32, %c0_i32_0, %c0_i32_1 : i32, i32, i32
  }
  func.func @transform_4(%arg0: i32) -> (i32, i32, i32) {
    %c0_i32 = arith.constant 0 : i32
    %c0_i32_0 = arith.constant 0 : i32
    %c0_i32_1 = arith.constant 0 : i32
    %c0_i32_2 = arith.constant 0 : i32
    return %c0_i32, %c0_i32_0, %c0_i32_1 : i32, i32, i32
  }
  func.func @transform_5(%arg0: i32) -> (i32, i32, i32) {
    %c0_i32 = arith.constant 0 : i32
    %c0_i32_0 = arith.constant 0 : i32
    %c0_i32_1 = arith.constant 0 : i32
    %c0_i32_2 = arith.constant 0 : i32
    return %c0_i32, %c0_i32_0, %c0_i32_1 : i32, i32, i32
  }
  func.func @transform_6(%arg0: i32) -> (i32, i32, i32) {
    %c0_i32 = arith.constant 0 : i32
    %c0_i32_0 = arith.constant 0 : i32
    %c0_i32_1 = arith.constant 0 : i32
    %c0_i32_2 = arith.constant 0 : i32
    return %c0_i32, %c0_i32_0, %c0_i32_1 : i32, i32, i32
  }
  func.func @transform_7(%arg0: i32) -> (i32, i32, i32) {
    %c0_i32 = arith.constant 0 : i32
    %c0_i32_0 = arith.constant 0 : i32
    %c0_i32_1 = arith.constant 0 : i32
    %c0_i32_2 = arith.constant 0 : i32
    return %c0_i32, %c0_i32_0, %c0_i32_1 : i32, i32, i32
  }
  func.func @transform_8(%arg0: i32) -> (i32, i32, i32) {
    %c0_i32 = arith.constant 0 : i32
    %c0_i32_0 = arith.constant 0 : i32
    %c0_i32_1 = arith.constant 0 : i32
    %c0_i32_2 = arith.constant 0 : i32
    return %c0_i32, %c0_i32_0, %c0_i32_1 : i32, i32, i32
  }
  func.func @transform_9(%arg0: i32) -> (i32, i32, i32) {
    %c0_i32 = arith.constant 0 : i32
    %c0_i32_0 = arith.constant 0 : i32
    %c0_i32_1 = arith.constant 0 : i32
    %c0_i32_2 = arith.constant 0 : i32
    return %c0_i32, %c0_i32_0, %c0_i32_1 : i32, i32, i32
  }
  func.func @transform_10(%arg0: i32) -> (i32, i32, i32) {
    %c0_i32 = arith.constant 0 : i32
    %c0_i32_0 = arith.constant 0 : i32
    %c0_i32_1 = arith.constant 0 : i32
    %c0_i32_2 = arith.constant 0 : i32
    return %c0_i32, %c0_i32_0, %c0_i32_1 : i32, i32, i32
  }
  func.func @transform_11(%arg0: i32) -> (i32, i32, i32) {
    %c0_i32 = arith.constant 0 : i32
    %c0_i32_0 = arith.constant 0 : i32
    %c0_i32_1 = arith.constant 0 : i32
    %c0_i32_2 = arith.constant 0 : i32
    return %c0_i32, %c0_i32_0, %c0_i32_1 : i32, i32, i32
  }
  func.func @transform_12(%arg0: i32) -> (i32, i32, i32) {
    %c0_i32 = arith.constant 0 : i32
    %c0_i32_0 = arith.constant 0 : i32
    %c0_i32_1 = arith.constant 0 : i32
    %c0_i32_2 = arith.constant 0 : i32
    return %c0_i32, %c0_i32_0, %c0_i32_1 : i32, i32, i32
  }
  func.func @transform_13(%arg0: i32) -> (i32, i32, i32) {
    %c0_i32 = arith.constant 0 : i32
    %c0_i32_0 = arith.constant 0 : i32
    %c0_i32_1 = arith.constant 0 : i32
    %c0_i32_2 = arith.constant 0 : i32
    return %c0_i32, %c0_i32_0, %c0_i32_1 : i32, i32, i32
  }
  func.func @transform_14(%arg0: i32) -> (i32, i32, i32) {
    %c0_i32 = arith.constant 0 : i32
    %c0_i32_0 = arith.constant 0 : i32
    %c0_i32_1 = arith.constant 0 : i32
    return %arg0, %c0_i32, %c0_i32_0 : i32, i32, i32
  }
}

</mosaic_0001>

<bundles_post_ra>
// kernel: tpu_custom_call.1
= control target key start
LH: loop header
LB: loop body
LE: loop exit
PB: predicated region body
PF: predicated region fallthrough
CT: control target
= control target key end

     0   :  { %19 = vsyncpa [#allocation3], 0  ;;  %s5832_s0 = inlined_call_operand.vmem [shape: f32[2,16,2], index: 0, kind: input, shape index: {}]   ;;  %s5833_s1 = inlined_call_operand.vmem [shape: f32[2,128], index: 1, kind: input, shape index: {}]   ;;  %s5834_s2 = inlined_call_operand.vmem [shape: f32[1,128], index: 2, kind: input, shape index: {}]   ;;  %s5835_s3 = inlined_call_operand.hbm [shape: bf16[2,128,384], index: 3, kind: input, shape index: {}]   ;;  %s5836_s4 = inlined_call_operand.hbm [shape: bf16[2,128,128], index: 4, kind: input, shape index: {}]   ;;  %s5837_s5 = inlined_call_operand.vmem [shape: f32[2,1,128], index: 5, kind: input, shape index: {}]   ;;  %s5838_s6 = inlined_call_operand.vmem [shape: f32[2,1,128], index: 6, kind: input, shape index: {}]   ;;  %s5839_s7 = inlined_call_operand.vmem [shape: f32[2,1,128], index: 7, kind: input, shape index: {}]   ;;  %s5840_s8 = inlined_call_operand.hbm [shape: bf16[2,128,256], index: 8, kind: input, shape index: {}]   ;;  %s5841_s9 = inlined_call_operand.vmem [shape: f32[2,1,256], index: 9, kind: input, shape index: {}]   ;;  %s5842_s10 = inlined_call_operand.hbm [shape: bf16[2,256,128], index: 10, kind: input, shape index: {}]   ;;  %s5843_s11 = inlined_call_operand.vmem [shape: f32[2,1,128], index: 11, kind: input, shape index: {}]   ;;  %s5844_s12 = inlined_call_operand.vmem [shape: f32[2,1,128], index: 12, kind: input, shape index: {}]   ;;  %s5845_s13 = inlined_call_operand.vmem [shape: f32[2,1,128], index: 13, kind: input, shape index: {}]   ;;  %s5846_s14 = inlined_call_operand.hbm [shape: f32[2,16,128], index: 14, kind: output, shape index: {}]  }
   0x1   :  { %20 = vsyncpa [#allocation6], 0 }
   0x2   :  { %21 = vsyncpa [#allocation9], 0 }
   0x3   :  { %22 = vsyncpa [#allocation4], 0  ;;  %s5104_s29 = smov [#allocation5]   ;;  %s4986_s17 = scalar_lea.hbm %s5836_s4, 2048 }
   0x4   :  { %s46_s30 = sshll.u32 %s5104_s29, 4  ;;  %p4987_p0 = scmp.ne.s32.totalorder %s5836_s4, %s4986_s17  ;;  %s47_s30 = int_to_ptr.vmem [resolvable:$true] %s46_s30 }
   0x5   :  { %p4990_p1 = scmp.lt.u32.totalorder %s4986_s17, %s5836_s4 }
   0x7   :  { %p4992_p2 = pnand %p4990_p1, %p4987_p0 }
   0x9   :  { %4995 = shalt.err (!%p4992_p2)
}
   0xa   :  { %s4996_s22 = scalar_lea.vmem %s47_s30, 2048  ;;  %p5001_p4 = scmp.lt.s32.totalorder %s47_s30, %s47_s30 }
   0xb   :  { %p4997_p3 = scmp.ne.s32.totalorder %s47_s30, %s4996_s22  ;;  %p5002_p5 = scmp.lt.s32.totalorder %s4996_s22, %s4996_s22 }
   0xd   :  { %p5003_p6 = por %p5002_p5, %p5001_p4 }
   0xf   :  { %p5004_p7 = pnand %p5003_p6, %p4997_p3 }
  0x11   :  { %5007 = shalt.err (!%p5004_p7)
}
  0x12   :  { %s5105_s23 = smov 64   ;;  %s5106_s24 = smov 4  }
  0x13   :  { %52 = dma.hbm_to_vmem [thread:$0]  %s5836_s4, 2048, %s47_s30, [#allocation6], %s5105_s23, %s5105_s23, %s5106_s24  }
  0x14   :  { %s5107_s27 = smov [#allocation2]   ;;  %s5008_s16 = scalar_lea.hbm %s5835_s3, 6144 }
  0x15   :  { %s34_s28 = sshll.u32 %s5107_s27, 4  ;;  %p5009_p8 = scmp.ne.s32.totalorder %s5835_s3, %s5008_s16  ;;  %s35_s28 = int_to_ptr.vmem [resolvable:$true] %s34_s28 }
  0x16   :  { %p5012_p9 = scmp.lt.u32.totalorder %s5008_s16, %s5835_s3 }
  0x18   :  { %p5014_p10 = pnand %p5012_p9, %p5009_p8 }
  0x1a   :  { %5017 = shalt.err (!%p5014_p10)
}
  0x1b   :  { %s5018_s21 = scalar_lea.vmem %s35_s28, 6144  ;;  %p5023_p12 = scmp.lt.s32.totalorder %s35_s28, %s35_s28 }
  0x1c   :  { %p5019_p11 = scmp.ne.s32.totalorder %s35_s28, %s5018_s21  ;;  %p5024_p13 = scmp.lt.s32.totalorder %s5018_s21, %s5018_s21 }
  0x1e   :  { %p5025_p0 = por %p5024_p13, %p5023_p12 }
  0x20   :  { %p5026_p1 = pnand %p5025_p0, %p5019_p11 }
  0x22   :  { %5029 = shalt.err (!%p5026_p1)
}
  0x23   :  { %s5108_s4 = smov 192   ;;  %s5109_s30 = smov 12  }
  0x24   :  { %40 = dma.hbm_to_vmem [thread:$0]  %s5835_s3, 6144, %s35_s28, [#allocation3], %s5108_s4, %s5108_s4, %s5109_s30  }
  0x25   :  { %s5110_s26 = smov [#allocation7]   ;;  %s5030_s16 = scalar_lea.hbm %s5840_s8, 4096 }
  0x26   :  { %s64_s27 = sshll.u32 %s5110_s26, 4  ;;  %p5031_p2 = scmp.ne.s32.totalorder %s5840_s8, %s5030_s16  ;;  %s65_s27 = int_to_ptr.vmem [resolvable:$true] %s64_s27 }
  0x27   :  { %p5034_p3 = scmp.lt.u32.totalorder %s5030_s16, %s5840_s8 }
  0x29   :  { %p5036_p4 = pnand %p5034_p3, %p5031_p2 }
  0x2b   :  { %5039 = shalt.err (!%p5036_p4)
}
  0x2c   :  { %s5040_s21 = scalar_lea.vmem %s65_s27, 4096  ;;  %p5045_p6 = scmp.lt.s32.totalorder %s65_s27, %s65_s27 }
  0x2d   :  { %p5041_p5 = scmp.ne.s32.totalorder %s65_s27, %s5040_s21  ;;  %p5046_p7 = scmp.lt.s32.totalorder %s5040_s21, %s5040_s21 }
  0x2f   :  { %p5047_p8 = por %p5046_p7, %p5045_p6 }
  0x31   :  { %p5048_p9 = pnand %p5047_p8, %p5041_p5 }
  0x33   :  { %5051 = shalt.err (!%p5048_p9)
}
  0x34   :  { %s5111_s3 = smov 128   ;;  %s5112_s28 = smov 8  }
  0x35   :  { %70 = dma.hbm_to_vmem [thread:$0]  %s5840_s8, 4096, %s65_s27, [#allocation6], %s5111_s3, %s5111_s3, %s5112_s28  }
  0x36   :  { %s5113_s22 = smov [#allocation8]   ;;  %s5052_s15 = scalar_lea.hbm %s5842_s10, 4096 }
  0x37   :  { %s78_s25 = sshll.u32 %s5113_s22, 4  ;;  %p5053_p10 = scmp.ne.s32.totalorder %s5842_s10, %s5052_s15  ;;  %s79_s25 = int_to_ptr.vmem [resolvable:$true] %s78_s25 }
  0x38   :  { %p5056_p11 = scmp.lt.u32.totalorder %s5052_s15, %s5842_s10 }
  0x3a   :  { %p5058_p12 = pnand %p5056_p11, %p5053_p10 }
  0x3c   :  { %5061 = shalt.err (!%p5058_p12)
}
  0x3d   :  { %s5062_s20 = scalar_lea.vmem %s79_s25, 4096  ;;  %p5067_p0 = scmp.lt.s32.totalorder %s79_s25, %s79_s25 }
  0x3e   :  { %p5063_p13 = scmp.ne.s32.totalorder %s79_s25, %s5062_s20  ;;  %p5068_p1 = scmp.lt.s32.totalorder %s5062_s20, %s5062_s20 }
  0x40   :  { %p5069_p2 = por %p5068_p1, %p5067_p0 }
  0x42   :  { %p5070_p3 = pnand %p5069_p2, %p5063_p13 }
  0x44   :  { %5073 = shalt.err (!%p5070_p3)
}
  0x45   :  { %84 = dma.hbm_to_vmem [thread:$0]  %s5842_s10, 4096, %s79_s25, [#allocation9], %s5105_s23, %s5105_s23, %s5106_s24  }
  0x46   :  { %5096 = dma.done.wait [#allocation3], 6144  }
  0x47   :  { %5097 = vsyncadd [#allocation3], 4294961152 }
  0x48   :  { %5098 = dma.done.wait [#allocation6], 6144  }
  0x49   :  { %5099 = vsyncadd [#allocation6], 4294961152 }
  0x4a   :  { %5100 = dma.done.wait [#allocation9], 4096  }
  0x4b   :  { %5101 = vsyncadd [#allocation9], 4294963200  ;;  %v5114_v0 = vmov 1   ;;  %v5115_v1 = vmov 0   ;;  %v104_v2 = vld [vmem:[%s5832_s0] sm:$0xff]  ;;  %v105_v3 = vld [vmem:[%s5832_s0 + $0x8] sm:$0xff] }
  0x4c   :  { %4678 = vset.pattern.permute.xlu1 %v5114_v0  ;;  %4677 = vset.pattern.permute.xlu0 %v5115_v1  ;;  %v4682_v4 = vld [vmem:[#allocation2 + $0x4] ss:$12 sps:$4 sm:$0xff]   ;;  %v4684_v5 = vld [vmem:[#allocation2] ss:$12 sps:$4 sm:$0xff]   ;;  %v4685_v6 = vld [vmem:[#allocation2 + $0x1c] ss:$12 sps:$4 sm:$0xff]  }
  0x4d   :  { %371 = vmatprep.mubr.bf16.mxu0 %v5115_v1  ;;  %139 = vperm.xlu1 %4678, %v104_v2   ;;  %v106_v7 = vld [vmem:[%s5832_s0 + $0x10] sm:$0xff]  ;;  %v4687_v8 = vld [vmem:[#allocation2 + $0x18] ss:$12 sps:$4 sm:$0xff]   ;;  %v4695_v12 = vld [vmem:[#allocation2 + $0x20] ss:$12 sps:$4 sm:$0xff]   ;;  %v5116_v59 = vmov 0.0  }
  0x4e   :  { %111 = vperm.xlu0 %4677, %v104_v2   ;;  %339 = vmatprep.subr.bf16.mxu0 %v4682_v4  ;;  %v4691_v9 = vld [vmem:[#allocation2 + $0x8] ss:$12 sps:$4 sm:$0xff]   ;;  %v107_v10 = vld [vmem:[%s5832_s0 + $0x18] sm:$0xff]  ;;  %v4696_v17 = vld [vmem:[#allocation2 + $0x64] ss:$12 sps:$4 sm:$0xff]   ;;  %vm5117_vm0 = vmmov 0  }
  0x4f   :  { %340 = vmatpush1.bf16.msra.mxu0 %v4684_v5  ;;  %v4688_v11 = vld [vmem:[#allocation2 + $0x34] ss:$12 sps:$4 sm:$0xff]   ;;  %4388 = vmatprep.subr.bf16.mxu1 %v4691_v9  ;;  %v4690_v13 = vld [vmem:[#allocation2 + $0x30] ss:$12 sps:$4 sm:$0xff]   ;;  %v4692_v14 = vld [vmem:[#allocation2 + $0x4c] ss:$12 sps:$4 sm:$0xff]  }
  0x50   :  { %341 = vmatprep.subr.bf16.mxu0 %v4685_v6  ;;  %4389 = vmatpush3.bf16.msra.mxu1 %v4691_v9  ;;  %v4699_v15 = vld [vmem:[#allocation2 + $0x38] ss:$12 sps:$4 sm:$0xff]   ;;  %v4694_v16 = vld [vmem:[#allocation2 + $0x48] ss:$12 sps:$4 sm:$0xff]   ;;  %v4703_v18 = vld [vmem:[#allocation2 + $0x50] ss:$12 sps:$4 sm:$0xff]  }
  0x51   :  { %143 = vperm.xlu1 %4678, %v105_v3   ;;  %4390 = vmatprep.subr.bf16.mxu1 %v4695_v12  ;;  %v4698_v19 = vld [vmem:[#allocation2 + $0x60] ss:$12 sps:$4 sm:$0xff]   ;;  %v4700_v20 = vld [vmem:[#allocation2 + $0x7c] ss:$12 sps:$4 sm:$0xff]   ;;  %v4702_v22 = vld [vmem:[#allocation2 + $0x78] ss:$12 sps:$4 sm:$0xff]  }
  0x52   :  { %116 = vperm.xlu0 %4677, %v105_v3   ;;  %v4707_v21 = vld [vmem:[#allocation2 + $0x68] ss:$12 sps:$4 sm:$0xff]   ;;  %v4711_v24 = vld [vmem:[#allocation2 + $0x80] ss:$12 sps:$4 sm:$0xff]   ;;  %v4706_v25 = vld [vmem:[#allocation2 + $0x90] ss:$12 sps:$4 sm:$0xff]  }
  0x53   :  { %342 = vmatpush1.bf16.msra.mxu0 %v4687_v8  ;;  %v4704_v23 = vld [vmem:[#allocation2 + $0x94] ss:$12 sps:$4 sm:$0xff]   ;;  %v4708_v26 = vld [vmem:[#allocation2 + $0xac] ss:$12 sps:$4 sm:$0xff]   ;;  %v4713_v29 = vld [vmem:[#allocation2 + $0xb0] ss:$12 sps:$4 sm:$0xff]  }
  0x54   :  { %343 = vmatprep.subr.bf16.mxu0 %v4688_v11  ;;  %4391 = vmatpush3.bf16.msra.mxu1 %v4695_v12  ;;  %v4712_v27 = vld [vmem:[#allocation2 + $0x98] ss:$12 sps:$4 sm:$0xff]   ;;  %v4710_v28 = vld [vmem:[#allocation2 + $0xa8] ss:$12 sps:$4 sm:$0xff]   ;;  %v4047_v30 = vld [vmem:[%s5833_s1 + $0x1] ss:$0 sm:$0xff] }
  0x55   :  { %4679 = vset.pattern.permute.xlu1 %v5115_v1  ;;  %4392 = vmatprep.subr.bf16.mxu1 %v4699_v15  ;;  %v4046_v31 = vld [vmem:[%s5833_s1] ss:$0 sm:$0xff]  ;;  %vm447_vm1 = vcmask 261120   ;;  %vm546_vm2 = vcmask 130048   ;;  %s5118_s1 = smov 96   ;;  %vm1457_vm3 = vcmask 523264  }
  0x56   :  { %121 = vperm.xlu0 %4677, %v106_v7   ;;  %126 = vperm.xlu1 %4679, %v107_v10   ;;  %v4048_v41 = vld [vmem:[%s5834_s2] ss:$0 sm:$0xff]  ;;  %s5119_s2 = smov 32   ;;  %vm1462_vm4 = vcmask 785408   ;;  %s5120_s8 = smov [#allocation10]  }
  0x57   :  { %344 = vmatpush1.bf16.msra.mxu0 %v4690_v13  ;;  %s4032_s27 = sshll.u32 %s5120_s8, 4  ;;  %s4033_s27 = int_to_ptr.vmem [resolvable:$true] %s4032_s27 }
  0x58   :  { %345 = vmatprep.subr.bf16.mxu0 %v4692_v14  ;;  %4393 = vmatpush3.bf16.msra.mxu1 %v4699_v15  ;;  %p5079_p5 = scmp.lt.s32.totalorder %s4033_s27, %s4033_s27 }
  0x59   :  { %4394 = vmatprep.subr.bf16.mxu1 %v4703_v18 }
  0x5a   :  { %4680 = vset.pattern.permute.xlu0 %v5114_v0  ;;  %4681 = vset.pattern.permute.xlu1 %v5114_v0 }
  0x5b   :  { %147 = vperm.xlu0 %4680, %v106_v7   ;;  %151 = vperm.xlu1 %4681, %v107_v10  }
  0x5c   :  { %346 = vmatpush1.bf16.msra.mxu0 %v4694_v16  ;;  %4395 = vmatpush3.bf16.msra.mxu1 %v4703_v18 }
  0x5d   :  { %347 = vmatprep.subr.bf16.mxu0 %v4696_v17  ;;  %4396 = vmatprep.subr.bf16.mxu1 %v4707_v21 }
  0x60   :  { %348 = vmatpush1.bf16.msra.mxu0 %v4698_v19  ;;  %4397 = vmatpush3.bf16.msra.mxu1 %v4707_v21 }
  0x61   :  { %349 = vmatprep.subr.bf16.mxu0 %v4700_v20  ;;  %4398 = vmatprep.subr.bf16.mxu1 %v4711_v24 }
  0x64   :  { %350 = vmatpush1.bf16.msra.mxu0 %v4702_v22  ;;  %4399 = vmatpush3.bf16.msra.mxu1 %v4711_v24 }
  0x65   :  { %351 = vmatprep.subr.bf16.mxu0 %v4704_v23  ;;  %4400 = vmatprep.subr.bf16.mxu1 %v4712_v27 }
  0x68   :  { %352 = vmatpush1.bf16.msra.mxu0 %v4706_v25  ;;  %4401 = vmatpush3.bf16.msra.mxu1 %v4712_v27 }
  0x69   :  { %353 = vmatprep.subr.bf16.mxu0 %v4708_v26  ;;  %4402 = vmatprep.subr.bf16.mxu1 %v4713_v29 }
  0x6c   :  { %354 = vmatpush1.bf16.msra.mxu0 %v4710_v28  ;;  %4403 = vmatpush3.bf16.msra.mxu1 %v4713_v29 }
  0x6d   :  { %4408 = vmatprep.subr.bf16.mxu1 %v5116_v59  ;;  %4438 = vmatprep.subr.bf16.mxu0 %v5116_v59 }
  0xcc   :  { %v140_v32 = vpop.permute.xlu1 %139 }
  0xcd   :  { %v112_v33 = vpop.permute.xlu0 %111  ;;  %v158_v34 = vmul.f32 %v4047_v30, %v140_v32 }
  0xce   :  { %v133_v35 = vmul.f32 %v4046_v31, %v112_v33 }
  0xd0   :  { %v144_v36 = vpop.permute.xlu1 %143  ;;  %v162_v38 = vadd.f32 %v158_v34, %v133_v35 }
  0xd1   :  { %v117_v37 = vpop.permute.xlu0 %116  ;;  %v159_v39 = vmul.f32 %v4047_v30, %v144_v36 }
  0xd2   :  { %v134_v40 = vmul.f32 %v4046_v31, %v117_v37  ;;  %v5277_v44 = vadd.f32 %v4048_v41, %v162_v38 }
  0xd4   :  { %v163_v42 = vadd.f32 %v159_v39, %v134_v40 }
  0xd5   :  { %v122_v43 = vpop.permute.xlu0 %121  ;;  %v127_v46 = vpop.permute.xlu1 %126 }
  0xd6   :  { %v5279_v45 = vadd.f32 %v4048_v41, %v163_v42  ;;  %v135_v49 = vmul.f32 %v4046_v31, %v122_v43  ;;  %v136_v52 = vmul.f32 %v4046_v31, %v127_v46 }
  0xd8   :  { %v177_v47 = vpack.c.bf16 %v5279_v45, %v5277_v44 }
  0xda   :  { %372 = vmatmul.mubr.bf16.vlgmr.msra.gmra.mrb[0].mxu0 %v177_v47  ;;  %4404 = vmatprep.mubr.bf16.mxu1 %v177_v47  ;;  %v148_v48 = vpop.permute.xlu0 %147  ;;  %v152_v51 = vpop.permute.xlu1 %151 }
  0xdb   :  { %v160_v50 = vmul.f32 %v4047_v30, %v148_v48  ;;  %381 = vmatprep.mubr.bf16.mxu0 %v5115_v1  ;;  %v161_v53 = vmul.f32 %v4047_v30, %v152_v51 }
  0xdd   :  { %v164_v54 = vadd.f32 %v160_v50, %v135_v49  ;;  %v165_v55 = vadd.f32 %v161_v53, %v136_v52 }
  0xdf   :  { %v5284_v56 = vadd.f32 %v4048_v41, %v164_v54  ;;  %v5286_v57 = vadd.f32 %v4048_v41, %v165_v55 }
  0xe1   :  { %v178_v58 = vpack.c.bf16 %v5286_v57, %v5284_v56 }
  0xe3   :  { %382 = vmatmul.mubr.bf16.gmra.mrb[4].mxu0 %v178_v58  ;;  %4405 = vmatmul.mubr.bf16.vlgmr.msra.gmra.mrb[0].mxu1 %v178_v58 }
  0xe4   :  { %4410 = vmatprep.mubr.msk.bf16.mxu1 %vm5117_vm0, %v5116_v59  ;;  %4440 = vmatprep.mubr.msk.bf16.mxu0 %vm5117_vm0, %v5116_v59 }
 0x1ad   :  { %v373_v60 = vpop.f32.mrb[0].mxu0 }
 0x1ae   :  { %v375_v61 = vpop.f32.mrb[1].mxu0 }
 0x1af   :  { %v377_v62 = vpop.f32.mrb[2].mxu0 }
 0x1b0   :  { %v5296_v63 = vpack.c.bf16 %v377_v62, %v373_v60  ;;  %v379_v0 = vpop.f32.mrb[3].mxu0 }
 0x1b1   :  { %v5298_v2 = vpack.c.bf16 %v379_v0, %v375_v61 }
 0x1b3   :  { %v452_v3 = vsel %vm447_vm1, %v5298_v2, 0 }
 0x1b4   :  { %4409 = vmatpush3.bf16.xpose.msra.mxu1 %v452_v3 }
 0x1b5   :  { %4414 = vmatprep.subr.bf16.mxu1 %v5116_v59 }
 0x1b6   :  { %v383_v4 = vpop.f32.mrb[4].mxu0  ;;  %v4406_v5 = vpop.f32.mrb[0].mxu1 }
 0x1b7   :  { %v385_v6 = vpop.f32.mrb[5].mxu0  ;;  %v426_v7 = vpop.f32.mrb[1].mxu1 }
 0x1b8   :  { %v387_v8 = vpop.f32.mrb[6].mxu0  ;;  %v4407_v9 = vpop.f32.mrb[2].mxu1 }
 0x1b9   :  { %v5303_v10 = vpack.c.bf16 %v387_v8, %v383_v4  ;;  %v5305_v11 = vpack.c.bf16 %v4407_v9, %v4406_v5  ;;  %v389_v12 = vpop.f32.mrb[7].mxu0  ;;  %v429_v13 = vpop.f32.mrb[3].mxu1 }
 0x1ba   :  { %v5307_v14 = vpack.c.bf16 %v389_v12, %v385_v6  ;;  %v5309_v15 = vpack.c.bf16 %v429_v13, %v426_v7 }
 0x1bb   :  { %4411 = vmatmul.mubr.msk.bf16.vlgmr.msra.gmra.mrb[4].mxu1 %vm447_vm1, %v5296_v63 }
 0x1bc   :  { %4416 = vmatprep.mubr.msk.bf16.mxu1 %vm5117_vm0, %v5116_v59  ;;  %v499_v16 = vsel %vm447_vm1, %v5307_v14, 0 }
 0x1bd   :  { %4415 = vmatpush3.bf16.xpose.msra.mxu1 %v499_v16 }
 0x1be   :  { %4420 = vmatprep.subr.bf16.mxu1 %v5116_v59 }
 0x1c4   :  { %4417 = vmatmul.mubr.msk.bf16.vlgmr.msra.gmra.mrb[8].mxu1 %vm447_vm1, %v5303_v10 }
 0x1c5   :  { %4421 = vmatpush3.bf16.msra.mxu1 %v5309_v15  ;;  %4422 = vmatprep.mubr.msk.bf16.mxu1 %vm5117_vm0, %v5116_v59 }
 0x1c6   :  { %4426 = vmatprep.subr.bf16.mxu1 %v5116_v59 }
 0x28e   :  { %v488_v17 = vpop.f32.mrb[4].mxu1 }
 0x28f   :  { %v542_v18 = vmul.f32 0.17677669, %v488_v17  ;;  %v4412_v19 = vpop.f32.mrb[5].mxu1 }
 0x290   :  { %v491_v20 = vpop.f32.mrb[6].mxu1 }
 0x291   :  { %v543_v21 = vmul.f32 0.17677669, %v491_v20  ;;  %v4413_v22 = vpop.f32.mrb[7].mxu1  ;;  %v547_v23 = vsel %vm546_vm2, %v542_v18, -inf }
 0x292   :  { %548 = vmax.xlane.f32.xlu1 %v547_v23 }
 0x293   :  { %v550_v24 = vsel %vm546_vm2, %v543_v21, -inf }
 0x294   :  { %551 = vmax.xlane.f32.xlu0 %v550_v24 }
 0x297   :  { %v535_v25 = vpop.f32.mrb[8].mxu1 }
 0x298   :  { %v544_v26 = vmul.f32 0.17677669, %v535_v25  ;;  %v4418_v27 = vpop.f32.mrb[9].mxu1 }
 0x299   :  { %v538_v28 = vpop.f32.mrb[10].mxu1 }
 0x29a   :  { %v545_v29 = vmul.f32 0.17677669, %v538_v28  ;;  %v4419_v30 = vpop.f32.mrb[11].mxu1  ;;  %v553_v31 = vsel %vm546_vm2, %v544_v26, -inf }
 0x29b   :  { %554 = vmax.xlane.f32.xlu0 %v553_v31 }
 0x29c   :  { %v556_v32 = vsel %vm546_vm2, %v545_v29, -inf }
 0x29d   :  { %557 = vmax.xlane.f32.xlu1 %v556_v32 }
 0x31f   :  { %v549_v33 = vpop.xlane.xlu1 %548 }
 0x320   :  { %v559_v34 = vsub.f32 %v542_v18, %v549_v33 }
 0x321   :  { %v552_v35 = vpop.xlane.xlu0 %551 }
 0x322   :  { %v563_v36 = vmul.f32 1.442695, %v559_v34  ;;  %v560_v37 = vsub.f32 %v543_v21, %v552_v35 }
 0x324   :  { %4842 = vpow2.f32 %v563_v36  ;;  %v565_v38 = vmul.f32 1.442695, %v560_v37 }
 0x326   :  { %4844 = vpow2.f32 %v565_v38 }
 0x328   :  { %v555_v39 = vpop.xlane.xlu0 %554 }
 0x329   :  { %v561_v40 = vsub.f32 %v544_v26, %v555_v39 }
 0x32a   :  { %v558_v41 = vpop.xlane.xlu1 %557 }
 0x32b   :  { %v567_v42 = vmul.f32 1.442695, %v561_v40  ;;  %v562_v43 = vsub.f32 %v545_v29, %v558_v41 }
 0x32d   :  { %4846 = vpow2.f32 %v567_v42  ;;  %v569_v47 = vmul.f32 1.442695, %v562_v43 }
 0x32e   :  { %v4843_v46 = vpop.eup %4842 }
 0x32f   :  { %v571_v48 = vsel %vm546_vm2, %v4843_v46, 0.0  ;;  %4848 = vpow2.f32 %v569_v47 }
 0x330   :  { %v4845_v49 = vpop.eup %4844  ;;  %572 = vadd.xlane.f32.xlu0 %v571_v48 }
 0x331   :  { %v574_v50 = vsel %vm546_vm2, %v4845_v49, 0.0 }
 0x332   :  { %575 = vadd.xlane.f32.xlu1 %v574_v50 }
 0x337   :  { %v4847_v51 = vpop.eup %4846 }
 0x338   :  { %v577_v52 = vsel %vm546_vm2, %v4847_v51, 0.0 }
 0x339   :  { %v4849_v53 = vpop.eup %4848  ;;  %578 = vadd.xlane.f32.xlu0 %v577_v52 }
 0x33a   :  { %v580_v54 = vsel %vm546_vm2, %v4849_v53, 0.0 }
 0x33b   :  { %581 = vadd.xlane.f32.xlu1 %v580_v54 }
 0x34c   :  { %740 = vrot.lane.b32.xlu1 %v5307_v14, %s5118_s1 }
 0x34f   :  { %687 = vrot.lane.b32.xlu0 %v5298_v2, %s5118_s1 }
 0x350   :  { %684 = vrot.lane.b32.xlu1 %v5296_v63, %s5118_s1 }
 0x353   :  { %737 = vrot.lane.b32.xlu0 %v5303_v10, %s5118_s1 }
 0x3bd   :  { %v573_v55 = vpop.xlane.xlu0 %572 }
 0x3be   :  { %4850 = vrcp.f32 %v573_v55 }
 0x3bf   :  { %v576_v58 = vpop.xlane.xlu1 %575 }
 0x3c0   :  { %4852 = vrcp.f32 %v576_v58 }
 0x3c6   :  { %v579_v60 = vpop.xlane.xlu0 %578 }
 0x3c7   :  { %4854 = vrcp.f32 %v579_v60 }
 0x3c8   :  { %v4851_v61 = vpop.eup %4850  ;;  %v582_v62 = vpop.xlane.xlu1 %581 }
 0x3c9   :  { %4856 = vrcp.f32 %v582_v62  ;;  %v587_v3 = vmul.f32 %v4851_v61, %v4843_v46 }
 0x3ca   :  { %v4853_v0 = vpop.eup %4852  ;;  %v688_v8 = vpop.permute.xlu0 %687 }
 0x3cb   :  { %v588_v4 = vmul.f32 %v4853_v0, %v4845_v49  ;;  %v693_v19 = vsel %vm447_vm1, %v688_v8, 0 }
 0x3cc   :  { %v741_v5 = vpop.permute.xlu1 %740 }
 0x3cd   :  { %v591_v6 = vpack.c.bf16 %v588_v4, %v587_v3  ;;  %v746_v7 = vsel %vm447_vm1, %v741_v5, 0 }
 0x3ce   :  { %4439 = vmatpush3.bf16.xpose.msra.mxu0 %v746_v7  ;;  %v738_v17 = vpop.permute.xlu0 %737 }
 0x3cf   :  { %4423 = vmatmul.mubr.msk.bf16.vlgmr.msra.gmra.mrb[12].mxu1 %vm546_vm2, %v591_v6  ;;  %4450 = vmatprep.subr.bf16.mxu0 %v5116_v59 }
 0x3d0   :  { %4427 = vmatpush3.bf16.msra.mxu1 %v5305_v11  ;;  %4428 = vmatprep.mubr.msk.bf16.mxu1 %vm5117_vm0, %v5116_v59  ;;  %v685_v20 = vpop.permute.xlu1 %684 }
 0x3d1   :  { %4432 = vmatprep.subr.bf16.mxu1 %v5116_v59  ;;  %v4855_v9 = vpop.eup %4854 }
 0x3d2   :  { %v589_v13 = vmul.f32 %v4855_v9, %v4847_v51 }
 0x3d3   :  { %v4857_v12 = vpop.eup %4856 }
 0x3d4   :  { %v590_v16 = vmul.f32 %v4857_v12, %v4849_v53 }
 0x3d5   :  { %4441 = vmatmul.mubr.msk.bf16.vlgmr.msra.gmra.mrb[8].mxu0 %vm447_vm1, %v738_v17 }
 0x3d6   :  { %v592_v18 = vpack.c.bf16 %v590_v16, %v589_v13  ;;  %4452 = vmatprep.mubr.msk.bf16.mxu0 %vm5117_vm0, %v5116_v59 }
 0x3d8   :  { %4429 = vmatmul.mubr.msk.bf16.vlgmr.msra.gmra.mrb[16].mxu1 %vm546_vm2, %v592_v18 }
 0x3d9   :  { %4433 = vmatpush3.bf16.xpose.msra.mxu1 %v693_v19  ;;  %4434 = vmatprep.mubr.msk.bf16.mxu1 %vm5117_vm0, %v5116_v59 }
 0x3da   :  { %4444 = vmatprep.subr.bf16.mxu1 %v5116_v59 }
 0x3e0   :  { %4435 = vmatmul.mubr.msk.bf16.vlgmr.msra.gmra.mrb[20].mxu1 %vm447_vm1, %v685_v20 }
 0x3e1   :  { %4446 = vmatprep.mubr.msk.bf16.mxu1 %vm5117_vm0, %v5116_v59 }
 0x4a2   :  { %v5358_v21 = vpop.f32.mrb[12].mxu1 }
 0x4a3   :  { %v4424_v22 = vpop.f32.mrb[13].mxu1 }
 0x4a4   :  { %v5360_v23 = vpop.f32.mrb[14].mxu1 }
 0x4a5   :  { %v681_v24 = vpack.c.bf16 %v5360_v23, %v5358_v21  ;;  %v4425_v25 = vpop.f32.mrb[15].mxu1  ;;  %v4724_v21 = vld [vmem:[#allocation7 + $0x4] ss:$8 sps:$4 sm:$0xff]   ;;  %v4722_v23 = vld [vmem:[#allocation7] ss:$8 sps:$4 sm:$0xff]  }
 0x4a8   :  { %v782_v26 = vpop.f32.mrb[8].mxu0 }
 0x4a9   :  { %v4442_v27 = vpop.f32.mrb[9].mxu0  ;;  %v791_v43 = vmul.f32 0.17677669, %v782_v26 }
 0x4aa   :  { %v785_v28 = vpop.f32.mrb[10].mxu0 }
 0x4ab   :  { %v5364_v29 = vpop.f32.mrb[16].mxu1  ;;  %v4443_v30 = vpop.f32.mrb[11].mxu0  ;;  %v792_v39 = vmul.f32 0.17677669, %v785_v28  ;;  %v799_v48 = vsel %vm546_vm2, %v791_v43, -inf }
 0x4ac   :  { %v4430_v31 = vpop.f32.mrb[17].mxu1 }
 0x4ad   :  { %v5366_v32 = vpop.f32.mrb[18].mxu1  ;;  %v802_v47 = vsel %vm546_vm2, %v792_v39, -inf }
 0x4ae   :  { %v682_v33 = vpack.c.bf16 %v5366_v32, %v5364_v29  ;;  %v4431_v34 = vpop.f32.mrb[19].mxu1  ;;  %v4730_v29 = vld [vmem:[#allocation7 + $0x24] ss:$8 sps:$4 sm:$0xff]   ;;  %v4728_v32 = vld [vmem:[#allocation7 + $0x20] ss:$8 sps:$4 sm:$0xff]  }
 0x4b3   :  { %v729_v35 = vpop.f32.mrb[20].mxu1 }
 0x4b4   :  { %v789_v36 = vmul.f32 0.17677669, %v729_v35  ;;  %v4436_v37 = vpop.f32.mrb[21].mxu1 }
 0x4b5   :  { %v732_v38 = vpop.f32.mrb[22].mxu1 }
 0x4b6   :  { %v790_v40 = vmul.f32 0.17677669, %v732_v38  ;;  %v4437_v41 = vpop.f32.mrb[23].mxu1  ;;  %v793_v42 = vsel %vm546_vm2, %v789_v36, -inf }
 0x4b7   :  { %794 = vmax.xlane.f32.xlu1 %v793_v42 }
 0x4b8   :  { %v796_v46 = vsel %vm546_vm2, %v790_v40, -inf }
 0x4b9   :  { %797 = vmax.xlane.f32.xlu0 %v796_v46 }
 0x4bb   :  { %803 = vmax.xlane.f32.xlu1 %v802_v47 }
 0x4bd   :  { %800 = vmax.xlane.f32.xlu0 %v799_v48 }
 0x544   :  { %v795_v49 = vpop.xlane.xlu1 %794 }
 0x545   :  { %v805_v4 = vsub.f32 %v789_v36, %v795_v49 }
 0x546   :  { %v798_v50 = vpop.xlane.xlu0 %797 }
 0x547   :  { %v806_v3 = vsub.f32 %v790_v40, %v798_v50  ;;  %v809_v6 = vmul.f32 1.442695, %v805_v4 }
 0x548   :  { %v804_v51 = vpop.xlane.xlu1 %803 }
 0x549   :  { %v808_v52 = vsub.f32 %v792_v39, %v804_v51  ;;  %v811_v5 = vmul.f32 1.442695, %v806_v3 }
 0x54a   :  { %v801_v53 = vpop.xlane.xlu0 %800 }
 0x54b   :  { %v815_v54 = vmul.f32 1.442695, %v808_v52  ;;  %v807_v55 = vsub.f32 %v791_v43, %v801_v53 }
 0x54d   :  { %4858 = vpow2.f32 %v815_v54  ;;  %v813_v58 = vmul.f32 1.442695, %v807_v55 }
 0x54f   :  { %4860 = vpow2.f32 %v813_v58 }
 0x550   :  { %4862 = vpow2.f32 %v811_v5 }
 0x551   :  { %4864 = vpow2.f32 %v809_v6 }
 0x557   :  { %v4859_v60 = vpop.eup %4858 }
 0x558   :  { %v826_v61 = vsel %vm546_vm2, %v4859_v60, 0.0 }
 0x559   :  { %v4861_v62 = vpop.eup %4860  ;;  %827 = vadd.xlane.f32.xlu1 %v826_v61 }
 0x55a   :  { %v823_v0 = vsel %vm546_vm2, %v4861_v62, 0.0  ;;  %v4863_v7 = vpop.eup %4862 }
 0x55b   :  { %824 = vadd.xlane.f32.xlu0 %v823_v0  ;;  %v4865_v8 = vpop.eup %4864  ;;  %v820_v9 = vsel %vm546_vm2, %v4863_v7, 0.0 }
 0x55c   :  { %v817_v12 = vsel %vm546_vm2, %v4865_v8, 0.0 }
 0x56a   :  { %888 = vrot.lane.b32.xlu1 %v5305_v11, %s5118_s1 }
 0x571   :  { %840 = vrot.lane.b32.xlu0 %v5309_v15, %s5118_s1 }
 0x58e   :  { %821 = vadd.xlane.f32.xlu1 %v820_v9 }
 0x590   :  { %818 = vadd.xlane.f32.xlu0 %v817_v12 }
 0x59f   :  { %939 = vrot.lane.b32.xlu1 %v5298_v2, %s5105_s23 }
 0x5a3   :  { %937 = vrot.lane.b32.xlu1 %v5296_v63, %s5105_s23 }
 0x5a6   :  { %990 = vrot.lane.b32.xlu0 %v5307_v14, %s5105_s23 }
 0x5aa   :  { %988 = vrot.lane.b32.xlu0 %v5303_v10, %s5105_s23 }
 0x5e6   :  { %v828_v13 = vpop.xlane.xlu1 %827 }
 0x5e7   :  { %4866 = vrcp.f32 %v828_v13 }
 0x5e8   :  { %v825_v16 = vpop.xlane.xlu0 %824 }
 0x5e9   :  { %4868 = vrcp.f32 %v825_v16 }
 0x5ea   :  { %v889_v17 = vpop.permute.xlu1 %888 }
 0x5eb   :  { %4451 = vmatpush3.bf16.msra.mxu0 %v889_v17 }
 0x5ec   :  { %v841_v18 = vpop.permute.xlu0 %840  ;;  %4462 = vmatprep.subr.bf16.mxu0 %v5116_v59 }
 0x5ed   :  { %4445 = vmatpush3.bf16.msra.mxu1 %v841_v18 }
 0x5ee   :  { %4456 = vmatprep.subr.bf16.mxu1 %v5116_v59 }
 0x5f1   :  { %v4867_v19 = vpop.eup %4866 }
 0x5f2   :  { %v836_v22 = vmul.f32 %v4867_v19, %v4859_v60 }
 0x5f3   :  { %v4869_v20 = vpop.eup %4868 }
 0x5f4   :  { %v835_v25 = vmul.f32 %v4869_v20, %v4861_v62 }
 0x5f6   :  { %v838_v26 = vpack.c.bf16 %v836_v22, %v835_v25 }
 0x5f8   :  { %4453 = vmatmul.mubr.msk.bf16.vlgmr.msra.gmra.mrb[12].mxu0 %vm546_vm2, %v838_v26 }
 0x5f9   :  { %4464 = vmatprep.mubr.msk.bf16.mxu0 %vm5117_vm0, %v5116_v59 }
 0x61b   :  { %v822_v27 = vpop.xlane.xlu1 %821 }
 0x61c   :  { %4870 = vrcp.f32 %v822_v27 }
 0x61d   :  { %v819_v28 = vpop.xlane.xlu0 %818 }
 0x61e   :  { %4872 = vrcp.f32 %v819_v28 }
 0x61f   :  { %v940_v39 = vpop.permute.xlu1 %939 }
 0x620   :  { %v945_v41 = vsel %vm447_vm1, %v940_v39, 0 }
 0x621   :  { %v991_v30 = vpop.permute.xlu0 %990 }
 0x622   :  { %v996_v31 = vsel %vm447_vm1, %v991_v30, 0 }
 0x623   :  { %4463 = vmatpush3.bf16.xpose.msra.mxu0 %v996_v31  ;;  %v938_v42 = vpop.permute.xlu1 %937 }
 0x624   :  { %4474 = vmatprep.subr.bf16.mxu0 %v5116_v59 }
 0x625   :  { %v989_v38 = vpop.permute.xlu0 %988 }
 0x626   :  { %v4871_v34 = vpop.eup %4870 }
 0x627   :  { %v834_v36 = vmul.f32 %v4871_v34, %v4863_v7 }
 0x628   :  { %v4873_v35 = vpop.eup %4872 }
 0x629   :  { %v833_v37 = vmul.f32 %v4873_v35, %v4865_v8 }
 0x62a   :  { %4465 = vmatmul.mubr.msk.bf16.vlgmr.msra.gmra.mrb[16].mxu0 %vm447_vm1, %v989_v38 }
 0x62b   :  { %v837_v40 = vpack.c.bf16 %v834_v36, %v833_v37  ;;  %4476 = vmatprep.mubr.msk.bf16.mxu0 %vm5117_vm0, %v5116_v59 }
 0x62d   :  { %4447 = vmatmul.mubr.msk.bf16.vlgmr.msra.gmra.mrb[24].mxu1 %vm546_vm2, %v837_v40 }
 0x62e   :  { %4457 = vmatpush3.bf16.xpose.msra.mxu1 %v945_v41  ;;  %4458 = vmatprep.mubr.msk.bf16.mxu1 %vm5117_vm0, %v5116_v59 }
 0x62f   :  { %4468 = vmatprep.subr.bf16.mxu1 %v5116_v59 }
 0x635   :  { %4459 = vmatmul.mubr.msk.bf16.vlgmr.msra.gmra.mrb[28].mxu1 %vm447_vm1, %v938_v42 }
 0x636   :  { %4470 = vmatprep.mubr.msk.bf16.mxu1 %vm5117_vm0, %v5116_v59 }
 0x6cb   :  { %v5408_v43 = vpop.f32.mrb[12].mxu0 }
 0x6cc   :  { %v4454_v46 = vpop.f32.mrb[13].mxu0 }
 0x6cd   :  { %v5410_v47 = vpop.f32.mrb[14].mxu0 }
 0x6ce   :  { %v936_v48 = vpack.c.bf16 %v5410_v47, %v5408_v43  ;;  %v4455_v49 = vpop.f32.mrb[15].mxu0 }
 0x6fd   :  { %v1032_v50 = vpop.f32.mrb[16].mxu0 }
 0x6fe   :  { %v4466_v51 = vpop.f32.mrb[17].mxu0  ;;  %v1041_v9 = vmul.f32 0.17677669, %v1032_v50 }
 0x6ff   :  { %v1035_v52 = vpop.f32.mrb[18].mxu0 }
 0x700   :  { %v5414_v53 = vpop.f32.mrb[24].mxu1  ;;  %v4467_v54 = vpop.f32.mrb[19].mxu0  ;;  %v1042_v5 = vmul.f32 0.17677669, %v1035_v52  ;;  %v1049_v16 = vsel %vm546_vm2, %v1041_v9, -inf }
 0x701   :  { %v4448_v55 = vpop.f32.mrb[25].mxu1 }
 0x702   :  { %v5416_v58 = vpop.f32.mrb[26].mxu1  ;;  %v1052_v13 = vsel %vm546_vm2, %v1042_v5, -inf }
 0x703   :  { %v935_v60 = vpack.c.bf16 %v5416_v58, %v5414_v53  ;;  %v4449_v61 = vpop.f32.mrb[27].mxu1 }
 0x708   :  { %v981_v62 = vpop.f32.mrb[28].mxu1 }
 0x709   :  { %v1039_v0 = vmul.f32 0.17677669, %v981_v62  ;;  %v4460_v3 = vpop.f32.mrb[29].mxu1 }
 0x70a   :  { %v984_v4 = vpop.f32.mrb[30].mxu1 }
 0x70b   :  { %v1040_v6 = vmul.f32 0.17677669, %v984_v4  ;;  %v4461_v7 = vpop.f32.mrb[31].mxu1  ;;  %v1043_v8 = vsel %vm546_vm2, %v1039_v0, -inf }
 0x70c   :  { %1044 = vmax.xlane.f32.xlu1 %v1043_v8 }
 0x70d   :  { %v1046_v12 = vsel %vm546_vm2, %v1040_v6, -inf }
 0x70e   :  { %1047 = vmax.xlane.f32.xlu0 %v1046_v12 }
 0x710   :  { %1053 = vmax.xlane.f32.xlu1 %v1052_v13 }
 0x712   :  { %1050 = vmax.xlane.f32.xlu0 %v1049_v16 }
 0x799   :  { %v1045_v17 = vpop.xlane.xlu1 %1044 }
 0x79a   :  { %v1055_v36 = vsub.f32 %v1039_v0, %v1045_v17 }
 0x79b   :  { %v1048_v18 = vpop.xlane.xlu0 %1047 }
 0x79c   :  { %v1056_v35 = vsub.f32 %v1040_v6, %v1048_v18  ;;  %v1059_v38 = vmul.f32 1.442695, %v1055_v36 }
 0x79d   :  { %v1054_v19 = vpop.xlane.xlu1 %1053 }
 0x79e   :  { %v1058_v20 = vsub.f32 %v1042_v5, %v1054_v19  ;;  %v1061_v37 = vmul.f32 1.442695, %v1056_v35 }
 0x79f   :  { %v1051_v22 = vpop.xlane.xlu0 %1050 }
 0x7a0   :  { %v1065_v25 = vmul.f32 1.442695, %v1058_v20  ;;  %v1057_v26 = vsub.f32 %v1041_v9, %v1051_v22 }
 0x7a2   :  { %4874 = vpow2.f32 %v1065_v25  ;;  %v1063_v27 = vmul.f32 1.442695, %v1057_v26 }
 0x7a4   :  { %4876 = vpow2.f32 %v1063_v27 }
 0x7a5   :  { %4878 = vpow2.f32 %v1061_v37 }
 0x7a6   :  { %4880 = vpow2.f32 %v1059_v38 }
 0x7ac   :  { %v4875_v28 = vpop.eup %4874 }
 0x7ad   :  { %v1076_v30 = vsel %vm546_vm2, %v4875_v28, 0.0 }
 0x7ae   :  { %v4877_v31 = vpop.eup %4876  ;;  %1077 = vadd.xlane.f32.xlu1 %v1076_v30 }
 0x7af   :  { %v1073_v34 = vsel %vm546_vm2, %v4877_v31, 0.0  ;;  %v4879_v39 = vpop.eup %4878 }
 0x7b0   :  { %1074 = vadd.xlane.f32.xlu0 %v1073_v34  ;;  %v4881_v40 = vpop.eup %4880  ;;  %v1070_v41 = vsel %vm546_vm2, %v4879_v39, 0.0 }
 0x7b1   :  { %v1067_v42 = vsel %vm546_vm2, %v4881_v40, 0.0 }
 0x7bf   :  { %1136 = vrot.lane.b32.xlu1 %v5305_v11, %s5105_s23 }
 0x7c6   :  { %1089 = vrot.lane.b32.xlu0 %v5309_v15, %s5105_s23 }
 0x7e3   :  { %1071 = vadd.xlane.f32.xlu1 %v1070_v41 }
 0x7e5   :  { %1068 = vadd.xlane.f32.xlu0 %v1067_v42 }
 0x7f4   :  { %1187 = vrot.lane.b32.xlu1 %v5298_v2, %s5119_s2 }
 0x7f8   :  { %1185 = vrot.lane.b32.xlu1 %v5296_v63, %s5119_s2 }
 0x7fb   :  { %1238 = vrot.lane.b32.xlu0 %v5307_v14, %s5119_s2 }
 0x7ff   :  { %1236 = vrot.lane.b32.xlu0 %v5303_v10, %s5119_s2 }
 0x83b   :  { %v1078_v46 = vpop.xlane.xlu1 %1077 }
 0x83c   :  { %4882 = vrcp.f32 %v1078_v46 }
 0x83d   :  { %v1075_v49 = vpop.xlane.xlu0 %1074 }
 0x83e   :  { %4884 = vrcp.f32 %v1075_v49 }
 0x83f   :  { %v1137_v50 = vpop.permute.xlu1 %1136 }
 0x840   :  { %4475 = vmatpush3.bf16.msra.mxu0 %v1137_v50 }
 0x841   :  { %v1090_v51 = vpop.permute.xlu0 %1089  ;;  %4486 = vmatprep.subr.bf16.mxu0 %v5116_v59 }
 0x842   :  { %4469 = vmatpush3.bf16.msra.mxu1 %v1090_v51 }
 0x843   :  { %4480 = vmatprep.subr.bf16.mxu1 %v5116_v59 }
 0x846   :  { %v4883_v2 = vpop.eup %4882 }
 0x847   :  { %v1086_v52 = vmul.f32 %v4883_v2, %v4875_v28 }
 0x848   :  { %v4885_v63 = vpop.eup %4884 }
 0x849   :  { %v1085_v54 = vmul.f32 %v4885_v63, %v4877_v31 }
 0x84b   :  { %v1088_v14 = vpack.c.bf16 %v1086_v52, %v1085_v54 }
 0x84d   :  { %4477 = vmatmul.mubr.msk.bf16.vlgmr.msra.gmra.mrb[20].mxu0 %vm546_vm2, %v1088_v14 }
 0x84e   :  { %4488 = vmatprep.mubr.msk.bf16.mxu0 %vm5117_vm0, %v5116_v59 }
 0x870   :  { %v1072_v10 = vpop.xlane.xlu1 %1071 }
 0x871   :  { %4886 = vrcp.f32 %v1072_v10 }
 0x872   :  { %v1069_v55 = vpop.xlane.xlu0 %1068 }
 0x873   :  { %4888 = vrcp.f32 %v1069_v55 }
 0x874   :  { %v1188_v7 = vpop.permute.xlu1 %1187 }
 0x875   :  { %v1193_v9 = vsel %vm447_vm1, %v1188_v7, 0 }
 0x876   :  { %v1239_v61 = vpop.permute.xlu0 %1238 }
 0x877   :  { %v1244_v62 = vsel %vm447_vm1, %v1239_v61, 0 }
 0x878   :  { %4487 = vmatpush3.bf16.xpose.msra.mxu0 %v1244_v62  ;;  %v1186_v12 = vpop.permute.xlu1 %1185 }
 0x879   :  { %4498 = vmatprep.subr.bf16.mxu0 %v5116_v59 }
 0x87a   :  { %v1237_v6 = vpop.permute.xlu0 %1236 }
 0x87b   :  { %v4887_v0 = vpop.eup %4886 }
 0x87c   :  { %v1084_v4 = vmul.f32 %v4887_v0, %v4879_v39 }
 0x87d   :  { %v4889_v3 = vpop.eup %4888 }
 0x87e   :  { %v1083_v5 = vmul.f32 %v4889_v3, %v4881_v40 }
 0x87f   :  { %4489 = vmatmul.mubr.msk.bf16.vlgmr.msra.gmra.mrb[24].mxu0 %vm447_vm1, %v1237_v6 }
 0x880   :  { %v1087_v8 = vpack.c.bf16 %v1084_v4, %v1083_v5  ;;  %4500 = vmatprep.mubr.msk.bf16.mxu0 %vm5117_vm0, %v5116_v59 }
 0x882   :  { %4471 = vmatmul.mubr.msk.bf16.vlgmr.msra.gmra.mrb[32].mxu1 %vm546_vm2, %v1087_v8 }
 0x883   :  { %4481 = vmatpush3.bf16.xpose.msra.mxu1 %v1193_v9  ;;  %4482 = vmatprep.mubr.msk.bf16.mxu1 %vm5117_vm0, %v5116_v59 }
 0x884   :  { %4492 = vmatprep.subr.bf16.mxu1 %v5116_v59 }
 0x88a   :  { %4483 = vmatmul.mubr.msk.bf16.vlgmr.msra.gmra.mrb[36].mxu1 %vm447_vm1, %v1186_v12 }
 0x88b   :  { %4494 = vmatprep.mubr.msk.bf16.mxu1 %vm5117_vm0, %v5116_v59 }
 0x920   :  { %v5458_v13 = vpop.f32.mrb[20].mxu0 }
 0x921   :  { %v4478_v16 = vpop.f32.mrb[21].mxu0 }
 0x922   :  { %v1179_v17 = vpop.f32.mrb[22].mxu0 }
 0x923   :  { %v1184_v18 = vpack.c.bf16 %v1179_v17, %v5458_v13  ;;  %v4479_v19 = vpop.f32.mrb[23].mxu0 }
 0x952   :  { %v1280_v20 = vpop.f32.mrb[24].mxu0 }
 0x953   :  { %v4490_v22 = vpop.f32.mrb[25].mxu0  ;;  %v1289_v46 = vmul.f32 0.17677669, %v1280_v20 }
 0x954   :  { %v1283_v25 = vpop.f32.mrb[26].mxu0 }
 0x955   :  { %v1129_v26 = vpop.f32.mrb[32].mxu1  ;;  %v4491_v27 = vpop.f32.mrb[27].mxu0  ;;  %v1290_v39 = vmul.f32 0.17677669, %v1283_v25  ;;  %v1297_v51 = vsel %vm546_vm2, %v1289_v46, -inf }
 0x956   :  { %v4472_v28 = vpop.f32.mrb[33].mxu1 }
 0x957   :  { %v1132_v30 = vpop.f32.mrb[34].mxu1  ;;  %v1300_v50 = vsel %vm546_vm2, %v1290_v39, -inf  ;;  %v4714_v28 = vld [vmem:[#allocation5] sm:$0xff]  }
 0x958   :  { %v1183_v31 = vpack.c.bf16 %v1132_v30, %v1129_v26  ;;  %v4473_v34 = vpop.f32.mrb[35].mxu1  ;;  %v4715_v30 = vld [vmem:[#allocation5 + $0x8] sm:$0xff]  }
 0x959   :  { %v4717_v34 = vld [vmem:[#allocation5 + $0x18] sm:$0xff]  }
 0x95d   :  { %v1229_v35 = vpop.f32.mrb[36].mxu1 }
 0x95e   :  { %v1287_v36 = vmul.f32 0.17677669, %v1229_v35  ;;  %v4484_v37 = vpop.f32.mrb[37].mxu1  ;;  %v4718_v35 = vld [vmem:[#allocation5 + $0x20] sm:$0xff]  }
 0x95f   :  { %v1232_v38 = vpop.f32.mrb[38].mxu1  ;;  %v4720_v37 = vld [vmem:[#allocation5 + $0x30] sm:$0xff]  }
 0x960   :  { %v1288_v40 = vmul.f32 0.17677669, %v1232_v38  ;;  %v4485_v41 = vpop.f32.mrb[39].mxu1  ;;  %v1291_v42 = vsel %vm546_vm2, %v1287_v36, -inf  ;;  %v4721_v38 = vld [vmem:[#allocation5 + $0x38] sm:$0xff]  }
 0x961   :  { %1292 = vmax.xlane.f32.xlu1 %v1291_v42 }
 0x962   :  { %v1294_v49 = vsel %vm546_vm2, %v1288_v40, -inf }
 0x963   :  { %1295 = vmax.xlane.f32.xlu0 %v1294_v49 }
 0x965   :  { %1301 = vmax.xlane.f32.xlu1 %v1300_v50 }
 0x967   :  { %1298 = vmax.xlane.f32.xlu0 %v1297_v51 }
 0x9ee   :  { %v1293_v2 = vpop.xlane.xlu1 %1292 }
 0x9ef   :  { %v1303_v14 = vsub.f32 %v1287_v36, %v1293_v2  ;;  %v4719_v36 = vld [vmem:[#allocation5 + $0x28] sm:$0xff]  }
 0x9f0   :  { %v1296_v63 = vpop.xlane.xlu0 %1295 }
 0x9f1   :  { %v1304_v52 = vsub.f32 %v1288_v40, %v1296_v63  ;;  %v1307_v3 = vmul.f32 1.442695, %v1303_v14 }
 0x9f2   :  { %v1302_v54 = vpop.xlane.xlu1 %1301 }
 0x9f3   :  { %v1306_v10 = vsub.f32 %v1290_v39, %v1302_v54  ;;  %v1309_v55 = vmul.f32 1.442695, %v1304_v52 }
 0x9f4   :  { %v1299_v61 = vpop.xlane.xlu0 %1298 }
 0x9f5   :  { %v1313_v62 = vmul.f32 1.442695, %v1306_v10  ;;  %v1305_v0 = vsub.f32 %v1289_v46, %v1299_v61 }
 0x9f7   :  { %4890 = vpow2.f32 %v1313_v62  ;;  %v1311_v4 = vmul.f32 1.442695, %v1305_v0 }
 0x9f8   :  { %4892 = vpow2.f32 %v1309_v55 }
 0x9f9   :  { %4894 = vpow2.f32 %v1311_v4 }
 0x9fa   :  { %4896 = vpow2.f32 %v1307_v3 }
 0xa01   :  { %v4891_v5 = vpop.eup %4890 }
 0xa02   :  { %v4893_v6 = vpop.eup %4892  ;;  %v1324_v7 = vsel %vm546_vm2, %v4891_v5, 0.0 }
 0xa03   :  { %v4895_v8 = vpop.eup %4894  ;;  %1325 = vadd.xlane.f32.xlu1 %v1324_v7  ;;  %v1318_v13 = vsel %vm546_vm2, %v4893_v6, 0.0  ;;  %v4725_v7 = vld [vmem:[#allocation7 + $0x10] ss:$8 sps:$4 sm:$0xff]  }
 0xa04   :  { %v1321_v9 = vsel %vm546_vm2, %v4895_v8, 0.0  ;;  %v4897_v12 = vpop.eup %4896 }
 0xa05   :  { %1322 = vadd.xlane.f32.xlu0 %v1321_v9  ;;  %v1315_v16 = vsel %vm546_vm2, %v4897_v12, 0.0  ;;  %v4736_v9 = vld [vmem:[#allocation7 + $0x44] ss:$8 sps:$4 sm:$0xff]  }
 0xa07   :  { %1319 = vadd.xlane.f32.xlu1 %v1318_v13  ;;  %v4739_v13 = vld [vmem:[#allocation7 + $0x54] ss:$8 sps:$4 sm:$0xff]  }
 0xa09   :  { %1316 = vadd.xlane.f32.xlu0 %v1315_v16  ;;  %v4737_v16 = vld [vmem:[#allocation7 + $0x50] ss:$8 sps:$4 sm:$0xff]  }
 0xa18   :  { %1384 = vrot.lane.b32.xlu1 %v5305_v11, %s5119_s2 }
 0xa1c   :  { %1435 = vrot.lane.b32.xlu1 %v935_v60, %s5119_s2 }
 0xa1f   :  { %1337 = vrot.lane.b32.xlu0 %v5309_v15, %s5119_s2 }
 0xa20   :  { %1441 = vrot.lane.b32.xlu1 %v1183_v31, %s5105_s23  ;;  %v4716_v31 = vld [vmem:[#allocation5 + $0x10] sm:$0xff]  }
 0xa23   :  { %1437 = vrot.lane.b32.xlu0 %v936_v48, %s5119_s2 }
 0xa27   :  { %1443 = vrot.lane.b32.xlu0 %v1184_v18, %s5105_s23 }
 0xa90   :  { %v1326_v17 = vpop.xlane.xlu1 %1325 }
 0xa91   :  { %4898 = vrcp.f32 %v1326_v17  ;;  %v4742_v17 = vld [vmem:[#allocation7 + $0x64] ss:$8 sps:$4 sm:$0xff]  }
 0xa92   :  { %v1323_v11 = vpop.xlane.xlu0 %1322 }
 0xa93   :  { %4900 = vrcp.f32 %v1323_v11  ;;  %v4740_v11 = vld [vmem:[#allocation7 + $0x60] ss:$8 sps:$4 sm:$0xff]  }
 0xa94   :  { %v1320_v19 = vpop.xlane.xlu1 %1319 }
 0xa95   :  { %4902 = vrcp.f32 %v1320_v19  ;;  %v4743_v19 = vld [vmem:[#allocation7 + $0x70] ss:$8 sps:$4 sm:$0xff]  }
 0xa96   :  { %v1317_v53 = vpop.xlane.xlu0 %1316 }
 0xa97   :  { %4904 = vrcp.f32 %v1317_v53  ;;  %v4745_v53 = vld [vmem:[#allocation7 + $0x74] ss:$8 sps:$4 sm:$0xff]  }
 0xa98   :  { %v1385_v58 = vpop.permute.xlu1 %1384 }
 0xa99   :  { %4499 = vmatpush3.bf16.msra.mxu0 %v1385_v58  ;;  %v4746_v58 = vld [vmem:[#allocation8 + $0x40] sm:$0xff]  }
 0xa9a   :  { %v1338_v15 = vpop.permute.xlu0 %1337  ;;  %1774 = vmatprep.subr.bf16.mxu0 %v4724_v21 }
 0xa9b   :  { %v4899_v60 = vpop.eup %4898  ;;  %4493 = vmatpush3.bf16.msra.mxu1 %v1338_v15  ;;  %v4747_v15 = vld [vmem:[#allocation8] sm:$0xff]  }
 0xa9c   :  { %v1334_v22 = vmul.f32 %v4899_v60, %v4891_v5  ;;  %4504 = vmatprep.subr.bf16.mxu1 %v4714_v28  ;;  %v1436_v54 = vpop.permute.xlu1 %1435  ;;  %v4748_v60 = vld [vmem:[#allocation8 + $0x48] sm:$0xff]  }
 0xa9d   :  { %v4901_v20 = vpop.eup %4900  ;;  %v1453_v55 = vsel %vm447_vm1, %v681_v24, %v1436_v54  ;;  %v4727_v24 = vld [vmem:[#allocation7 + $0x14] ss:$8 sps:$4 sm:$0xff]  }
 0xa9e   :  { %v1333_v25 = vmul.f32 %v4901_v20, %v4895_v8  ;;  %v1438_v52 = vpop.permute.xlu0 %1437  ;;  %v4731_v8 = vld [vmem:[#allocation7 + $0x30] ss:$8 sps:$4 sm:$0xff]   ;;  %v4749_v20 = vld [vmem:[#allocation8 + $0x8] sm:$0xff]  }
 0xa9f   :  { %v4903_v43 = vpop.eup %4902  ;;  %v1456_v62 = vsel %vm447_vm1, %v682_v33, %v1438_v52  ;;  %v4733_v33 = vld [vmem:[#allocation7 + $0x34] ss:$8 sps:$4 sm:$0xff]  }
 0xaa0   :  { %v1336_v47 = vpack.c.bf16 %v1334_v22, %v1333_v25  ;;  %v1332_v18 = vmul.f32 %v4903_v43, %v4893_v6  ;;  %v1442_v10 = vpop.permute.xlu1 %1441  ;;  %v4750_v22 = vld [vmem:[#allocation8 + $0x50] sm:$0xff]   ;;  %v4752_v43 = vld [vmem:[#allocation8 + $0x58] sm:$0xff]  }
 0xaa1   :  { %v4905_v48 = vpop.eup %4904  ;;  %v1459_v0 = vsel %vm1457_vm3, %v1453_v55, %v1442_v10  ;;  %v4751_v25 = vld [vmem:[#allocation8 + $0x10] sm:$0xff]  }
 0xaa2   :  { %v1331_v26 = vmul.f32 %v4905_v48, %v4897_v12  ;;  %4501 = vmatmul.mubr.msk.bf16.vlgmr.msra.gmra.mrb[28].mxu0 %vm546_vm2, %v1336_v47  ;;  %v1444_v14 = vpop.permute.xlu0 %1443  ;;  %v4734_v12 = vld [vmem:[#allocation7 + $0x40] ss:$8 sps:$4 sm:$0xff]   ;;  %v4753_v47 = vld [vmem:[#allocation8 + $0x18] sm:$0xff]  }
 0xaa3   :  { %1806 = vmatprep.mubr.bf16.mxu0 %v5115_v1  ;;  %v1461_v4 = vsel %vm1457_vm3, %v1456_v62, %v1444_v14  ;;  %1775 = vmatpush1.bf16.msra.mxu0 %v4722_v23  ;;  %v4754_v48 = vld [vmem:[#allocation8 + $0x60] sm:$0xff]  }
 0xaa4   :  { %v1335_v27 = vpack.c.bf16 %v1332_v18, %v1331_v26  ;;  %1776 = vmatprep.subr.bf16.mxu0 %v4727_v24  ;;  %v4755_v18 = vld [vmem:[#allocation8 + $0x20] sm:$0xff]   ;;  %v4756_v26 = vld [vmem:[#allocation8 + $0x68] sm:$0xff]  }
 0xaa6   :  { %4495 = vmatmul.mubr.msk.bf16.vlgmr.msra.gmra.mrb[40].mxu1 %vm546_vm2, %v1335_v27  ;;  %v4089_v27 = vld [vmem:[%s5837_s5] ss:$0 sm:$0xff] }
 0xaa7   :  { %4505 = vmatpush3.bf16.msra.mxu1 %v4714_v28  ;;  %1777 = vmatpush1.bf16.msra.mxu0 %v4725_v7 }
 0xaa8   :  { %4506 = vmatprep.subr.bf16.mxu1 %v4715_v30  ;;  %1778 = vmatprep.subr.bf16.mxu0 %v4730_v29 }
 0xaab   :  { %4507 = vmatpush3.bf16.msra.mxu1 %v4715_v30  ;;  %1779 = vmatpush1.bf16.msra.mxu0 %v4728_v32 }
 0xaac   :  { %4508 = vmatprep.subr.bf16.mxu1 %v4716_v31  ;;  %1780 = vmatprep.subr.bf16.mxu0 %v4733_v33 }
 0xaaf   :  { %4509 = vmatpush3.bf16.msra.mxu1 %v4716_v31  ;;  %1781 = vmatpush1.bf16.msra.mxu0 %v4731_v8 }
 0xab0   :  { %4510 = vmatprep.subr.bf16.mxu1 %v4717_v34  ;;  %1782 = vmatprep.subr.bf16.mxu0 %v4736_v9 }
 0xab3   :  { %4511 = vmatpush3.bf16.msra.mxu1 %v4717_v34  ;;  %1783 = vmatpush1.bf16.msra.mxu0 %v4734_v12 }
 0xab4   :  { %4512 = vmatprep.subr.bf16.mxu1 %v4718_v35  ;;  %1784 = vmatprep.subr.bf16.mxu0 %v4739_v13 }
 0xab7   :  { %4513 = vmatpush3.bf16.msra.mxu1 %v4718_v35  ;;  %1785 = vmatpush1.bf16.msra.mxu0 %v4737_v16 }
 0xab8   :  { %4514 = vmatprep.subr.bf16.mxu1 %v4719_v36  ;;  %1786 = vmatprep.subr.bf16.mxu0 %v4742_v17 }
 0xabb   :  { %4515 = vmatpush3.bf16.msra.mxu1 %v4719_v36  ;;  %1787 = vmatpush1.bf16.msra.mxu0 %v4740_v11 }
 0xabc   :  { %4516 = vmatprep.subr.bf16.mxu1 %v4720_v37  ;;  %1788 = vmatprep.subr.bf16.mxu0 %v4745_v53 }
 0xabf   :  { %4517 = vmatpush3.bf16.msra.mxu1 %v4720_v37  ;;  %1789 = vmatpush1.bf16.msra.mxu0 %v4743_v19 }
 0xac0   :  { %4518 = vmatprep.subr.bf16.mxu1 %v4721_v38 }
 0xac3   :  { %4519 = vmatpush3.bf16.msra.mxu1 %v4721_v38 }
 0xac4   :  { %4280 = vmatprep.subr.bf16.mxu1 %v4746_v58 }
 0xb75   :  { %v1424_v39 = vpop.f32.mrb[28].mxu0 }
 0xb76   :  { %v4502_v40 = vpop.f32.mrb[29].mxu0 }
 0xb77   :  { %v1427_v41 = vpop.f32.mrb[30].mxu0 }
 0xb78   :  { %v1432_v42 = vpack.c.bf16 %v1427_v41, %v1424_v39  ;;  %v4503_v46 = vpop.f32.mrb[31].mxu0 }
 0xb79   :  { %v1377_v49 = vpop.f32.mrb[40].mxu1 }
 0xb7a   :  { %1449 = vrot.lane.b32.xlu0 %v1432_v42, %s5118_s1  ;;  %v4496_v50 = vpop.f32.mrb[41].mxu1 }
 0xb7b   :  { %v1380_v51 = vpop.f32.mrb[42].mxu1 }
 0xb7c   :  { %v1431_v2 = vpack.c.bf16 %v1380_v51, %v1377_v49  ;;  %v4497_v63 = vpop.f32.mrb[43].mxu1 }
 0xb7e   :  { %1447 = vrot.lane.b32.xlu1 %v1431_v2, %s5118_s1 }
 0xbec   :  { %v1450_v61 = vpop.permute.xlu0 %1449 }
 0xbed   :  { %v1467_v6 = vsel %vm1462_vm4, %v1461_v4, %v1450_v61 }
 0xbf0   :  { %v1448_v3 = vpop.permute.xlu1 %1447 }
 0xbf1   :  { %v1464_v5 = vsel %vm1462_vm4, %v1459_v0, %v1448_v3 }
 0xbf2   :  { %4520 = vmatprep.mubr.bf16.mxu1 %v1464_v5 }
 0xbf3   :  { %4521 = vmatmul.mubr.bf16.vlgmr.msra.gmra.mrb[44].mxu1 %v1467_v6 }
 0xbf4   :  { %4281 = vmatpush3.bf16.msra.mxu1 %v4747_v15 }
 0xbf5   :  { %4282 = vmatprep.subr.bf16.mxu1 %v4748_v60 }
 0xbf8   :  { %4283 = vmatpush3.bf16.msra.mxu1 %v4749_v20 }
 0xbf9   :  { %4284 = vmatprep.subr.bf16.mxu1 %v4750_v22 }
 0xbfc   :  { %4285 = vmatpush3.bf16.msra.mxu1 %v4751_v25 }
 0xbfd   :  { %4286 = vmatprep.subr.bf16.mxu1 %v4752_v43 }
 0xc00   :  { %4287 = vmatpush3.bf16.msra.mxu1 %v4753_v47  ;;  %v4098_v47 = vld [vmem:[%s5838_s6] ss:$0 sm:$0xff] }
 0xc01   :  { %4288 = vmatprep.subr.bf16.mxu1 %v4754_v48 }
 0xc04   :  { %4289 = vmatpush3.bf16.msra.mxu1 %v4755_v18 }
 0xc05   :  { %4290 = vmatprep.subr.bf16.mxu1 %v4756_v26 }
 0xcc6   :  { %v4522_v28 = vpop.f32.mrb[44].mxu1 }
 0xcc7   :  { %v1583_v30 = vadd.f32 %v4522_v28, %v4089_v27  ;;  %v1574_v31 = vpop.f32.mrb[45].mxu1 }
 0xcc8   :  { %v1575_v34 = vadd.f32 %v4089_v27, %v1574_v31  ;;  %v4523_v35 = vpop.f32.mrb[46].mxu1 }
 0xcc9   :  { %v1586_v36 = vadd.f32 %v4523_v35, %v4089_v27  ;;  %v1577_v37 = vpop.f32.mrb[47].mxu1  ;;  %v1593_v39 = vadd.f32 %v1583_v30, %v5284_v56 }
 0xcca   :  { %v1578_v38 = vadd.f32 %v4089_v27, %v1577_v37  ;;  %v1591_v41 = vadd.f32 %v1575_v34, %v5277_v44  ;;  %v4099_v27 = vld [vmem:[%s5839_s7] ss:$0 sm:$0xff] }
 0xccb   :  { %v1594_v40 = vadd.f32 %v1586_v36, %v5286_v57 }
 0xccc   :  { %v1592_v42 = vadd.f32 %v1578_v38, %v5279_v45 }
 0xccd   :  { %v1602_v46 = vadd.f32 %v1594_v40, %v1593_v39 }
 0xcce   :  { %v1595_v49 = vadd.f32 %v1592_v42, %v1591_v41 }
 0xccf   :  { %v1603_v50 = vrot.slane %v1602_v46, 4 }
 0xcd0   :  { %v1596_v51 = vrot.slane %v1595_v49, 4 }
 0xcd1   :  { %v1604_v2 = vadd.f32 %v1603_v50, %v1602_v46  ;;  %v4759_v46 = vld [vmem:[#allocation8 + $0x30] sm:$0xff]   ;;  %v4761_v50 = vld [vmem:[#allocation8 + $0x38] sm:$0xff]  }
 0xcd2   :  { %v1597_v63 = vadd.f32 %v1596_v51, %v1595_v49  ;;  %v4760_v49 = vld [vmem:[#allocation8 + $0x78] sm:$0xff]   ;;  %v1684_v51 = vlaneseq }
 0xcd3   :  { %v1605_v52 = vrot.slane %v1604_v2, 2 }
 0xcd4   :  { %v1598_v54 = vrot.slane %v1597_v63, 2 }
 0xcd5   :  { %v1606_v14 = vadd.f32 %v1605_v52, %v1604_v2  ;;  %v5527_v2 = vshrl.u32 %v1684_v51, 7  ;;  %v1682_v52 = vld [vmem:[%s5841_s9] sm:$0x3]  ;;  %v4793_v51 = vld [vmem:[#allocation2 + $0x170] ss:$12 sps:$4 sm:$0xff]  }
 0xcd6   :  { %v1599_v10 = vadd.f32 %v1598_v54, %v1597_v63 }
 0xcd7   :  { %v1607_v55 = vrot.slane %v1606_v14, 1  ;;  %v1686_v63 = vsub.s32 0, %v5527_v2  ;;  %v1690_v54 = vsub.s32 1, %v5527_v2 }
 0xcd8   :  { %v1600_v61 = vrot.slane %v1599_v10, 1 }
 0xcd9   :  { %v1608_v62 = vadd.f32 %v1607_v55, %v1606_v14  ;;  %v1687_v14 = vrot.slane %v1682_v52, %v1686_v63 }
 0xcda   :  { %v1601_v56 = vadd.f32 %v1600_v61, %v1599_v10  ;;  %v1691_v10 = vrot.slane %v1682_v52, %v1690_v54 }
 0xcdb   :  { %v1611_v0 = vmul.f32 0.0625, %v1608_v62 }
 0xcdc   :  { %v1610_v57 = vmul.f32 0.0625, %v1601_v56 }
 0xcdd   :  { %v1614_v3 = vsub.f32 %v1593_v39, %v1611_v0  ;;  %v1615_v44 = vsub.f32 %v1594_v40, %v1611_v0 }
 0xcde   :  { %v1612_v4 = vsub.f32 %v1591_v41, %v1610_v57  ;;  %v1613_v45 = vsub.f32 %v1592_v42, %v1610_v57  ;;  %v4757_v41 = vld [vmem:[#allocation8 + $0x28] sm:$0xff]   ;;  %v4758_v42 = vld [vmem:[#allocation8 + $0x70] sm:$0xff]  }
 0xcdf   :  { %v1618_v5 = vmul.f32 %v1614_v3, %v1614_v3  ;;  %v1619_v6 = vmul.f32 %v1615_v44, %v1615_v44  ;;  %4291 = vmatpush3.bf16.msra.mxu1 %v4757_v41  ;;  %v4784_v41 = vld [vmem:[#allocation2 + $0x150] ss:$12 sps:$4 sm:$0xff]  }
 0xce0   :  { %v1616_v21 = vmul.f32 %v1612_v4, %v1612_v4  ;;  %v1617_v23 = vmul.f32 %v1613_v45, %v1613_v45  ;;  %4292 = vmatprep.subr.bf16.mxu1 %v4758_v42  ;;  %v4790_v42 = vld [vmem:[#allocation2 + $0x16c] ss:$12 sps:$4 sm:$0xff]  }
 0xce1   :  { %v1627_v24 = vadd.f32 %v1619_v6, %v1618_v5 }
 0xce2   :  { %v1620_v7 = vadd.f32 %v1617_v23, %v1616_v21 }
 0xce3   :  { %v1628_v29 = vrot.slane %v1627_v24, 4  ;;  %4293 = vmatpush3.bf16.msra.mxu1 %v4759_v46  ;;  %v4791_v46 = vld [vmem:[#allocation2 + $0x140] ss:$12 sps:$4 sm:$0xff]  }
 0xce4   :  { %v1621_v32 = vrot.slane %v1620_v7, 4  ;;  %4294 = vmatprep.subr.bf16.mxu1 %v4760_v49  ;;  %v4788_v49 = vld [vmem:[#allocation2 + $0x168] ss:$12 sps:$4 sm:$0xff]  }
 0xce5   :  { %v1629_v33 = vadd.f32 %v1628_v29, %v1627_v24 }
 0xce6   :  { %v1622_v8 = vadd.f32 %v1621_v32, %v1620_v7 }
 0xce7   :  { %v1630_v9 = vrot.slane %v1629_v33, 2  ;;  %4295 = vmatpush3.bf16.msra.mxu1 %v4761_v50  ;;  %v4792_v50 = vld [vmem:[#allocation2 + $0x158] ss:$12 sps:$4 sm:$0xff]  }
 0xce8   :  { %v1623_v12 = vrot.slane %v1622_v8, 2 }
 0xce9   :  { %v1631_v13 = vadd.f32 %v1630_v9, %v1629_v33 }
 0xcea   :  { %v1624_v16 = vadd.f32 %v1623_v12, %v1622_v8 }
 0xceb   :  { %v1632_v17 = vrot.slane %v1631_v13, 1 }
 0xcec   :  { %v1625_v11 = vrot.slane %v1624_v16, 1 }
 0xced   :  { %v1633_v19 = vadd.f32 %v1632_v17, %v1631_v13 }
 0xcee   :  { %v1626_v53 = vadd.f32 %v1625_v11, %v1624_v16 }
 0xcef   :  { %v1635_v58 = vmul.f32 0.0625, %v1633_v19 }
 0xcf0   :  { %v1634_v15 = vmul.f32 0.0625, %v1626_v53 }
 0xcf1   :  { %v1637_v60 = vadd.f32 1e-05, %v1635_v58  ;;  %v4764_v58 = vld [vmem:[#allocation2 + $0xc4] ss:$12 sps:$4 sm:$0xff]  }
 0xcf2   :  { %v1636_v20 = vadd.f32 1e-05, %v1634_v15  ;;  %v4762_v15 = vld [vmem:[#allocation2 + $0xc0] ss:$12 sps:$4 sm:$0xff]   ;;  %2260 = vmatprep.subr.bf16.mxu0 %v4764_v58 }
 0xcf3   :  { %4906 = vrsqrt.f32 %v1637_v60  ;;  %v4767_v60 = vld [vmem:[#allocation2 + $0xdc] ss:$12 sps:$4 sm:$0xff]  }
 0xcf4   :  { %4908 = vrsqrt.f32 %v1636_v20  ;;  %v4765_v20 = vld [vmem:[#allocation2 + $0xd8] ss:$12 sps:$4 sm:$0xff]  }
 0xcfd   :  { %v4907_v22 = vpop.eup %4906 }
 0xcfe   :  { %v4909_v25 = vpop.eup %4908  ;;  %v1643_v43 = vmul.f32 %v4907_v22, %v1615_v44  ;;  %v1642_v48 = vmul.f32 %v4907_v22, %v1614_v3  ;;  %v4770_v22 = vld [vmem:[#allocation2 + $0xf4] ss:$12 sps:$4 sm:$0xff]  }
 0xcff   :  { %v1640_v18 = vmul.f32 %v4909_v25, %v1612_v4  ;;  %v1641_v26 = vmul.f32 %v4909_v25, %v1613_v45  ;;  %v4771_v25 = vld [vmem:[#allocation2 + $0xc8] ss:$12 sps:$4 sm:$0xff]  }
 0xd00   :  { %v1652_v36 = vmul.f32 %v4098_v47, %v1642_v48  ;;  %v1653_v37 = vmul.f32 %v4098_v47, %v1643_v43  ;;  %v4768_v43 = vld [vmem:[#allocation2 + $0xf0] ss:$12 sps:$4 sm:$0xff]   ;;  %4524 = vmatprep.subr.bf16.mxu1 %v4771_v25  ;;  %v4775_v48 = vld [vmem:[#allocation2 + $0xe0] ss:$12 sps:$4 sm:$0xff]  }
 0xd01   :  { %v1651_v28 = vmul.f32 %v4098_v47, %v1641_v26  ;;  %v1650_v30 = vmul.f32 %v4098_v47, %v1640_v18  ;;  %v4774_v47 = vld [vmem:[#allocation2 + $0x10c] ss:$12 sps:$4 sm:$0xff]   ;;  %v4772_v18 = vld [vmem:[#allocation2 + $0x108] ss:$12 sps:$4 sm:$0xff]   ;;  %v4778_v26 = vld [vmem:[#allocation2 + $0x124] ss:$12 sps:$4 sm:$0xff]  }
 0xd02   :  { %v5520_v38 = vadd.f32 %v4099_v27, %v1652_v36  ;;  %v5522_v39 = vadd.f32 %v4099_v27, %v1653_v37  ;;  %v4780_v36 = vld [vmem:[#allocation2 + $0x138] ss:$12 sps:$4 sm:$0xff]   ;;  %v4786_v37 = vld [vmem:[#allocation2 + $0x154] ss:$12 sps:$4 sm:$0xff]  }
 0xd03   :  { %v5513_v31 = vadd.f32 %v4099_v27, %v1650_v30  ;;  %v5515_v34 = vadd.f32 %v4099_v27, %v1651_v28  ;;  %v4779_v27 = vld [vmem:[#allocation2 + $0xf8] ss:$12 sps:$4 sm:$0xff]   ;;  %v4776_v28 = vld [vmem:[#allocation2 + $0x120] ss:$12 sps:$4 sm:$0xff]   ;;  %v4782_v30 = vld [vmem:[#allocation2 + $0x13c] ss:$12 sps:$4 sm:$0xff]  }
 0xd04   :  { %v1665_v40 = vpack.c.bf16 %v5522_v39, %v5520_v38 }
 0xd05   :  { %v1664_v35 = vpack.c.bf16 %v5515_v34, %v5513_v31 }
 0xd07   :  { %1807 = vmatmul.mubr.bf16.vlgmr.msra.gmra.mrb[32].mxu0 %v1664_v35  ;;  %v4783_v35 = vld [vmem:[#allocation2 + $0x110] ss:$12 sps:$4 sm:$0xff]  }
 0xd08   :  { %1816 = vmatprep.mubr.bf16.mxu0 %v5115_v1  ;;  %2261 = vmatpush1.bf16.msra.mxu0 %v4762_v15 }
 0xd09   :  { %2262 = vmatprep.subr.bf16.mxu0 %v4767_v60 }
 0xd0c   :  { %2263 = vmatpush1.bf16.msra.mxu0 %v4765_v20 }
 0xd0d   :  { %2264 = vmatprep.subr.bf16.mxu0 %v4770_v22 }
 0xd0f   :  { %1817 = vmatmul.mubr.bf16.gmra.mrb[36].mxu0 %v1665_v40  ;;  %v4787_v40 = vld [vmem:[#allocation2 + $0x128] ss:$12 sps:$4 sm:$0xff]  }
 0xd10   :  { %2292 = vmatprep.mubr.bf16.mxu0 %v5115_v1  ;;  %2265 = vmatpush1.bf16.msra.mxu0 %v4768_v43 }
 0xd11   :  { %2266 = vmatprep.subr.bf16.mxu0 %v4774_v47 }
 0xd14   :  { %2267 = vmatpush1.bf16.msra.mxu0 %v4772_v18 }
 0xd15   :  { %2268 = vmatprep.subr.bf16.mxu0 %v4778_v26 }
 0xd18   :  { %2269 = vmatpush1.bf16.msra.mxu0 %v4776_v28 }
 0xd19   :  { %2270 = vmatprep.subr.bf16.mxu0 %v4782_v30 }
 0xd1c   :  { %2271 = vmatpush1.bf16.msra.mxu0 %v4780_v36 }
 0xd1d   :  { %2272 = vmatprep.subr.bf16.mxu0 %v4786_v37 }
 0xd20   :  { %2273 = vmatpush1.bf16.msra.mxu0 %v4784_v41 }
 0xd21   :  { %2274 = vmatprep.subr.bf16.mxu0 %v4790_v42 }
 0xd24   :  { %2275 = vmatpush1.bf16.msra.mxu0 %v4788_v49 }
 0xd25   :  { %4544 = vmatprep.subr.bf16.mxu0 %v5116_v59 }
 0xdda   :  { %v1808_v55 = vpop.f32.mrb[32].mxu0 }
 0xddb   :  { %v1809_v61 = vadd.f32 %v1808_v55, %v1687_v14  ;;  %v1810_v62 = vpop.f32.mrb[33].mxu0 }
 0xddc   :  { %v1811_v56 = vadd.f32 %v1810_v62, %v1691_v10  ;;  %v1812_v0 = vpop.f32.mrb[34].mxu0 }
 0xddd   :  { %v1813_v57 = vadd.f32 %v1812_v0, %v1687_v14  ;;  %v1814_v3 = vpop.f32.mrb[35].mxu0  ;;  %v1827_v4 = vmax.f32 %v1809_v61, 0.0 }
 0xdde   :  { %v1815_v44 = vadd.f32 %v1814_v3, %v1691_v10  ;;  %v1828_v5 = vmax.f32 %v1811_v56, 0.0 }
 0xddf   :  { %v1829_v45 = vmax.f32 %v1813_v57, 0.0 }
 0xde0   :  { %v1830_v6 = vmax.f32 %v1815_v44, 0.0 }
 0xde1   :  { %v1835_v21 = vpack.c.bf16 %v1829_v45, %v1827_v4 }
 0xde2   :  { %v1836_v23 = vpack.c.bf16 %v1830_v6, %v1828_v5  ;;  %v1818_v24 = vpop.f32.mrb[36].mxu0 }
 0xde3   :  { %v1819_v7 = vadd.f32 %v1818_v24, %v1687_v14  ;;  %v1820_v29 = vpop.f32.mrb[37].mxu0 }
 0xde4   :  { %v1821_v32 = vadd.f32 %v1820_v29, %v1691_v10  ;;  %v1822_v33 = vpop.f32.mrb[38].mxu0  ;;  %2006 = vmatprep.mubr.bf16.mxu1 %v1836_v23 }
 0xde5   :  { %v1823_v8 = vadd.f32 %v1822_v33, %v1687_v14  ;;  %v1824_v9 = vpop.f32.mrb[39].mxu0  ;;  %2007 = vmatmul.mubr.bf16.vlgmr.msra.gmra.mrb[48].mxu1 %v1835_v21  ;;  %v1831_v13 = vmax.f32 %v1819_v7, 0.0  ;;  %v4116_v14 = vld [vmem:[%s5843_s11] ss:$0 sm:$0xff] }
 0xde6   :  { %v1825_v12 = vadd.f32 %v1824_v9, %v1691_v10  ;;  %v1832_v17 = vmax.f32 %v1821_v32, 0.0  ;;  %4525 = vmatpush3.bf16.msra.mxu1 %v4771_v25 }
 0xde7   :  { %v1833_v16 = vmax.f32 %v1823_v8, 0.0  ;;  %4526 = vmatprep.subr.bf16.mxu1 %v4775_v48 }
 0xde8   :  { %v1834_v11 = vmax.f32 %v1825_v12, 0.0 }
 0xde9   :  { %v1837_v19 = vpack.c.bf16 %v1833_v16, %v1831_v13 }
 0xdea   :  { %v1838_v53 = vpack.c.bf16 %v1834_v11, %v1832_v17  ;;  %4527 = vmatpush3.bf16.msra.mxu1 %v4775_v48 }
 0xdeb   :  { %4528 = vmatprep.subr.bf16.mxu1 %v4779_v27 }
 0xdec   :  { %2014 = vmatprep.mubr.bf16.mxu1 %v1838_v53 }
 0xded   :  { %2015 = vmatmul.mubr.bf16.gmra.mrb[52].mxu1 %v1837_v19 }
 0xdee   :  { %4529 = vmatpush3.bf16.msra.mxu1 %v4779_v27 }
 0xdef   :  { %4530 = vmatprep.subr.bf16.mxu1 %v4783_v35 }
 0xdf2   :  { %4531 = vmatpush3.bf16.msra.mxu1 %v4783_v35 }
 0xdf3   :  { %4532 = vmatprep.subr.bf16.mxu1 %v4787_v40 }
 0xdf6   :  { %4533 = vmatpush3.bf16.msra.mxu1 %v4787_v40 }
 0xdf7   :  { %4534 = vmatprep.subr.bf16.mxu1 %v4791_v46 }
 0xdfa   :  { %4535 = vmatpush3.bf16.msra.mxu1 %v4791_v46 }
 0xdfb   :  { %4536 = vmatprep.subr.bf16.mxu1 %v4792_v50 }
 0xdfe   :  { %4537 = vmatpush3.bf16.msra.mxu1 %v4792_v50 }
 0xdff   :  { %4538 = vmatprep.subr.bf16.mxu1 %v4793_v51 }
 0xe02   :  { %4539 = vmatpush3.bf16.msra.mxu1 %v4793_v51 }
 0xe03   :  { %4562 = vmatprep.subr.bf16.mxu1 %v5116_v59 }
 0xeb8   :  { %v4296_v52 = vpop.f32.mrb[48].mxu1 }
 0xeb9   :  { %v4297_v10 = vpop.f32.mrb[49].mxu1 }
 0xeba   :  { %v4298_v55 = vadd.f32 %v4297_v10, %v4296_v52  ;;  %v4299_v61 = vpop.f32.mrb[50].mxu1 }
 0xebb   :  { %v4300_v62 = vpop.f32.mrb[51].mxu1 }
 0xebc   :  { %v2009_v56 = vadd.f32 %v4298_v55, %v4116_v14  ;;  %v4301_v0 = vadd.f32 %v4300_v62, %v4299_v61  ;;  %v4133_v62 = vld [vmem:[%s5844_s12] ss:$0 sm:$0xff] }
 0xebe   :  { %v2012_v57 = vadd.f32 %v4301_v0, %v4116_v14  ;;  %v2025_v3 = vadd.f32 %v2009_v56, %v5513_v31 }
 0xec0   :  { %v2026_v44 = vadd.f32 %v2012_v57, %v5515_v34  ;;  %v4302_v4 = vpop.f32.mrb[52].mxu1  ;;  %v4134_v57 = vld [vmem:[%s5845_s13] ss:$0 sm:$0xff] }
 0xec1   :  { %v4303_v45 = vpop.f32.mrb[53].mxu1 }
 0xec2   :  { %v2029_v5 = vadd.f32 %v2026_v44, %v2025_v3  ;;  %v4304_v6 = vadd.f32 %v4303_v45, %v4302_v4  ;;  %v4305_v21 = vpop.f32.mrb[54].mxu1 }
 0xec3   :  { %v4306_v23 = vpop.f32.mrb[55].mxu1 }
 0xec4   :  { %v2030_v24 = vrot.slane %v2029_v5, 4  ;;  %v2017_v7 = vadd.f32 %v4304_v6, %v4116_v14  ;;  %v4307_v29 = vadd.f32 %v4306_v23, %v4305_v21 }
 0xec6   :  { %v2031_v32 = vadd.f32 %v2030_v24, %v2029_v5  ;;  %v2020_v33 = vadd.f32 %v4307_v29, %v4116_v14  ;;  %v2027_v9 = vadd.f32 %v2017_v7, %v5520_v38 }
 0xec8   :  { %v2032_v8 = vrot.slane %v2031_v32, 2  ;;  %v2028_v12 = vadd.f32 %v2020_v33, %v5522_v39 }
 0xeca   :  { %v2033_v13 = vadd.f32 %v2032_v8, %v2031_v32  ;;  %v2036_v31 = vadd.f32 %v2028_v12, %v2027_v9 }
 0xecc   :  { %v2034_v16 = vrot.slane %v2033_v13, 1  ;;  %v2037_v34 = vrot.slane %v2036_v31, 4 }
 0xece   :  { %v2035_v17 = vadd.f32 %v2034_v16, %v2033_v13  ;;  %v2038_v11 = vadd.f32 %v2037_v34, %v2036_v31 }
 0xed0   :  { %v2043_v19 = vmul.f32 0.0625, %v2035_v17  ;;  %v2039_v53 = vrot.slane %v2038_v11, 2 }
 0xed2   :  { %v2045_v58 = vsub.f32 %v2025_v3, %v2043_v19  ;;  %v2046_v15 = vsub.f32 %v2026_v44, %v2043_v19  ;;  %v2040_v60 = vadd.f32 %v2039_v53, %v2038_v11 }
 0xed4   :  { %v2049_v20 = vmul.f32 %v2045_v58, %v2045_v58  ;;  %v2050_v22 = vmul.f32 %v2046_v15, %v2046_v15  ;;  %v2041_v25 = vrot.slane %v2040_v60, 1 }
 0xed6   :  { %v2053_v43 = vadd.f32 %v2050_v22, %v2049_v20  ;;  %v2042_v47 = vadd.f32 %v2041_v25, %v2040_v60 }
 0xed8   :  { %v2054_v48 = vrot.slane %v2053_v43, 4  ;;  %v2044_v38 = vmul.f32 0.0625, %v2042_v47 }
 0xeda   :  { %v2055_v18 = vadd.f32 %v2054_v48, %v2053_v43  ;;  %v2047_v39 = vsub.f32 %v2027_v9, %v2044_v38  ;;  %v2048_v26 = vsub.f32 %v2028_v12, %v2044_v38 }
 0xedc   :  { %v2056_v27 = vrot.slane %v2055_v18, 2  ;;  %v2051_v28 = vmul.f32 %v2047_v39, %v2047_v39  ;;  %v2052_v30 = vmul.f32 %v2048_v26, %v2048_v26 }
 0xede   :  { %v2057_v35 = vadd.f32 %v2056_v27, %v2055_v18  ;;  %v2060_v36 = vadd.f32 %v2052_v30, %v2051_v28 }
 0xee0   :  { %v2058_v37 = vrot.slane %v2057_v35, 1  ;;  %v2061_v40 = vrot.slane %v2060_v36, 4 }
 0xee2   :  { %v2059_v41 = vadd.f32 %v2058_v37, %v2057_v35  ;;  %v2062_v42 = vadd.f32 %v2061_v40, %v2060_v36 }
 0xee4   :  { %v2067_v46 = vmul.f32 0.0625, %v2059_v41  ;;  %v2063_v49 = vrot.slane %v2062_v42, 2 }
 0xee6   :  { %v2069_v50 = vadd.f32 1e-05, %v2067_v46  ;;  %v2064_v51 = vadd.f32 %v2063_v49, %v2062_v42 }
 0xee8   :  { %4910 = vrsqrt.f32 %v2069_v50  ;;  %v2065_v52 = vrot.slane %v2064_v51, 1 }
 0xeea   :  { %v2066_v14 = vadd.f32 %v2065_v52, %v2064_v51 }
 0xeec   :  { %v2068_v10 = vmul.f32 0.0625, %v2066_v14 }
 0xeee   :  { %v2070_v55 = vadd.f32 1e-05, %v2068_v10 }
 0xef0   :  { %4912 = vrsqrt.f32 %v2070_v55 }
 0xef2   :  { %v4911_v61 = vpop.eup %4910 }
 0xef3   :  { %v2073_v56 = vmul.f32 %v4911_v61, %v2045_v58  ;;  %v2074_v0 = vmul.f32 %v4911_v61, %v2046_v15 }
 0xef5   :  { %v2083_v3 = vmul.f32 %v4133_v62, %v2073_v56  ;;  %v2084_v44 = vmul.f32 %v4133_v62, %v2074_v0 }
 0xef7   :  { %v5553_v4 = vadd.f32 %v4134_v57, %v2084_v44  ;;  %v5555_v45 = vadd.f32 %v4134_v57, %v2083_v3 }
 0xef9   :  { %v2097_v5 = vpack.c.bf16 %v5553_v4, %v5555_v45 }
 0xefa   :  { %v4913_v6 = vpop.eup %4912 }
 0xefb   :  { %v2076_v21 = vmul.f32 %v4913_v6, %v2048_v26  ;;  %2293 = vmatmul.mubr.bf16.vlgmr.msra.gmra.mrb[40].mxu0 %v2097_v5  ;;  %4540 = vmatprep.mubr.bf16.mxu1 %v2097_v5  ;;  %v2075_v23 = vmul.f32 %v4913_v6, %v2047_v39 }
 0xefc   :  { %2302 = vmatprep.mubr.bf16.mxu0 %v5115_v1 }
 0xefd   :  { %v2085_v24 = vmul.f32 %v4133_v62, %v2075_v23  ;;  %v2086_v7 = vmul.f32 %v4133_v62, %v2076_v21 }
 0xeff   :  { %v5560_v29 = vadd.f32 %v4134_v57, %v2085_v24  ;;  %v5562_v32 = vadd.f32 %v4134_v57, %v2086_v7 }
 0xf01   :  { %v2098_v33 = vpack.c.bf16 %v5562_v32, %v5560_v29 }
 0xf03   :  { %2303 = vmatmul.mubr.bf16.gmra.mrb[44].mxu0 %v2098_v33  ;;  %4541 = vmatmul.mubr.bf16.vlgmr.msra.gmra.mrb[56].mxu1 %v2098_v33 }
 0xf04   :  { %4546 = vmatprep.mubr.msk.bf16.mxu0 %vm5117_vm0, %v5116_v59  ;;  %4564 = vmatprep.mubr.msk.bf16.mxu1 %vm5117_vm0, %v5116_v59 }
 0xfce   :  { %v2294_v8 = vpop.f32.mrb[40].mxu0 }
 0xfcf   :  { %v2296_v9 = vpop.f32.mrb[41].mxu0 }
 0xfd0   :  { %v2298_v12 = vpop.f32.mrb[42].mxu0 }
 0xfd1   :  { %v5570_v13 = vpack.c.bf16 %v2298_v12, %v2294_v8  ;;  %v2300_v31 = vpop.f32.mrb[43].mxu0 }
 0xfd2   :  { %v5572_v16 = vpack.c.bf16 %v2300_v31, %v2296_v9 }
 0xfd4   :  { %v2372_v34 = vsel %vm447_vm1, %v5572_v16, 0 }
 0xfd5   :  { %4545 = vmatpush3.bf16.xpose.msra.mxu0 %v2372_v34 }
 0xfd6   :  { %v2304_v17 = vpop.f32.mrb[44].mxu0  ;;  %v4542_v11 = vpop.f32.mrb[56].mxu1  ;;  %4550 = vmatprep.subr.bf16.mxu0 %v5116_v59 }
 0xfd7   :  { %v2306_v19 = vpop.f32.mrb[45].mxu0  ;;  %v2347_v53 = vpop.f32.mrb[57].mxu1 }
 0xfd8   :  { %v2308_v58 = vpop.f32.mrb[46].mxu0  ;;  %v4543_v15 = vpop.f32.mrb[58].mxu1 }
 0xfd9   :  { %v5577_v60 = vpack.c.bf16 %v2308_v58, %v2304_v17  ;;  %v5579_v20 = vpack.c.bf16 %v4543_v15, %v4542_v11  ;;  %v2310_v22 = vpop.f32.mrb[47].mxu0  ;;  %v2350_v25 = vpop.f32.mrb[59].mxu1 }
 0xfda   :  { %v5581_v43 = vpack.c.bf16 %v2310_v22, %v2306_v19  ;;  %v5583_v47 = vpack.c.bf16 %v2350_v25, %v2347_v53 }
 0xfdb   :  { %4563 = vmatpush3.bf16.msra.mxu1 %v5579_v20 }
 0xfdc   :  { %4547 = vmatmul.mubr.msk.bf16.vlgmr.msra.gmra.mrb[48].mxu0 %vm447_vm1, %v5570_v13  ;;  %v2419_v48 = vsel %vm447_vm1, %v5581_v43, 0  ;;  %4574 = vmatprep.subr.bf16.mxu1 %v5116_v59 }
 0xfdd   :  { %4551 = vmatpush3.bf16.xpose.msra.mxu0 %v2419_v48  ;;  %4552 = vmatprep.mubr.msk.bf16.mxu0 %vm5117_vm0, %v5116_v59 }
 0xfde   :  { %4556 = vmatprep.subr.bf16.mxu0 %v5116_v59 }
 0xfe4   :  { %4553 = vmatmul.mubr.msk.bf16.vlgmr.msra.gmra.mrb[52].mxu0 %vm447_vm1, %v5577_v60 }
 0xfe5   :  { %4557 = vmatpush3.bf16.msra.mxu0 %v5583_v47  ;;  %4558 = vmatprep.mubr.msk.bf16.mxu0 %vm5117_vm0, %v5116_v59 }
 0xfe6   :  { %4568 = vmatprep.subr.bf16.mxu0 %v5116_v59 }
0x10af   :  { %v2408_v38 = vpop.f32.mrb[48].mxu0 }
0x10b0   :  { %v2462_v18 = vmul.f32 0.17677669, %v2408_v38  ;;  %v4548_v39 = vpop.f32.mrb[49].mxu0 }
0x10b1   :  { %v2411_v26 = vpop.f32.mrb[50].mxu0 }
0x10b2   :  { %v2463_v27 = vmul.f32 0.17677669, %v2411_v26  ;;  %v4549_v28 = vpop.f32.mrb[51].mxu0  ;;  %v2466_v30 = vsel %vm546_vm2, %v2462_v18, -inf }
0x10b3   :  { %2467 = vmax.xlane.f32.xlu1 %v2466_v30 }
0x10b4   :  { %v2469_v35 = vsel %vm546_vm2, %v2463_v27, -inf }
0x10b5   :  { %2470 = vmax.xlane.f32.xlu0 %v2469_v35 }
0x10b7   :  { %v2455_v36 = vpop.f32.mrb[52].mxu0 }
0x10b8   :  { %v2464_v37 = vmul.f32 0.17677669, %v2455_v36  ;;  %v4554_v40 = vpop.f32.mrb[53].mxu0 }
0x10b9   :  { %v2458_v41 = vpop.f32.mrb[54].mxu0 }
0x10ba   :  { %v2465_v42 = vmul.f32 0.17677669, %v2458_v41  ;;  %v4555_v46 = vpop.f32.mrb[55].mxu0  ;;  %v2472_v49 = vsel %vm546_vm2, %v2464_v37, -inf }
0x10bb   :  { %2473 = vmax.xlane.f32.xlu0 %v2472_v49 }
0x10bc   :  { %v2475_v50 = vsel %vm546_vm2, %v2465_v42, -inf }
0x10bd   :  { %2476 = vmax.xlane.f32.xlu1 %v2475_v50 }
0x1140   :  { %v2468_v51 = vpop.xlane.xlu1 %2467 }
0x1141   :  { %v2478_v52 = vsub.f32 %v2462_v18, %v2468_v51 }
0x1142   :  { %v2471_v14 = vpop.xlane.xlu0 %2470 }
0x1143   :  { %v2482_v10 = vmul.f32 1.442695, %v2478_v52  ;;  %v2479_v55 = vsub.f32 %v2463_v27, %v2471_v14 }
0x1145   :  { %4914 = vpow2.f32 %v2482_v10  ;;  %v2484_v61 = vmul.f32 1.442695, %v2479_v55 }
0x1147   :  { %4916 = vpow2.f32 %v2484_v61 }
0x1148   :  { %v2474_v62 = vpop.xlane.xlu0 %2473 }
0x1149   :  { %v2480_v56 = vsub.f32 %v2464_v37, %v2474_v62 }
0x114a   :  { %v2477_v23 = vpop.xlane.xlu1 %2476 }
0x114b   :  { %v2486_v0 = vmul.f32 1.442695, %v2480_v56  ;;  %v2481_v24 = vsub.f32 %v2465_v42, %v2477_v23 }
0x114d   :  { %4918 = vpow2.f32 %v2486_v0  ;;  %v2488_v7 = vmul.f32 1.442695, %v2481_v24 }
0x114f   :  { %v4915_v57 = vpop.eup %4914  ;;  %4920 = vpow2.f32 %v2488_v7 }
0x1150   :  { %v2490_v3 = vsel %vm546_vm2, %v4915_v57, 0.0 }
0x1151   :  { %v4917_v44 = vpop.eup %4916  ;;  %2491 = vadd.xlane.f32.xlu0 %v2490_v3 }
0x1152   :  { %v2493_v5 = vsel %vm546_vm2, %v4917_v44, 0.0 }
0x1153   :  { %2494 = vadd.xlane.f32.xlu1 %v2493_v5 }
0x1157   :  { %v4919_v6 = vpop.eup %4918 }
0x1158   :  { %v2496_v21 = vsel %vm546_vm2, %v4919_v6, 0.0 }
0x1159   :  { %2497 = vadd.xlane.f32.xlu0 %v2496_v21  ;;  %v4921_v33 = vpop.eup %4920 }
0x115a   :  { %v2499_v8 = vsel %vm546_vm2, %v4921_v33, 0.0 }
0x1164   :  { %2659 = vrot.lane.b32.xlu1 %v5581_v43, %s5118_s1 }
0x116f   :  { %2606 = vrot.lane.b32.xlu0 %v5572_v16, %s5118_s1 }
0x1173   :  { %2656 = vrot.lane.b32.xlu0 %v5577_v60, %s5118_s1 }
0x1188   :  { %2500 = vadd.xlane.f32.xlu1 %v2499_v8 }
0x1199   :  { %2603 = vrot.lane.b32.xlu1 %v5570_v13, %s5118_s1 }
0x11de   :  { %v2492_v9 = vpop.xlane.xlu0 %2491 }
0x11df   :  { %4922 = vrcp.f32 %v2492_v9 }
0x11e0   :  { %v2495_v12 = vpop.xlane.xlu1 %2494 }
0x11e1   :  { %4924 = vrcp.f32 %v2495_v12 }
0x11e4   :  { %v2660_v22 = vpop.permute.xlu1 %2659 }
0x11e5   :  { %v2665_v28 = vsel %vm447_vm1, %v2660_v22, 0 }
0x11e6   :  { %v2498_v31 = vpop.xlane.xlu0 %2497 }
0x11e7   :  { %4926 = vrcp.f32 %v2498_v31 }
0x11e9   :  { %v4923_v34 = vpop.eup %4922 }
0x11ea   :  { %v2506_v11 = vmul.f32 %v4923_v34, %v4915_v57  ;;  %v2607_v53 = vpop.permute.xlu0 %2606 }
0x11eb   :  { %v4925_v17 = vpop.eup %4924  ;;  %v2612_v15 = vsel %vm447_vm1, %v2607_v53, 0 }
0x11ec   :  { %v2507_v19 = vmul.f32 %v4925_v17, %v4917_v44 }
0x11ee   :  { %v2510_v58 = vpack.c.bf16 %v2507_v19, %v2506_v11  ;;  %v2657_v30 = vpop.permute.xlu0 %2656 }
0x11f0   :  { %4559 = vmatmul.mubr.msk.bf16.vlgmr.msra.gmra.mrb[56].mxu0 %vm546_vm2, %v2510_v58 }
0x11f1   :  { %4569 = vmatpush3.bf16.xpose.msra.mxu0 %v2612_v15  ;;  %4570 = vmatprep.mubr.msk.bf16.mxu0 %vm5117_vm0, %v5116_v59  ;;  %v4927_v38 = vpop.eup %4926 }
0x11f2   :  { %4580 = vmatprep.subr.bf16.mxu0 %v5116_v59  ;;  %v2508_v39 = vmul.f32 %v4927_v38, %v4919_v6 }
0x1215   :  { %v2501_v25 = vpop.xlane.xlu1 %2500 }
0x1216   :  { %4928 = vrcp.f32 %v2501_v25 }
0x1219   :  { %v2604_v48 = vpop.permute.xlu1 %2603 }
0x121a   :  { %4571 = vmatmul.mubr.msk.bf16.vlgmr.msra.gmra.mrb[60].mxu0 %vm447_vm1, %v2604_v48 }
0x121b   :  { %4582 = vmatprep.mubr.msk.bf16.mxu0 %vm5117_vm0, %v5116_v59 }
0x1220   :  { %v4929_v18 = vpop.eup %4928 }
0x1221   :  { %v2509_v26 = vmul.f32 %v4929_v18, %v4921_v33 }
0x1223   :  { %v2511_v27 = vpack.c.bf16 %v2509_v26, %v2508_v39 }
0x1225   :  { %4565 = vmatmul.mubr.msk.bf16.vlgmr.msra.gmra.mrb[60].mxu1 %vm546_vm2, %v2511_v27 }
0x1226   :  { %4575 = vmatpush3.bf16.xpose.msra.mxu1 %v2665_v28  ;;  %4576 = vmatprep.mubr.msk.bf16.mxu1 %vm5117_vm0, %v5116_v59 }
0x1227   :  { %4586 = vmatprep.subr.bf16.mxu1 %v5116_v59 }
0x122d   :  { %4577 = vmatmul.mubr.msk.bf16.vlgmr.msra.gmra.mrb[64].mxu1 %vm447_vm1, %v2657_v30 }
0x122e   :  { %4588 = vmatprep.mubr.msk.bf16.mxu1 %vm5117_vm0, %v5116_v59 }
0x12c3   :  { %v5632_v35 = vpop.f32.mrb[56].mxu0 }
0x12c4   :  { %v4560_v36 = vpop.f32.mrb[57].mxu0 }
0x12c5   :  { %v5634_v37 = vpop.f32.mrb[58].mxu0 }
0x12c6   :  { %v2600_v40 = vpack.c.bf16 %v5634_v37, %v5632_v35  ;;  %v4561_v41 = vpop.f32.mrb[59].mxu0  ;;  %v4804_v37 = vld [vmem:[#allocation7 + $0x84] ss:$8 sps:$4 sm:$0xff]  }
0x12ed   :  { %v2648_v42 = vpop.f32.mrb[60].mxu0 }
0x12ee   :  { %v2708_v46 = vmul.f32 0.17677669, %v2648_v42  ;;  %v4572_v49 = vpop.f32.mrb[61].mxu0 }
0x12ef   :  { %v2651_v50 = vpop.f32.mrb[62].mxu0 }
0x12f0   :  { %v2709_v51 = vmul.f32 0.17677669, %v2651_v50  ;;  %v4573_v52 = vpop.f32.mrb[63].mxu0  ;;  %v2712_v14 = vsel %vm546_vm2, %v2708_v46, -inf }
0x12f1   :  { %2713 = vmax.xlane.f32.xlu1 %v2712_v14 }
0x12f2   :  { %v2715_v10 = vsel %vm546_vm2, %v2709_v51, -inf }
0x12f3   :  { %2716 = vmax.xlane.f32.xlu0 %v2715_v10 }
0x12f8   :  { %v5640_v55 = vpop.f32.mrb[60].mxu1 }
0x12f9   :  { %v4566_v61 = vpop.f32.mrb[61].mxu1 }
0x12fa   :  { %v5642_v62 = vpop.f32.mrb[62].mxu1 }
0x12fb   :  { %v2601_v56 = vpack.c.bf16 %v5642_v62, %v5640_v55  ;;  %v4567_v0 = vpop.f32.mrb[63].mxu1  ;;  %v4813_v55 = vld [vmem:[#allocation7 + $0xb4] ss:$8 sps:$4 sm:$0xff]   ;;  %v4811_v62 = vld [vmem:[#allocation7 + $0xb0] ss:$8 sps:$4 sm:$0xff]  }
0x1300   :  { %v2701_v57 = vpop.f32.mrb[64].mxu1 }
0x1301   :  { %v2710_v3 = vmul.f32 0.17677669, %v2701_v57  ;;  %v4578_v44 = vpop.f32.mrb[65].mxu1 }
0x1302   :  { %v2704_v5 = vpop.f32.mrb[66].mxu1 }
0x1303   :  { %v2711_v6 = vmul.f32 0.17677669, %v2704_v5  ;;  %v4579_v21 = vpop.f32.mrb[67].mxu1  ;;  %v2718_v23 = vsel %vm546_vm2, %v2710_v3, -inf }
0x1304   :  { %2719 = vmax.xlane.f32.xlu0 %v2718_v23 }
0x1305   :  { %v2721_v24 = vsel %vm546_vm2, %v2711_v6, -inf }
0x1306   :  { %2722 = vmax.xlane.f32.xlu1 %v2721_v24 }
0x1317   :  { %2807 = vrot.lane.b32.xlu1 %v5579_v20, %s5118_s1 }
0x131a   :  { %2759 = vrot.lane.b32.xlu0 %v5583_v47, %s5118_s1 }
0x131b   :  { %2858 = vrot.lane.b32.xlu1 %v5572_v16, %s5105_s23 }
0x137e   :  { %v2714_v7 = vpop.xlane.xlu1 %2713 }
0x137f   :  { %v2724_v33 = vsub.f32 %v2708_v46, %v2714_v7 }
0x1380   :  { %v2717_v8 = vpop.xlane.xlu0 %2716 }
0x1381   :  { %v2728_v9 = vmul.f32 1.442695, %v2724_v33  ;;  %v2725_v12 = vsub.f32 %v2709_v51, %v2717_v8 }
0x1383   :  { %4930 = vpow2.f32 %v2728_v9  ;;  %v2730_v31 = vmul.f32 1.442695, %v2725_v12 }
0x1385   :  { %4932 = vpow2.f32 %v2730_v31 }
0x138d   :  { %v4931_v34 = vpop.eup %4930 }
0x138e   :  { %v2736_v17 = vsel %vm546_vm2, %v4931_v34, 0.0 }
0x138f   :  { %v4933_v11 = vpop.eup %4932  ;;  %2737 = vadd.xlane.f32.xlu0 %v2736_v17 }
0x1390   :  { %v2739_v19 = vsel %vm546_vm2, %v4933_v11, 0.0 }
0x1391   :  { %2740 = vadd.xlane.f32.xlu1 %v2739_v19  ;;  %v2720_v53 = vpop.xlane.xlu0 %2719 }
0x1392   :  { %v2726_v58 = vsub.f32 %v2710_v3, %v2720_v53 }
0x1393   :  { %v2723_v15 = vpop.xlane.xlu1 %2722 }
0x1394   :  { %v2732_v22 = vmul.f32 1.442695, %v2726_v58  ;;  %v2727_v25 = vsub.f32 %v2711_v6, %v2723_v15 }
0x1395   :  { %v2760_v48 = vpop.permute.xlu0 %2759 }
0x1396   :  { %4934 = vpow2.f32 %v2732_v22  ;;  %v2734_v38 = vmul.f32 1.442695, %v2727_v25  ;;  %4581 = vmatpush3.bf16.msra.mxu0 %v2760_v48 }
0x1397   :  { %v2808_v18 = vpop.permute.xlu1 %2807  ;;  %4592 = vmatprep.subr.bf16.mxu0 %v5116_v59 }
0x1398   :  { %4936 = vpow2.f32 %v2734_v38  ;;  %4587 = vmatpush3.bf16.msra.mxu1 %v2808_v18 }
0x1399   :  { %4598 = vmatprep.subr.bf16.mxu1 %v5116_v59 }
0x139b   :  { %v2859_v30 = vpop.permute.xlu1 %2858 }
0x139c   :  { %v2864_v52 = vsel %vm447_vm1, %v2859_v30, 0 }
0x13a0   :  { %v4935_v39 = vpop.eup %4934 }
0x13a1   :  { %v2742_v26 = vsel %vm546_vm2, %v4935_v39, 0.0 }
0x13a2   :  { %v4937_v27 = vpop.eup %4936  ;;  %2743 = vadd.xlane.f32.xlu0 %v2742_v26 }
0x13a3   :  { %v2745_v28 = vsel %vm546_vm2, %v4937_v27, 0.0 }
0x13a4   :  { %2746 = vadd.xlane.f32.xlu1 %v2745_v28 }
0x13b5   :  { %2856 = vrot.lane.b32.xlu1 %v5570_v13, %s5105_s23 }
0x13b8   :  { %2909 = vrot.lane.b32.xlu0 %v5581_v43, %s5105_s23 }
0x13bc   :  { %2907 = vrot.lane.b32.xlu0 %v5577_v60, %s5105_s23 }
0x141c   :  { %v2738_v36 = vpop.xlane.xlu0 %2737 }
0x141d   :  { %4938 = vrcp.f32 %v2738_v36 }
0x141e   :  { %v2741_v41 = vpop.xlane.xlu1 %2740 }
0x141f   :  { %4940 = vrcp.f32 %v2741_v41 }
0x1427   :  { %v4939_v42 = vpop.eup %4938 }
0x1428   :  { %v2752_v49 = vmul.f32 %v4939_v42, %v4931_v34 }
0x1429   :  { %v4941_v46 = vpop.eup %4940 }
0x142a   :  { %v2753_v50 = vmul.f32 %v4941_v46, %v4933_v11 }
0x142c   :  { %v2756_v51 = vpack.c.bf16 %v2753_v50, %v2752_v49 }
0x142e   :  { %4583 = vmatmul.mubr.msk.bf16.vlgmr.msra.gmra.mrb[64].mxu0 %vm546_vm2, %v2756_v51 }
0x142f   :  { %4593 = vmatpush3.bf16.xpose.msra.mxu0 %v2864_v52  ;;  %v2744_v14 = vpop.xlane.xlu0 %2743  ;;  %4594 = vmatprep.mubr.msk.bf16.mxu0 %vm5117_vm0, %v5116_v59 }
0x1430   :  { %4942 = vrcp.f32 %v2744_v14  ;;  %4604 = vmatprep.subr.bf16.mxu0 %v5116_v59 }
0x1431   :  { %v2747_v10 = vpop.xlane.xlu1 %2746 }
0x1432   :  { %4944 = vrcp.f32 %v2747_v10 }
0x1433   :  { %v2910_v5 = vpop.permute.xlu0 %2909 }
0x1434   :  { %v2915_v21 = vsel %vm447_vm1, %v2910_v5, 0 }
0x1435   :  { %v2857_v61 = vpop.permute.xlu1 %2856 }
0x1436   :  { %4595 = vmatmul.mubr.msk.bf16.vlgmr.msra.gmra.mrb[68].mxu0 %vm447_vm1, %v2857_v61 }
0x1437   :  { %4606 = vmatprep.mubr.msk.bf16.mxu0 %vm5117_vm0, %v5116_v59  ;;  %v2908_v23 = vpop.permute.xlu0 %2907 }
0x143a   :  { %v4943_v0 = vpop.eup %4942 }
0x143b   :  { %v2754_v3 = vmul.f32 %v4943_v0, %v4935_v39 }
0x143c   :  { %v4945_v57 = vpop.eup %4944 }
0x143d   :  { %v2755_v44 = vmul.f32 %v4945_v57, %v4937_v27 }
0x143f   :  { %v2757_v6 = vpack.c.bf16 %v2755_v44, %v2754_v3 }
0x1441   :  { %4589 = vmatmul.mubr.msk.bf16.vlgmr.msra.gmra.mrb[68].mxu1 %vm546_vm2, %v2757_v6 }
0x1442   :  { %4599 = vmatpush3.bf16.xpose.msra.mxu1 %v2915_v21  ;;  %4600 = vmatprep.mubr.msk.bf16.mxu1 %vm5117_vm0, %v5116_v59 }
0x1443   :  { %4610 = vmatprep.subr.bf16.mxu1 %v5116_v59 }
0x1449   :  { %4601 = vmatmul.mubr.msk.bf16.vlgmr.msra.gmra.mrb[72].mxu1 %vm447_vm1, %v2908_v23 }
0x144a   :  { %4612 = vmatprep.mubr.msk.bf16.mxu1 %vm5117_vm0, %v5116_v59 }
0x1501   :  { %v5682_v24 = vpop.f32.mrb[64].mxu0 }
0x1502   :  { %v4584_v7 = vpop.f32.mrb[65].mxu0 }
0x1503   :  { %v5684_v33 = vpop.f32.mrb[66].mxu0 }
0x1504   :  { %v2854_v8 = vpack.c.bf16 %v5684_v33, %v5682_v24  ;;  %v4585_v9 = vpop.f32.mrb[67].mxu0 }
0x1509   :  { %v2900_v12 = vpop.f32.mrb[68].mxu0 }
0x150a   :  { %v2958_v31 = vmul.f32 0.17677669, %v2900_v12  ;;  %v4596_v34 = vpop.f32.mrb[69].mxu0 }
0x150b   :  { %v2903_v17 = vpop.f32.mrb[70].mxu0 }
0x150c   :  { %v2959_v11 = vmul.f32 0.17677669, %v2903_v17  ;;  %v4597_v19 = vpop.f32.mrb[71].mxu0  ;;  %v2962_v53 = vsel %vm546_vm2, %v2958_v31, -inf }
0x150d   :  { %2963 = vmax.xlane.f32.xlu1 %v2962_v53 }
0x150e   :  { %v2965_v58 = vsel %vm546_vm2, %v2959_v11, -inf }
0x150f   :  { %2966 = vmax.xlane.f32.xlu0 %v2965_v58 }
0x1514   :  { %v5690_v15 = vpop.f32.mrb[68].mxu1 }
0x1515   :  { %v4590_v22 = vpop.f32.mrb[69].mxu1 }
0x1516   :  { %v5692_v25 = vpop.f32.mrb[70].mxu1 }
0x1517   :  { %v2855_v48 = vpack.c.bf16 %v5692_v25, %v5690_v15  ;;  %v4591_v38 = vpop.f32.mrb[71].mxu1 }
0x151c   :  { %v2951_v18 = vpop.f32.mrb[72].mxu1 }
0x151d   :  { %v2960_v39 = vmul.f32 0.17677669, %v2951_v18  ;;  %v4602_v26 = vpop.f32.mrb[73].mxu1 }
0x151e   :  { %v2954_v27 = vpop.f32.mrb[74].mxu1 }
0x151f   :  { %v2961_v28 = vmul.f32 0.17677669, %v2954_v27  ;;  %v4603_v30 = vpop.f32.mrb[75].mxu1  ;;  %v2968_v36 = vsel %vm546_vm2, %v2960_v39, -inf }
0x1520   :  { %2969 = vmax.xlane.f32.xlu0 %v2968_v36 }
0x1521   :  { %v2971_v41 = vsel %vm546_vm2, %v2961_v28, -inf }
0x1522   :  { %2972 = vmax.xlane.f32.xlu1 %v2971_v41 }
0x1533   :  { %3055 = vrot.lane.b32.xlu1 %v5579_v20, %s5105_s23 }
0x1536   :  { %3008 = vrot.lane.b32.xlu0 %v5583_v47, %s5105_s23 }
0x1537   :  { %3106 = vrot.lane.b32.xlu1 %v5572_v16, %s5119_s2 }
0x159a   :  { %v2964_v42 = vpop.xlane.xlu1 %2963 }
0x159b   :  { %v2974_v46 = vsub.f32 %v2958_v31, %v2964_v42 }
0x159c   :  { %v2967_v49 = vpop.xlane.xlu0 %2966 }
0x159d   :  { %v2978_v50 = vmul.f32 1.442695, %v2974_v46  ;;  %v2975_v51 = vsub.f32 %v2959_v11, %v2967_v49 }
0x159f   :  { %4946 = vpow2.f32 %v2978_v50  ;;  %v2980_v52 = vmul.f32 1.442695, %v2975_v51 }
0x15a1   :  { %4948 = vpow2.f32 %v2980_v52 }
0x15a9   :  { %v4947_v14 = vpop.eup %4946 }
0x15aa   :  { %v2986_v10 = vsel %vm546_vm2, %v4947_v14, 0.0 }
0x15ab   :  { %v4949_v61 = vpop.eup %4948  ;;  %2987 = vadd.xlane.f32.xlu0 %v2986_v10 }
0x15ac   :  { %v2989_v0 = vsel %vm546_vm2, %v4949_v61, 0.0 }
0x15ad   :  { %2990 = vadd.xlane.f32.xlu1 %v2989_v0  ;;  %v2970_v57 = vpop.xlane.xlu0 %2969 }
0x15ae   :  { %v2976_v3 = vsub.f32 %v2960_v39, %v2970_v57 }
0x15af   :  { %v2973_v44 = vpop.xlane.xlu1 %2972 }
0x15b0   :  { %v2982_v16 = vmul.f32 1.442695, %v2976_v3  ;;  %v2977_v5 = vsub.f32 %v2961_v28, %v2973_v44 }
0x15b1   :  { %v3009_v6 = vpop.permute.xlu0 %3008 }
0x15b2   :  { %4950 = vpow2.f32 %v2982_v16  ;;  %v2984_v21 = vmul.f32 1.442695, %v2977_v5  ;;  %4605 = vmatpush3.bf16.msra.mxu0 %v3009_v6 }
0x15b3   :  { %v3056_v23 = vpop.permute.xlu1 %3055  ;;  %4616 = vmatprep.subr.bf16.mxu0 %v5116_v59 }
0x15b4   :  { %4952 = vpow2.f32 %v2984_v21  ;;  %4611 = vmatpush3.bf16.msra.mxu1 %v3056_v23 }
0x15b5   :  { %4622 = vmatprep.subr.bf16.mxu1 %v5116_v59 }
0x15b7   :  { %v3107_v34 = vpop.permute.xlu1 %3106 }
0x15b8   :  { %v3112_v18 = vsel %vm447_vm1, %v3107_v34, 0 }
0x15bc   :  { %v4951_v7 = vpop.eup %4950 }
0x15bd   :  { %v2992_v9 = vsel %vm546_vm2, %v4951_v7, 0.0 }
0x15be   :  { %v4953_v12 = vpop.eup %4952  ;;  %2993 = vadd.xlane.f32.xlu0 %v2992_v9 }
0x15bf   :  { %v2995_v31 = vsel %vm546_vm2, %v4953_v12, 0.0 }
0x15c0   :  { %2996 = vadd.xlane.f32.xlu1 %v2995_v31 }
0x15d1   :  { %3104 = vrot.lane.b32.xlu1 %v5570_v13, %s5119_s2 }
0x15d4   :  { %3157 = vrot.lane.b32.xlu0 %v5581_v43, %s5119_s2 }
0x15d8   :  { %3155 = vrot.lane.b32.xlu0 %v5577_v60, %s5119_s2 }
0x1638   :  { %v2988_v17 = vpop.xlane.xlu0 %2987 }
0x1639   :  { %4954 = vrcp.f32 %v2988_v17 }
0x163a   :  { %v2991_v11 = vpop.xlane.xlu1 %2990 }
0x163b   :  { %4956 = vrcp.f32 %v2991_v11 }
0x1643   :  { %v4955_v19 = vpop.eup %4954 }
0x1644   :  { %v3002_v58 = vmul.f32 %v4955_v19, %v4947_v14 }
0x1645   :  { %v4957_v53 = vpop.eup %4956 }
0x1646   :  { %v3003_v22 = vmul.f32 %v4957_v53, %v4949_v61 }
0x1648   :  { %v3006_v38 = vpack.c.bf16 %v3003_v22, %v3002_v58 }
0x164a   :  { %4607 = vmatmul.mubr.msk.bf16.vlgmr.msra.gmra.mrb[72].mxu0 %vm546_vm2, %v3006_v38 }
0x164b   :  { %4617 = vmatpush3.bf16.xpose.msra.mxu0 %v3112_v18  ;;  %v2994_v13 = vpop.xlane.xlu0 %2993  ;;  %4618 = vmatprep.mubr.msk.bf16.mxu0 %vm5117_vm0, %v5116_v59 }
0x164c   :  { %4958 = vrcp.f32 %v2994_v13  ;;  %4628 = vmatprep.subr.bf16.mxu0 %v5116_v59 }
0x164d   :  { %v2997_v60 = vpop.xlane.xlu1 %2996 }
0x164e   :  { %4960 = vrcp.f32 %v2997_v60 }
0x164f   :  { %v3158_v30 = vpop.permute.xlu0 %3157 }
0x1650   :  { %v3163_v41 = vsel %vm447_vm1, %v3158_v30, 0 }
0x1651   :  { %v3105_v43 = vpop.permute.xlu1 %3104 }
0x1652   :  { %4619 = vmatmul.mubr.msk.bf16.vlgmr.msra.gmra.mrb[76].mxu0 %vm447_vm1, %v3105_v43 }
0x1653   :  { %4630 = vmatprep.mubr.msk.bf16.mxu0 %vm5117_vm0, %v5116_v59  ;;  %v3156_v42 = vpop.permute.xlu0 %3155 }
0x1656   :  { %v4959_v39 = vpop.eup %4958 }
0x1657   :  { %v3004_v27 = vmul.f32 %v4959_v39, %v4951_v7 }
0x1658   :  { %v4961_v26 = vpop.eup %4960 }
0x1659   :  { %v3005_v28 = vmul.f32 %v4961_v26, %v4953_v12 }
0x165b   :  { %v3007_v36 = vpack.c.bf16 %v3005_v28, %v3004_v27 }
0x165d   :  { %4613 = vmatmul.mubr.msk.bf16.vlgmr.msra.gmra.mrb[76].mxu1 %vm546_vm2, %v3007_v36 }
0x165e   :  { %4623 = vmatpush3.bf16.xpose.msra.mxu1 %v3163_v41  ;;  %4624 = vmatprep.mubr.msk.bf16.mxu1 %vm5117_vm0, %v5116_v59 }
0x165f   :  { %4634 = vmatprep.subr.bf16.mxu1 %v5116_v59 }
0x1665   :  { %4625 = vmatmul.mubr.msk.bf16.vlgmr.msra.gmra.mrb[80].mxu1 %vm447_vm1, %v3156_v42 }
0x1666   :  { %4636 = vmatprep.mubr.msk.bf16.mxu1 %vm5117_vm0, %v5116_v59 }
0x171d   :  { %v3048_v46 = vpop.f32.mrb[72].mxu0 }
0x171e   :  { %v4608_v49 = vpop.f32.mrb[73].mxu0 }
0x171f   :  { %v3051_v50 = vpop.f32.mrb[74].mxu0 }
0x1720   :  { %v3102_v51 = vpack.c.bf16 %v3051_v50, %v3048_v46  ;;  %v4609_v52 = vpop.f32.mrb[75].mxu0 }
0x1725   :  { %v3148_v14 = vpop.f32.mrb[76].mxu0 }
0x1726   :  { %v3206_v10 = vmul.f32 0.17677669, %v3148_v14  ;;  %v4620_v61 = vpop.f32.mrb[77].mxu0 }
0x1727   :  { %v3151_v0 = vpop.f32.mrb[78].mxu0 }
0x1728   :  { %v3207_v57 = vmul.f32 0.17677669, %v3151_v0  ;;  %v4621_v3 = vpop.f32.mrb[79].mxu0  ;;  %v3210_v44 = vsel %vm546_vm2, %v3206_v10, -inf }
0x1729   :  { %3211 = vmax.xlane.f32.xlu1 %v3210_v44 }
0x172a   :  { %v3213_v16 = vsel %vm546_vm2, %v3207_v57, -inf }
0x172b   :  { %3214 = vmax.xlane.f32.xlu0 %v3213_v16  ;;  %v4794_v16 = vld [vmem:[#allocation5 + $0x40] sm:$0xff]  }
0x1730   :  { %v3095_v5 = vpop.f32.mrb[76].mxu1 }
0x1731   :  { %v4614_v6 = vpop.f32.mrb[77].mxu1 }
0x1732   :  { %v3098_v59 = vpop.f32.mrb[78].mxu1  ;;  %v4796_v6 = vld [vmem:[#allocation5 + $0x50] sm:$0xff]  }
0x1733   :  { %v3103_v21 = vpack.c.bf16 %v3098_v59, %v3095_v5  ;;  %v4615_v23 = vpop.f32.mrb[79].mxu1  ;;  %v4795_v5 = vld [vmem:[#allocation5 + $0x48] sm:$0xff]   ;;  %v4797_v59 = vld [vmem:[#allocation5 + $0x58] sm:$0xff]  }
0x1734   :  { %v4799_v23 = vld [vmem:[#allocation5 + $0x68] sm:$0xff]  }
0x1738   :  { %v3199_v7 = vpop.f32.mrb[80].mxu1 }
0x1739   :  { %v3208_v9 = vmul.f32 0.17677669, %v3199_v7  ;;  %v4626_v12 = vpop.f32.mrb[81].mxu1  ;;  %v4800_v7 = vld [vmem:[#allocation5 + $0x70] sm:$0xff]  }
0x173a   :  { %v3202_v31 = vpop.f32.mrb[82].mxu1 }
0x173b   :  { %v3209_v34 = vmul.f32 0.17677669, %v3202_v31  ;;  %v4627_v17 = vpop.f32.mrb[83].mxu1  ;;  %v3216_v11 = vsel %vm546_vm2, %v3208_v9, -inf }
0x173c   :  { %3217 = vmax.xlane.f32.xlu0 %v3216_v11 }
0x173d   :  { %v3219_v19 = vsel %vm546_vm2, %v3209_v34, -inf }
0x173e   :  { %3220 = vmax.xlane.f32.xlu1 %v3219_v19 }
0x17b6   :  { %v3212_v53 = vpop.xlane.xlu1 %3211 }
0x17b7   :  { %v3222_v58 = vsub.f32 %v3206_v10, %v3212_v53 }
0x17b8   :  { %v3215_v22 = vpop.xlane.xlu0 %3214 }
0x17b9   :  { %v3226_v38 = vmul.f32 1.442695, %v3222_v58  ;;  %v3223_v18 = vsub.f32 %v3207_v57, %v3215_v22 }
0x17bb   :  { %4962 = vpow2.f32 %v3226_v38  ;;  %v3228_v13 = vmul.f32 1.442695, %v3223_v18 }
0x17bd   :  { %4964 = vpow2.f32 %v3228_v13 }
0x17c5   :  { %v4963_v60 = vpop.eup %4962 }
0x17c6   :  { %v3234_v43 = vsel %vm546_vm2, %v4963_v60, 0.0 }
0x17c7   :  { %v4965_v39 = vpop.eup %4964  ;;  %3235 = vadd.xlane.f32.xlu0 %v3234_v43 }
0x17c8   :  { %v3237_v26 = vsel %vm546_vm2, %v4965_v39, 0.0 }
0x17c9   :  { %3238 = vadd.xlane.f32.xlu1 %v3237_v26  ;;  %v3218_v27 = vpop.xlane.xlu0 %3217 }
0x17ca   :  { %v3224_v28 = vsub.f32 %v3208_v9, %v3218_v27  ;;  %v4801_v9 = vld [vmem:[#allocation5 + $0x78] sm:$0xff]  }
0x17cb   :  { %v3221_v30 = vpop.xlane.xlu1 %3220 }
0x17cc   :  { %v3230_v36 = vmul.f32 1.442695, %v3224_v28  ;;  %v3225_v41 = vsub.f32 %v3209_v34, %v3221_v30 }
0x17ce   :  { %4966 = vpow2.f32 %v3230_v36  ;;  %v3232_v42 = vmul.f32 1.442695, %v3225_v41 }
0x17d0   :  { %4968 = vpow2.f32 %v3232_v42  ;;  %v4807_v42 = vld [vmem:[#allocation7 + $0x94] ss:$8 sps:$4 sm:$0xff]  }
0x17d8   :  { %v4967_v46 = vpop.eup %4966 }
0x17d9   :  { %v3240_v49 = vsel %vm546_vm2, %v4967_v46, 0.0 }
0x17da   :  { %v4969_v50 = vpop.eup %4968  ;;  %3241 = vadd.xlane.f32.xlu0 %v3240_v49  ;;  %v4810_v49 = vld [vmem:[#allocation7 + $0xa4] ss:$8 sps:$4 sm:$0xff]  }
0x17db   :  { %v3243_v52 = vsel %vm546_vm2, %v4969_v50, 0.0 }
0x17dc   :  { %3244 = vadd.xlane.f32.xlu1 %v3243_v52  ;;  %v4814_v52 = vld [vmem:[#allocation7 + $0xc0] ss:$8 sps:$4 sm:$0xff]  }
0x17ed   :  { %3303 = vrot.lane.b32.xlu1 %v5579_v20, %s5119_s2 }
0x17f0   :  { %3256 = vrot.lane.b32.xlu0 %v5583_v47, %s5119_s2 }
0x17f1   :  { %3354 = vrot.lane.b32.xlu1 %v2854_v8, %s5119_s2 }
0x17f4   :  { %3356 = vrot.lane.b32.xlu0 %v2855_v48, %s5119_s2 }
0x17f5   :  { %3360 = vrot.lane.b32.xlu1 %v3102_v51, %s5105_s23 }
0x17f8   :  { %3362 = vrot.lane.b32.xlu0 %v3103_v21, %s5105_s23  ;;  %v4798_v21 = vld [vmem:[#allocation5 + $0x60] sm:$0xff]  }
0x1854   :  { %v3236_v10 = vpop.xlane.xlu0 %3235 }
0x1856   :  { %v3239_v14 = vpop.xlane.xlu1 %3238 }
0x1857   :  { %4970 = vrcp.f32 %v3239_v14  ;;  %v4819_v14 = vld [vmem:[#allocation7 + $0xd4] ss:$8 sps:$4 sm:$0xff]  }
0x1858   :  { %4972 = vrcp.f32 %v3236_v10  ;;  %v4817_v10 = vld [vmem:[#allocation7 + $0xd0] ss:$8 sps:$4 sm:$0xff]  }
0x1861   :  { %v4971_v20 = vpop.eup %4970 }
0x1862   :  { %v4973_v61 = vpop.eup %4972  ;;  %v3251_v0 = vmul.f32 %v4971_v20, %v4965_v39  ;;  %v4822_v20 = vld [vmem:[#allocation7 + $0xe4] ss:$8 sps:$4 sm:$0xff]  }
0x1863   :  { %v3250_v33 = vmul.f32 %v4973_v61, %v4963_v60  ;;  %v4823_v61 = vld [vmem:[#allocation7 + $0xf0] ss:$8 sps:$4 sm:$0xff]  }
0x1865   :  { %v3254_v25 = vpack.c.bf16 %v3251_v0, %v3250_v33  ;;  %v4825_v0 = vld [vmem:[#allocation7 + $0xf4] ss:$8 sps:$4 sm:$0xff]   ;;  %v4827_v33 = vld [vmem:[#allocation8 + $0x80] sm:$0xff]  }
0x1867   :  { %v3242_v47 = vpop.xlane.xlu0 %3241 }
0x1868   :  { %4974 = vrcp.f32 %v3242_v47  ;;  %v4820_v47 = vld [vmem:[#allocation7 + $0xe0] ss:$8 sps:$4 sm:$0xff]  }
0x1869   :  { %v3245_v24 = vpop.xlane.xlu1 %3244 }
0x186a   :  { %4976 = vrcp.f32 %v3245_v24  ;;  %v4826_v24 = vld [vmem:[#allocation8 + $0xc0] sm:$0xff]  }
0x186b   :  { %v3257_v8 = vpop.permute.xlu0 %3256 }
0x186c   :  { %4629 = vmatpush3.bf16.msra.mxu0 %v3257_v8  ;;  %v4828_v8 = vld [vmem:[#allocation8 + $0xc8] sm:$0xff]  }
0x186d   :  { %v3304_v15 = vpop.permute.xlu1 %3303  ;;  %4640 = vmatprep.subr.bf16.mxu0 %v4794_v16 }
0x186e   :  { %4635 = vmatpush3.bf16.msra.mxu1 %v3304_v15  ;;  %v4829_v15 = vld [vmem:[#allocation8 + $0x88] sm:$0xff]  }
0x186f   :  { %4631 = vmatmul.mubr.msk.bf16.vlgmr.msra.gmra.mrb[80].mxu0 %vm546_vm2, %v3254_v25  ;;  %v3357_v43 = vpop.permute.xlu0 %3356  ;;  %3696 = vmatprep.subr.bf16.mxu1 %v4804_v37  ;;  %v4830_v25 = vld [vmem:[#allocation8 + $0xd0] sm:$0xff]  }
0x1870   :  { %4641 = vmatpush3.bf16.msra.mxu0 %v4794_v16  ;;  %v3375_v30 = vsel %vm447_vm1, %v2601_v56, %v3357_v43  ;;  %v4816_v56 = vld [vmem:[#allocation7 + $0xc4] ss:$8 sps:$4 sm:$0xff]  }
0x1871   :  { %4642 = vmatprep.subr.bf16.mxu0 %v4795_v5  ;;  %v3355_v18 = vpop.permute.xlu1 %3354  ;;  %v4836_v16 = vld [vmem:[#allocation8 + $0xe8] sm:$0xff]  }
0x1872   :  { %v4975_v48 = vpop.eup %4974  ;;  %v3372_v60 = vsel %vm447_vm1, %v2600_v40, %v3355_v18  ;;  %v4802_v40 = vld [vmem:[#allocation7 + $0x80] ss:$8 sps:$4 sm:$0xff]  }
0x1873   :  { %v3252_v57 = vmul.f32 %v4975_v48, %v4967_v46  ;;  %v3363_v28 = vpop.permute.xlu0 %3362  ;;  %v4805_v46 = vld [vmem:[#allocation7 + $0x90] ss:$8 sps:$4 sm:$0xff]  }
0x1874   :  { %v4977_v51 = vpop.eup %4976  ;;  %4643 = vmatpush3.bf16.msra.mxu0 %v4795_v5  ;;  %v3379_v36 = vsel %vm1457_vm3, %v3375_v30, %v3363_v28  ;;  %v4831_v48 = vld [vmem:[#allocation8 + $0x90] sm:$0xff]   ;;  %v4176_v5 = vld [vmem:[%s5837_s5 + $0x1] ss:$0 sm:$0xff] }
0x1875   :  { %v3253_v3 = vmul.f32 %v4977_v51, %v4969_v50  ;;  %4644 = vmatprep.subr.bf16.mxu0 %v4796_v6  ;;  %v3361_v13 = vpop.permute.xlu1 %3360  ;;  %v4808_v50 = vld [vmem:[#allocation7 + $0xa0] ss:$8 sps:$4 sm:$0xff]   ;;  %v4832_v51 = vld [vmem:[#allocation8 + $0xd8] sm:$0xff]  }
0x1876   :  { %v3377_v39 = vsel %vm1457_vm3, %v3372_v60, %v3361_v13 }
0x1877   :  { %v3255_v44 = vpack.c.bf16 %v3253_v3, %v3252_v57  ;;  %v4833_v57 = vld [vmem:[#allocation8 + $0x98] sm:$0xff]   ;;  %v4834_v3 = vld [vmem:[#allocation8 + $0xe0] sm:$0xff]  }
0x1878   :  { %4645 = vmatpush3.bf16.msra.mxu0 %v4796_v6 }
0x1879   :  { %4637 = vmatmul.mubr.msk.bf16.vlgmr.msra.gmra.mrb[84].mxu1 %vm546_vm2, %v3255_v44  ;;  %4646 = vmatprep.subr.bf16.mxu0 %v4797_v59  ;;  %v4835_v44 = vld [vmem:[#allocation8 + $0xa0] sm:$0xff]  }
0x187a   :  { %3728 = vmatprep.mubr.bf16.mxu1 %v5115_v1  ;;  %3697 = vmatpush1.bf16.msra.mxu1 %v4802_v40 }
0x187b   :  { %3698 = vmatprep.subr.bf16.mxu1 %v4807_v42 }
0x187c   :  { %4647 = vmatpush3.bf16.msra.mxu0 %v4797_v59 }
0x187d   :  { %4648 = vmatprep.subr.bf16.mxu0 %v4798_v21 }
0x187e   :  { %3699 = vmatpush1.bf16.msra.mxu1 %v4805_v46 }
0x187f   :  { %3700 = vmatprep.subr.bf16.mxu1 %v4810_v49 }
0x1880   :  { %4649 = vmatpush3.bf16.msra.mxu0 %v4798_v21 }
0x1881   :  { %4650 = vmatprep.subr.bf16.mxu0 %v4799_v23 }
0x1882   :  { %3701 = vmatpush1.bf16.msra.mxu1 %v4808_v50 }
0x1883   :  { %3702 = vmatprep.subr.bf16.mxu1 %v4813_v55 }
0x1884   :  { %4651 = vmatpush3.bf16.msra.mxu0 %v4799_v23 }
0x1885   :  { %4652 = vmatprep.subr.bf16.mxu0 %v4800_v7 }
0x1886   :  { %3703 = vmatpush1.bf16.msra.mxu1 %v4811_v62 }
0x1887   :  { %3704 = vmatprep.subr.bf16.mxu1 %v4816_v56 }
0x1888   :  { %4653 = vmatpush3.bf16.msra.mxu0 %v4800_v7 }
0x1889   :  { %4654 = vmatprep.subr.bf16.mxu0 %v4801_v9 }
0x188a   :  { %3705 = vmatpush1.bf16.msra.mxu1 %v4814_v52 }
0x188b   :  { %3706 = vmatprep.subr.bf16.mxu1 %v4819_v14 }
0x188c   :  { %4655 = vmatpush3.bf16.msra.mxu0 %v4801_v9 }
0x188d   :  { %4360 = vmatprep.subr.bf16.mxu0 %v4826_v24 }
0x188e   :  { %3707 = vmatpush1.bf16.msra.mxu1 %v4817_v10 }
0x188f   :  { %3708 = vmatprep.subr.bf16.mxu1 %v4822_v20 }
0x1892   :  { %3709 = vmatpush1.bf16.msra.mxu1 %v4820_v47 }
0x1893   :  { %3710 = vmatprep.subr.bf16.mxu1 %v4825_v0 }
0x1896   :  { %3711 = vmatpush1.bf16.msra.mxu1 %v4823_v61 }
0x1942   :  { %v3296_v12 = vpop.f32.mrb[80].mxu0 }
0x1943   :  { %v4632_v31 = vpop.f32.mrb[81].mxu0 }
0x1944   :  { %v3299_v34 = vpop.f32.mrb[82].mxu0 }
0x1945   :  { %v3350_v17 = vpack.c.bf16 %v3299_v34, %v3296_v12  ;;  %v4633_v11 = vpop.f32.mrb[83].mxu0 }
0x1947   :  { %3366 = vrot.lane.b32.xlu1 %v3350_v17, %s5118_s1 }
0x194c   :  { %v3343_v19 = vpop.f32.mrb[84].mxu1 }
0x194d   :  { %v4638_v53 = vpop.f32.mrb[85].mxu1 }
0x194e   :  { %v3346_v58 = vpop.f32.mrb[86].mxu1 }
0x194f   :  { %v3351_v22 = vpack.c.bf16 %v3346_v58, %v3343_v19  ;;  %v4639_v38 = vpop.f32.mrb[87].mxu1 }
0x1951   :  { %3368 = vrot.lane.b32.xlu0 %v3351_v22, %s5118_s1 }
0x19b9   :  { %v3367_v26 = vpop.permute.xlu1 %3366 }
0x19ba   :  { %v3381_v27 = vsel %vm1462_vm4, %v3377_v39, %v3367_v26 }
0x19bb   :  { %4656 = vmatprep.mubr.bf16.mxu0 %v3381_v27 }
0x19c3   :  { %v3369_v41 = vpop.permute.xlu0 %3368 }
0x19c4   :  { %v3384_v35 = vsel %vm1462_vm4, %v3379_v36, %v3369_v41 }
0x19c5   :  { %4657 = vmatmul.mubr.bf16.vlgmr.msra.gmra.mrb[84].mxu0 %v3384_v35 }
0x19c6   :  { %4361 = vmatpush3.bf16.msra.mxu0 %v4827_v33 }
0x19c7   :  { %4362 = vmatprep.subr.bf16.mxu0 %v4828_v8 }
0x19ca   :  { %4363 = vmatpush3.bf16.msra.mxu0 %v4829_v15 }
0x19cb   :  { %4364 = vmatprep.subr.bf16.mxu0 %v4830_v25 }
0x19ce   :  { %4365 = vmatpush3.bf16.msra.mxu0 %v4831_v48 }
0x19cf   :  { %4366 = vmatprep.subr.bf16.mxu0 %v4832_v51 }
0x19d2   :  { %4367 = vmatpush3.bf16.msra.mxu0 %v4833_v57 }
0x19d3   :  { %4368 = vmatprep.subr.bf16.mxu0 %v4834_v3 }
0x19d6   :  { %4369 = vmatpush3.bf16.msra.mxu0 %v4835_v44  ;;  %v4187_v44 = vld [vmem:[%s5838_s6 + $0x1] ss:$0 sm:$0xff] }
0x19d7   :  { %4370 = vmatprep.subr.bf16.mxu0 %v4836_v16 }
0x1a98   :  { %v4658_v6 = vpop.f32.mrb[84].mxu0 }
0x1a99   :  { %v3502_v59 = vadd.f32 %v4658_v6, %v4176_v5  ;;  %v3493_v21 = vpop.f32.mrb[85].mxu0 }
0x1a9a   :  { %v3494_v23 = vadd.f32 %v4176_v5, %v3493_v21  ;;  %v4659_v7 = vpop.f32.mrb[86].mxu0 }
0x1a9b   :  { %v3505_v9 = vadd.f32 %v4659_v7, %v4176_v5  ;;  %v3496_v12 = vpop.f32.mrb[87].mxu0  ;;  %v3514_v34 = vadd.f32 %v3502_v59, %v5560_v29  ;;  %v4188_v59 = vld [vmem:[%s5839_s7 + $0x1] ss:$0 sm:$0xff] }
0x1a9c   :  { %v3497_v31 = vadd.f32 %v4176_v5, %v3496_v12  ;;  %v3512_v11 = vadd.f32 %v3494_v23, %v5555_v45 }
0x1a9d   :  { %v3515_v17 = vadd.f32 %v3505_v9, %v5562_v32 }
0x1a9e   :  { %v3513_v19 = vadd.f32 %v3497_v31, %v5553_v4 }
0x1a9f   :  { %v3523_v53 = vadd.f32 %v3515_v17, %v3514_v34 }
0x1aa0   :  { %v3516_v58 = vadd.f32 %v3513_v19, %v3512_v11 }
0x1aa1   :  { %v3524_v22 = vrot.slane %v3523_v53, 4 }
0x1aa2   :  { %v3517_v38 = vrot.slane %v3516_v58, 4 }
0x1aa3   :  { %v3525_v18 = vadd.f32 %v3524_v22, %v3523_v53  ;;  %v4837_v53 = vld [vmem:[#allocation8 + $0xa8] sm:$0xff]   ;;  %v4839_v22 = vld [vmem:[#allocation8 + $0xb0] sm:$0xff]  }
0x1aa4   :  { %v3518_v13 = vadd.f32 %v3517_v38, %v3516_v58  ;;  %4371 = vmatpush3.bf16.msra.mxu0 %v4837_v53  ;;  %v4838_v58 = vld [vmem:[#allocation8 + $0xf0] sm:$0xff]   ;;  %v4840_v38 = vld [vmem:[#allocation8 + $0xf8] sm:$0xff]  }
0x1aa5   :  { %v3526_v60 = vrot.slane %v3525_v18, 2  ;;  %4372 = vmatprep.subr.bf16.mxu0 %v4838_v58 }
0x1aa6   :  { %v3519_v43 = vrot.slane %v3518_v13, 2 }
0x1aa7   :  { %v3527_v39 = vadd.f32 %v3526_v60, %v3525_v18  ;;  %v4841_v18 = vld [vmem:[#allocation8 + $0xb8] sm:$0xff]  }
0x1aa8   :  { %v3520_v26 = vadd.f32 %v3519_v43, %v3518_v13  ;;  %4373 = vmatpush3.bf16.msra.mxu0 %v4839_v22 }
0x1aa9   :  { %v3528_v27 = vrot.slane %v3527_v39, 1  ;;  %4374 = vmatprep.subr.bf16.mxu0 %v4840_v38 }
0x1aaa   :  { %v3521_v28 = vrot.slane %v3520_v26, 1 }
0x1aab   :  { %v3529_v30 = vadd.f32 %v3528_v27, %v3527_v39 }
0x1aac   :  { %v3522_v29 = vadd.f32 %v3521_v28, %v3520_v26  ;;  %4375 = vmatpush3.bf16.msra.mxu0 %v4841_v18 }
0x1aad   :  { %v3531_v36 = vmul.f32 0.0625, %v3529_v30 }
0x1aae   :  { %v3530_v32 = vmul.f32 0.0625, %v3522_v29 }
0x1aaf   :  { %v3534_v41 = vsub.f32 %v3514_v34, %v3531_v36  ;;  %v3535_v45 = vsub.f32 %v3515_v17, %v3531_v36 }
0x1ab0   :  { %v3532_v35 = vsub.f32 %v3512_v11, %v3530_v32  ;;  %v3533_v4 = vsub.f32 %v3513_v19, %v3530_v32 }
0x1ab1   :  { %v3538_v37 = vmul.f32 %v3534_v41, %v3534_v41  ;;  %v3539_v40 = vmul.f32 %v3535_v45, %v3535_v45 }
0x1ab2   :  { %v3536_v42 = vmul.f32 %v3532_v35, %v3532_v35  ;;  %v3537_v46 = vmul.f32 %v3533_v4, %v3533_v4 }
0x1ab3   :  { %v3547_v49 = vadd.f32 %v3539_v40, %v3538_v37 }
0x1ab4   :  { %v3540_v50 = vadd.f32 %v3537_v46, %v3536_v42 }
0x1ab5   :  { %v3548_v55 = vrot.slane %v3547_v49, 4 }
0x1ab6   :  { %v3541_v62 = vrot.slane %v3540_v50, 4 }
0x1ab7   :  { %v3549_v56 = vadd.f32 %v3548_v55, %v3547_v49 }
0x1ab8   :  { %v3542_v52 = vadd.f32 %v3541_v62, %v3540_v50 }
0x1ab9   :  { %v3550_v14 = vrot.slane %v3549_v56, 2 }
0x1aba   :  { %v3543_v10 = vrot.slane %v3542_v52, 2 }
0x1abb   :  { %v3551_v20 = vadd.f32 %v3550_v14, %v3549_v56 }
0x1abc   :  { %v3544_v47 = vadd.f32 %v3543_v10, %v3542_v52 }
0x1abd   :  { %v3552_v61 = vrot.slane %v3551_v20, 1 }
0x1abe   :  { %v3545_v0 = vrot.slane %v3544_v47, 1 }
0x1abf   :  { %v3553_v24 = vadd.f32 %v3552_v61, %v3551_v20 }
0x1ac0   :  { %v3546_v33 = vadd.f32 %v3545_v0, %v3544_v47  ;;  %v4207_v47 = vld [vmem:[%s5843_s11 + $0x1] ss:$0 sm:$0xff] }
0x1ac1   :  { %v3555_v8 = vmul.f32 0.0625, %v3553_v24 }
0x1ac2   :  { %v3554_v15 = vmul.f32 0.0625, %v3546_v33 }
0x1ac3   :  { %v3557_v25 = vadd.f32 1e-05, %v3555_v8 }
0x1ac4   :  { %v3556_v48 = vadd.f32 1e-05, %v3554_v15 }
0x1ac5   :  { %4978 = vrsqrt.f32 %v3557_v25 }
0x1ac6   :  { %4980 = vrsqrt.f32 %v3556_v48 }
0x1acf   :  { %v4979_v51 = vpop.eup %4978 }
0x1ad0   :  { %v4981_v57 = vpop.eup %4980  ;;  %v3563_v3 = vmul.f32 %v4979_v51, %v3535_v45  ;;  %v3562_v16 = vmul.f32 %v4979_v51, %v3534_v41 }
0x1ad1   :  { %v3560_v5 = vmul.f32 %v4981_v57, %v3532_v35  ;;  %v3561_v6 = vmul.f32 %v4981_v57, %v3533_v4 }
0x1ad2   :  { %v3572_v31 = vmul.f32 %v4187_v44, %v3562_v16  ;;  %v3573_v34 = vmul.f32 %v4187_v44, %v3563_v3 }
0x1ad3   :  { %v3571_v21 = vmul.f32 %v4187_v44, %v3561_v6  ;;  %v3570_v23 = vmul.f32 %v4187_v44, %v3560_v5 }
0x1ad4   :  { %v5791_v17 = vadd.f32 %v4188_v59, %v3572_v31  ;;  %v5793_v11 = vadd.f32 %v4188_v59, %v3573_v34 }
0x1ad5   :  { %v5784_v7 = vadd.f32 %v4188_v59, %v3570_v23  ;;  %v5786_v9 = vadd.f32 %v4188_v59, %v3571_v21 }
0x1ad6   :  { %v3585_v19 = vpack.c.bf16 %v5793_v11, %v5791_v17 }
0x1ad7   :  { %v3584_v12 = vpack.c.bf16 %v5786_v9, %v5784_v7 }
0x1ad9   :  { %3729 = vmatmul.mubr.bf16.vlgmr.msra.gmra.mrb[88].mxu1 %v3584_v12 }
0x1ada   :  { %3738 = vmatprep.mubr.bf16.mxu1 %v5115_v1  ;;  %v4189_v1 = vld [vmem:[%s5841_s9 + $0x2] sm:$0x3] }
0x1adb   :  { %v3609_v13 = vrot.slane %v4189_v1, %v1686_v63  ;;  %v3613_v60 = vrot.slane %v4189_v1, %v1690_v54 }
0x1ae1   :  { %3739 = vmatmul.mubr.bf16.gmra.mrb[92].mxu1 %v3585_v19 }
0x1bac   :  { %v3730_v43 = vpop.f32.mrb[88].mxu1 }
0x1bad   :  { %v3731_v39 = vadd.f32 %v3730_v43, %v3609_v13  ;;  %v3732_v26 = vpop.f32.mrb[89].mxu1 }
0x1bae   :  { %v3733_v27 = vadd.f32 %v3732_v26, %v3613_v60  ;;  %v3734_v28 = vpop.f32.mrb[90].mxu1 }
0x1baf   :  { %v3735_v30 = vadd.f32 %v3734_v28, %v3609_v13  ;;  %v3736_v29 = vpop.f32.mrb[91].mxu1  ;;  %v3749_v32 = vmax.f32 %v3731_v39, 0.0 }
0x1bb0   :  { %v3737_v36 = vadd.f32 %v3736_v29, %v3613_v60  ;;  %v3750_v45 = vmax.f32 %v3733_v27, 0.0 }
0x1bb1   :  { %v3751_v41 = vmax.f32 %v3735_v30, 0.0 }
0x1bb2   :  { %v3752_v35 = vmax.f32 %v3737_v36, 0.0 }
0x1bb3   :  { %v3757_v4 = vpack.c.bf16 %v3751_v41, %v3749_v32 }
0x1bb4   :  { %v3758_v37 = vpack.c.bf16 %v3752_v35, %v3750_v45  ;;  %v3740_v40 = vpop.f32.mrb[92].mxu1 }
0x1bb5   :  { %v3741_v42 = vadd.f32 %v3740_v40, %v3609_v13  ;;  %v3742_v63 = vpop.f32.mrb[93].mxu1 }
0x1bb6   :  { %v3743_v46 = vadd.f32 %v3742_v63, %v3613_v60  ;;  %v3744_v2 = vpop.f32.mrb[94].mxu1  ;;  %3930 = vmatprep.mubr.bf16.mxu0 %v3758_v37 }
0x1bb7   :  { %v3745_v54 = vadd.f32 %v3744_v2, %v3609_v13  ;;  %v3746_v49 = vpop.f32.mrb[95].mxu1  ;;  %3931 = vmatmul.mubr.bf16.vlgmr.msra.gmra.mrb[88].mxu0 %v3757_v4  ;;  %v3753_v55 = vmax.f32 %v3741_v42, 0.0 }
0x1bb8   :  { %v3747_v50 = vadd.f32 %v3746_v49, %v3613_v60  ;;  %v3754_v56 = vmax.f32 %v3743_v46, 0.0 }
0x1bb9   :  { %v3755_v62 = vmax.f32 %v3745_v54, 0.0 }
0x1bba   :  { %v3756_v52 = vmax.f32 %v3747_v50, 0.0 }
0x1bbb   :  { %v3759_v14 = vpack.c.bf16 %v3755_v62, %v3753_v55 }
0x1bbc   :  { %v3760_v10 = vpack.c.bf16 %v3756_v52, %v3754_v56 }
0x1bbe   :  { %3938 = vmatprep.mubr.bf16.mxu0 %v3760_v10 }
0x1bbf   :  { %3939 = vmatmul.mubr.bf16.gmra.mrb[92].mxu0 %v3759_v14 }
0x1c8a   :  { %v4376_v20 = vpop.f32.mrb[88].mxu0 }
0x1c8b   :  { %v4377_v61 = vpop.f32.mrb[89].mxu0 }
0x1c8c   :  { %v4378_v0 = vadd.f32 %v4377_v61, %v4376_v20  ;;  %v4379_v24 = vpop.f32.mrb[90].mxu0  ;;  %v4226_v20 = vld [vmem:[%s5844_s12 + $0x1] ss:$0 sm:$0xff]  ;;  %s5074_s12 = scalar_lea.vmem %s4033_s27, 512 }
0x1c8d   :  { %v4380_v33 = vpop.f32.mrb[91].mxu0  ;;  %p5075_p4 = scmp.ne.s32.totalorder %s4033_s27, %s5074_s12  ;;  %p5080_p6 = scmp.lt.s32.totalorder %s5074_s12, %s5074_s12 }
0x1c8e   :  { %v3933_v8 = vadd.f32 %v4378_v0, %v4207_v47  ;;  %v4381_v15 = vadd.f32 %v4380_v33, %v4379_v24  ;;  %v4227_v0 = vld [vmem:[%s5845_s13 + $0x1] ss:$0 sm:$0xff] }
0x1c8f   :  { %p5081_p7 = por %p5080_p6, %p5079_p5 }
0x1c90   :  { %v3936_v25 = vadd.f32 %v4381_v15, %v4207_v47  ;;  %v3951_v48 = vadd.f32 %v3933_v8, %v5784_v7 }
0x1c91   :  { %p5082_p8 = pnand %p5081_p7, %p5075_p4 }
0x1c92   :  { %v3952_v51 = vadd.f32 %v3936_v25, %v5786_v9  ;;  %v4382_v57 = vpop.f32.mrb[92].mxu0 }
0x1c93   :  { %v4383_v3 = vpop.f32.mrb[93].mxu0 }
0x1c94   :  { %v3955_v44 = vadd.f32 %v3952_v51, %v3951_v48  ;;  %v4384_v16 = vadd.f32 %v4383_v3, %v4382_v57  ;;  %v4385_v5 = vpop.f32.mrb[94].mxu0 }
0x1c95   :  { %v4386_v6 = vpop.f32.mrb[95].mxu0 }
0x1c96   :  { %v3956_v59 = vrot.slane %v3955_v44, 4  ;;  %v3941_v21 = vadd.f32 %v4384_v16, %v4207_v47  ;;  %v4387_v23 = vadd.f32 %v4386_v6, %v4385_v5 }
0x1c98   :  { %v3957_v12 = vadd.f32 %v3956_v59, %v3955_v44  ;;  %v3944_v31 = vadd.f32 %v4387_v23, %v4207_v47  ;;  %v3953_v19 = vadd.f32 %v3941_v21, %v5791_v17 }
0x1c9a   :  { %v3958_v34 = vrot.slane %v3957_v12, 2  ;;  %v3954_v53 = vadd.f32 %v3944_v31, %v5793_v11 }
0x1c9c   :  { %v3959_v58 = vadd.f32 %v3958_v34, %v3957_v12  ;;  %v3962_v7 = vadd.f32 %v3954_v53, %v3953_v19 }
0x1c9e   :  { %v3960_v22 = vrot.slane %v3959_v58, 1  ;;  %v3963_v9 = vrot.slane %v3962_v7, 4 }
0x1ca0   :  { %v3961_v38 = vadd.f32 %v3960_v22, %v3959_v58  ;;  %v3964_v18 = vadd.f32 %v3963_v9, %v3962_v7 }
0x1ca2   :  { %v3969_v1 = vmul.f32 0.0625, %v3961_v38  ;;  %v3965_v13 = vrot.slane %v3964_v18, 2 }
0x1ca4   :  { %v3971_v60 = vsub.f32 %v3951_v48, %v3969_v1  ;;  %v3972_v43 = vsub.f32 %v3952_v51, %v3969_v1  ;;  %v3966_v39 = vadd.f32 %v3965_v13, %v3964_v18 }
0x1ca6   :  { %v3975_v26 = vmul.f32 %v3971_v60, %v3971_v60  ;;  %v3976_v27 = vmul.f32 %v3972_v43, %v3972_v43  ;;  %v3967_v28 = vrot.slane %v3966_v39, 1 }
0x1ca8   :  { %v3979_v30 = vadd.f32 %v3976_v27, %v3975_v26  ;;  %v3968_v29 = vadd.f32 %v3967_v28, %v3966_v39 }
0x1caa   :  { %v3980_v36 = vrot.slane %v3979_v30, 4  ;;  %v3970_v17 = vmul.f32 0.0625, %v3968_v29 }
0x1cac   :  { %v3981_v32 = vadd.f32 %v3980_v36, %v3979_v30  ;;  %v3973_v11 = vsub.f32 %v3953_v19, %v3970_v17  ;;  %v3974_v41 = vsub.f32 %v3954_v53, %v3970_v17 }
0x1cae   :  { %v3982_v45 = vrot.slane %v3981_v32, 2  ;;  %v3977_v35 = vmul.f32 %v3973_v11, %v3973_v11  ;;  %v3978_v4 = vmul.f32 %v3974_v41, %v3974_v41 }
0x1cb0   :  { %v3983_v37 = vadd.f32 %v3982_v45, %v3981_v32  ;;  %v3986_v40 = vadd.f32 %v3978_v4, %v3977_v35 }
0x1cb2   :  { %v3984_v42 = vrot.slane %v3983_v37, 1  ;;  %v3987_v63 = vrot.slane %v3986_v40, 4 }
0x1cb4   :  { %v3985_v46 = vadd.f32 %v3984_v42, %v3983_v37  ;;  %v3988_v2 = vadd.f32 %v3987_v63, %v3986_v40 }
0x1cb6   :  { %v3993_v54 = vmul.f32 0.0625, %v3985_v46  ;;  %v3989_v49 = vrot.slane %v3988_v2, 2 }
0x1cb8   :  { %v3995_v50 = vadd.f32 1e-05, %v3993_v54  ;;  %v3990_v55 = vadd.f32 %v3989_v49, %v3988_v2 }
0x1cba   :  { %4982 = vrsqrt.f32 %v3995_v50  ;;  %v3991_v62 = vrot.slane %v3990_v55, 1 }
0x1cbc   :  { %v3992_v56 = vadd.f32 %v3991_v62, %v3990_v55 }
0x1cbe   :  { %v3994_v52 = vmul.f32 0.0625, %v3992_v56 }
0x1cc0   :  { %v3996_v14 = vadd.f32 1e-05, %v3994_v52 }
0x1cc2   :  { %4984 = vrsqrt.f32 %v3996_v14 }
0x1cc4   :  { %v4983_v10 = vpop.eup %4982 }
0x1cc5   :  { %v3999_v47 = vmul.f32 %v4983_v10, %v3971_v60  ;;  %v4000_v61 = vmul.f32 %v4983_v10, %v3972_v43 }
0x1cc7   :  { %v4010_v24 = vmul.f32 %v4226_v20, %v4000_v61  ;;  %v4009_v33 = vmul.f32 %v4226_v20, %v3999_v47 }
0x1cc9   :  { %v4019_v8 = vadd.f32 %v4227_v0, %v4009_v33  ;;  %v4020_v15 = vadd.f32 %v4227_v0, %v4010_v24 }
0x1ccb   :  { %4023 = vst [vmem:[#allocation10] sm:$0xff] %v4019_v8  ;;  %4024 = vst [vmem:[#allocation10 + $0x8] sm:$0xff] %v4020_v15 }
0x1ccc   :  { %v4985_v25 = vpop.eup %4984 }
0x1ccd   :  { %v4001_v48 = vmul.f32 %v4985_v25, %v3973_v11  ;;  %v4002_v51 = vmul.f32 %v4985_v25, %v3974_v41 }
0x1ccf   :  { %v4012_v57 = vmul.f32 %v4226_v20, %v4002_v51  ;;  %v4011_v3 = vmul.f32 %v4226_v20, %v4001_v48 }
0x1cd1   :  { %v4021_v44 = vadd.f32 %v4227_v0, %v4011_v3  ;;  %v4022_v16 = vadd.f32 %v4227_v0, %v4012_v57 }
0x1cd3   :  { %4025 = vst [vmem:[#allocation10 + $0x10] sm:$0xff] %v4021_v44  ;;  %4026 = vst [vmem:[#allocation10 + $0x18] sm:$0xff] %v4022_v16 }
0x1cd4   :  { %5085 = shalt.err (!%p5082_p8)
}
0x1cd5   :  { %s5086_s4 = scalar_lea.hbm %s5846_s14, 512 }
0x1cd6   :  { %p5087_p9 = scmp.ne.s32.totalorder %s5846_s14, %s5086_s4  ;;  %p5090_p10 = scmp.lt.u32.totalorder %s5086_s4, %s5846_s14 }
0x1cd8   :  { %p5092_p11 = pnand %p5090_p10, %p5087_p9 }
0x1cda   :  { %5095 = shalt.err (!%p5092_p11)
}
0x1cdb   :  { %4038 = dma.vmem_to_hbm [thread:$0]  %s4033_s27, 512, %s5846_s14, [#allocation4], %s5111_s3, %s5111_s3, %s5112_s28  }
0x1cdc   :  { %5102 = dma.done.wait [#allocation4], 512  }
0x1cdd   :  { %5103 = vsyncadd [#allocation4], 4294966784 }
0x1cde   :  { %4042 = vsyncpa [#allocation3], 1 }
0x1cdf   :  { %4043 = vsyncpa [#allocation6], 1 }
0x1ce0   :  { %4044 = vsyncpa [#allocation9], 1 }
0x1ce1   :  { %4045 = vsyncpa [#allocation4], 1 }

</bundles_post_ra>
